<compile_context>
chip_gen: v7x
topology: tpu7x:2x2x1
jax: 0.10.0
libtpu: 0.0.40
codegen_flags: <defaults>
</compile_context>

<pallas_src>
import functools

import jax
import jax.numpy as jnp
from jax.experimental import pallas as pl
from jax.experimental.pallas import tpu as pltpu

N_OUT = 2          # num_labels
N_OUT_PAD = 128    # lane-dense padded logits width (sliced back to N_OUT outside)


def _round_up(n, m):
    return ((n + m - 1) // m) * m


# ----------------------------------------------------------------------------
# Kernel 1: hoisted input projection  Z = X_flat @ W_ih_cat + (b_ih + b_hh).
#   X_flat is (B*T, 1024); W_ih_cat is (1024, 8H) = [fwd i,f,g,o | rev i,f,g,o].
# ----------------------------------------------------------------------------
def proj_kernel(x_ref, w_ref, b_ref, z_ref):
    # Cast the f32 X tile to bf16 in-kernel (avoids an extra XLA pass over X in
    # HBM while still feeding the MXU bf16 operands); W is stored bf16.
    x = x_ref[...].astype(jnp.bfloat16)
    acc = jnp.dot(x, w_ref[...], preferred_element_type=jnp.float32)
    z_ref[...] = (acc + b_ref[...]).astype(z_ref.dtype)          # bf16 Z


def _proj_vmem_bytes(tm, d, g):
    # double-buffered f32 X tile + resident bf16 W + double-buffered bf16 Z + bias
    return 2 * tm * d * 4 + d * g * 2 + 2 * tm * g * 2 + g * 4


def lstm_input_projection(x_flat, w_ih_cat, b_cat):
    R, D = x_flat.shape
    G = w_ih_cat.shape[1]            # 8H
    # Largest row tile (multiple of 8, <= 1024) whose pipeline stays well inside
    # VMEM on every generation (v5e 16 MiB default scoped, v7x 64 MiB physical).
    tm = 8
    for cand in (1024, 512, 256, 128, 64, 32, 16, 8):
        if cand <= _round_up(R, 8) and _proj_vmem_bytes(cand, D, G) <= (36 << 20):
            tm = cand
            break
    Rp = _round_up(R, tm)
    xp = jnp.pad(x_flat, ((0, Rp - R), (0, 0))) if Rp != R else x_flat
    vmem_limit = int(min(48 << 20,
                         max(32 << 20, _proj_vmem_bytes(tm, D, G) + (4 << 20))))

    z = pl.pallas_call(
        proj_kernel,
        out_shape=jax.ShapeDtypeStruct((Rp, G), jnp.bfloat16),
        grid_spec=pltpu.PrefetchScalarGridSpec(
            num_scalar_prefetch=0,
            grid=(Rp // tm,),
            in_specs=[
                pl.BlockSpec((tm, D), lambda i: (i, 0)),   # streamed row tile of X
                pl.BlockSpec((D, G), lambda i: (0, 0)),    # bf16 weights resident
                pl.BlockSpec((1, G), lambda i: (0, 0)),    # fused bias resident
            ],
            out_specs=pl.BlockSpec((tm, G), lambda i: (i, 0)),
        ),
        compiler_params=pltpu.CompilerParams(
            dimension_semantics=("parallel",),
            vmem_limit_bytes=vmem_limit),
    )(xp, w_ih_cat, b_cat)
    return z[:R] if Rp != R else z


# ----------------------------------------------------------------------------
# Kernel 2: fused bidirectional recurrence + MLP head.
#   grid = (Tp // TC,) sequential time chunks; forward/reverse (h, c) carries
#   live as separate (B, H) VMEM scratch buffers.
# ----------------------------------------------------------------------------
def rec_head_kernel(zf_ref, zr_ref, whh_f_ref, whh_r_ref,
                    w1f_ref, w1r_ref, b1_ref, w2_ref, b2_ref,
                    out_ref, hf_scr, cf_scr, hr_scr, cr_scr,
                    *, hidden_size, time_chunk):
    H = hidden_size
    ci = pl.program_id(0)

    @pl.when(ci == 0)
    def _init():
        hf_scr[...] = jnp.zeros_like(hf_scr)
        cf_scr[...] = jnp.zeros_like(cf_scr)
        hr_scr[...] = jnp.zeros_like(hr_scr)
        cr_scr[...] = jnp.zeros_like(cr_scr)

    whh_f = whh_f_ref[...]          # (H, 4H) forward recurrent weight
    whh_r = whh_r_ref[...]          # (H, 4H) reverse recurrent weight
    h_f, c_f = hf_scr[...], cf_scr[...]
    h_r, c_r = hr_scr[...], cr_scr[...]

    def lstm_step(z_in, h, c, whh):
        # gate math in f32 (v5e VPU/EUP has no bf16 path); contiguous H-wide
        # gate slices, no lane concatenations.
        z = z_in.astype(jnp.float32) + jnp.dot(h, whh,
                                               preferred_element_type=jnp.float32)
        i = jax.nn.sigmoid(z[:, 0 * H:1 * H])
        f = jax.nn.sigmoid(z[:, 1 * H:2 * H])
        g = jnp.tanh(z[:, 2 * H:3 * H])
        o = jax.nn.sigmoid(z[:, 3 * H:4 * H])
        c = f * c + i * g
        h = o * jnp.tanh(c)
        return h, c

    # Statically unrolled chunk; per-step loads come straight from the VMEM
    # refs (keeps vreg live ranges small).  Projection was hoisted, so each
    # step is just a tiny K=H matmul per direction + gate math.
    for s in range(time_chunk):
        h_f, c_f = lstm_step(zf_ref[:, s, :], h_f, c_f, whh_f)
        h_r, c_r = lstm_step(zr_ref[:, time_chunk - 1 - s, :], h_r, c_r, whh_r)

    hf_scr[...], cf_scr[...] = h_f, c_f
    hr_scr[...], cr_scr[...] = h_r, c_r

    @pl.when(ci == pl.num_programs(0) - 1)
    def _finalize():
        # hidden == [h_fwd | h_rev]; the concat is folded into split w1 halves.
        # dropout_fc is identity at inference.
        z1 = (jnp.dot(h_f, w1f_ref[...], preferred_element_type=jnp.float32)
              + jnp.dot(h_r, w1r_ref[...], preferred_element_type=jnp.float32)
              + b1_ref[...])
        z1 = jnp.maximum(z1, 0.0)                                        # relu
        logits = jnp.dot(z1, w2_ref[...], preferred_element_type=jnp.float32) + b2_ref[...]
        out_ref[...] = logits.astype(out_ref.dtype)                      # (B, 128) lane-dense


def lstm_recurrence_and_head(z, whh_f, whh_r, w1f, w1r, b1, w2_pad, b2_pad,
                             *, hidden_size):
    B, T, G = z.shape
    H = hidden_size
    assert G == 8 * H
    assert (4 * H) % 128 == 0, "hidden_size must be a multiple of 32 for lane-aligned gate slabs"

    # Pad time to a multiple of 16 (bf16 sublane packing; keeps the tiled path
    # for any T).  Zero gate-input steps are an exact no-op on the zero-
    # initialized LSTM state, so pad the FORWARD half at the FRONT (processed
    # first, before the real sequence) and the REVERSE half at the END
    # (processed first by the reversed scan).
    Tp = _round_up(T, 16)
    if Tp != T:
        pad_t = Tp - T
        z_fwd = jnp.pad(z[:, :, :4 * H], ((0, 0), (pad_t, 0), (0, 0)))
        z_rev = jnp.pad(z[:, :, 4 * H:], ((0, 0), (0, pad_t), (0, 0)))
        z = jnp.concatenate([z_fwd, z_rev], axis=-1)

    TC = 16
    for cand in (64, 32, 16):
        if Tp % cand == 0:
            TC = cand
            break
    nc = Tp // TC

    kernel = functools.partial(rec_head_kernel, hidden_size=H, time_chunk=TC)
    return pl.pallas_call(
        kernel,
        out_shape=jax.ShapeDtypeStruct((B, w2_pad.shape[1]), jnp.float32),
        grid_spec=pltpu.PrefetchScalarGridSpec(
            num_scalar_prefetch=0,
            grid=(nc,),
            in_specs=[
                # fwd gate inputs: columns 0:4H at time chunk c
                pl.BlockSpec((B, TC, 4 * H), lambda c: (0, c, 0)),
                # rev gate inputs: columns 4H:8H at the mirrored time chunk
                pl.BlockSpec((B, TC, 4 * H), lambda c: (0, nc - 1 - c, 1)),
                pl.BlockSpec(whh_f.shape, lambda c: (0, 0)),
                pl.BlockSpec(whh_r.shape, lambda c: (0, 0)),
                pl.BlockSpec(w1f.shape, lambda c: (0, 0)),
                pl.BlockSpec(w1r.shape, lambda c: (0, 0)),
                pl.BlockSpec(b1.shape, lambda c: (0, 0)),
                pl.BlockSpec(w2_pad.shape, lambda c: (0, 0)),
                pl.BlockSpec(b2_pad.shape, lambda c: (0, 0)),
            ],
            out_specs=pl.BlockSpec((B, w2_pad.shape[1]), lambda c: (0, 0)),
            scratch_shapes=[
                pltpu.VMEM((B, H), jnp.float32),   # h fwd carry
                pltpu.VMEM((B, H), jnp.float32),   # c fwd carry
                pltpu.VMEM((B, H), jnp.float32),   # h rev carry
                pltpu.VMEM((B, H), jnp.float32),   # c rev carry
            ],
        ),
        compiler_params=pltpu.CompilerParams(
            dimension_semantics=("arbitrary",),
            vmem_limit_bytes=32 << 20),
    )(z, z, whh_f, whh_r, w1f, w1r, b1, w2_pad, b2_pad)


# ----------------------------------------------------------------------------
# Full forward (glue in plain JAX; only free reshapes + optional zero padding).
# ----------------------------------------------------------------------------
@jax.jit
def birnn_forward(input_ids, params):
    B, T, D = input_ids.shape
    H = params["w_hh_f_t"].shape[0]
    x_flat = input_ids.reshape(B * T, D)                      # free, row-major
    z = lstm_input_projection(x_flat, params["w_ih_cat"], params["b_cat"])
    z = z.reshape(B, T, 8 * H)                                # free, row-major
    logits_pad = lstm_recurrence_and_head(
        z, params["w_hh_f_t"], params["w_hh_r_t"],
        params["w1_f"], params["w1_r"], params["b1"],
        params["w2_pad"], params["b2_pad"], hidden_size=H)
    return logits_pad[:, :N_OUT]


# ----------------------------------------------------------------------------
# Parameters: raw torch-layout weights + packing into the kernel layout.
# ----------------------------------------------------------------------------
def init_raw_params(key, hidden_size, input_size=1024):
    H, D = hidden_size, input_size
    k = 1.0 / jnp.sqrt(H)
    names_shapes = [
        ("w_ih_f", (4 * H, D)), ("w_hh_f", (4 * H, H)),
        ("b_ih_f", (4 * H,)), ("b_hh_f", (4 * H,)),
        ("w_ih_r", (4 * H, D)), ("w_hh_r", (4 * H, H)),
        ("b_ih_r", (4 * H,)), ("b_hh_r", (4 * H,)),
        ("w1", (H, 2 * H)), ("b1", (H,)),
        ("w2", (N_OUT, H)), ("b2", (N_OUT,)),
    ]
    keys = jax.random.split(key, len(names_shapes))
    return {n: jax.random.uniform(kk, s, jnp.float32, -k, k)
            for kk, (n, s) in zip(keys, names_shapes)}


def pack_params(raw):
    H = raw["w_hh_f"].shape[1]
    # Input projection weight: (1024, 8H) bf16, columns [fwd i,f,g,o | rev i,f,g,o];
    # b_ih + b_hh fused into one f32 bias (loop invariant).
    w_ih_cat = jnp.concatenate([raw["w_ih_f"].T, raw["w_ih_r"].T],
                               axis=1).astype(jnp.bfloat16)
    b_cat = jnp.concatenate([raw["b_ih_f"] + raw["b_hh_f"],
                             raw["b_ih_r"] + raw["b_hh_r"]])[None, :].astype(jnp.float32)
    # Per-direction recurrent weights (H, 4H): two clean N=4H dots per step,
    # no block-diagonal zero padding.
    w_hh_f_t = raw["w_hh_f"].T
    w_hh_r_t = raw["w_hh_r"].T
    # Head, stored (in, out); w1 split into the fwd/rev halves of the hidden
    # concat; logits zero-padded to a lane-dense 128-wide output.
    w1_t = raw["w1"].T                       # (2H, H)
    w1_f = w1_t[:H]                          # applied to h_fwd
    w1_r = w1_t[H:]                          # applied to h_rev
    b1 = raw["b1"][None, :]
    w2_pad = jnp.zeros((H, N_OUT_PAD), jnp.float32).at[:, :N_OUT].set(raw["w2"].T)
    b2_pad = jnp.zeros((1, N_OUT_PAD), jnp.float32).at[0, :N_OUT].set(raw["b2"])
    return {"w_ih_cat": w_ih_cat, "b_cat": b_cat,
            "w_hh_f_t": w_hh_f_t, "w_hh_r_t": w_hh_r_t,
            "w1_f": w1_f, "w1_r": w1_r, "b1": b1,
            "w2_pad": w2_pad, "b2_pad": b2_pad}


# ----------------------------------------------------------------------------
# Pure-JAX reference (torch.nn.LSTM semantics) for a sanity check.
# ----------------------------------------------------------------------------
def birnn_reference(input_ids, raw):
    B, T, D = input_ids.shape
    H = raw["w_hh_f"].shape[1]

    def run(xs, w_ih, w_hh, b_ih, b_hh):
        h = jnp.zeros((B, H), jnp.float32)
        c = jnp.zeros((B, H), jnp.float32)
        for t in range(xs.shape[0]):
            z = xs[t] @ w_ih.T + b_ih + h @ w_hh.T + b_hh
            i = jax.nn.sigmoid(z[:, 0 * H:1 * H])
            f = jax.nn.sigmoid(z[:, 1 * H:2 * H])
            g = jnp.tanh(z[:, 2 * H:3 * H])
            o = jax.nn.sigmoid(z[:, 3 * H:4 * H])
            c = f * c + i * g
            h = o * jnp.tanh(c)
        return h

    xs = jnp.transpose(input_ids, (1, 0, 2))
    h_f = run(xs, raw["w_ih_f"], raw["w_hh_f"], raw["b_ih_f"], raw["b_hh_f"])
    h_r = run(xs[::-1], raw["w_ih_r"], raw["w_hh_r"], raw["b_ih_r"], raw["b_hh_r"])
    hidden = jnp.concatenate([h_f, h_r], axis=-1)
    z1 = jnp.maximum(hidden @ raw["w1"].T + raw["b1"], 0.0)
    return z1 @ raw["w2"].T + raw["b2"]


if __name__ == "__main__":
    key = jax.random.PRNGKey(0)
    k_in, k_par = jax.random.split(key)

    batch, seq, feat, hidden_size = 2, 8, 1024, 32
    input_ids = jax.random.normal(k_in, (batch, seq, feat), jnp.float32)
    raw = init_raw_params(k_par, hidden_size, feat)
    params = pack_params(raw)

    logits = birnn_forward(input_ids, params)
    jax.block_until_ready(logits)
    assert logits.shape == (batch, N_OUT), logits.shape

    # Sanity check vs pure-JAX f32 reference.  Tolerance absorbs the bf16
    # storage of the pre-projected gate inputs + default MXU precision.
    ref = birnn_reference(input_ids, raw)
    max_diff = float(jnp.max(jnp.abs(logits - ref)))
    assert jnp.allclose(logits, ref, atol=1e-1, rtol=1e-1), max_diff

    print("KERNEL_OK")
</pallas_src>

<mosaic_0001>
module attributes {stable_mosaic.version = 11 : i64} {
  func.func @proj_kernel(%arg0: i32, %arg1: memref<16x1024xf32, #tpu.memory_space<vmem>>, %arg2: memref<1024x256xbf16, #tpu.memory_space<vmem>>, %arg3: memref<1x256xf32, #tpu.memory_space<vmem>>, %arg4: memref<16x256xbf16, #tpu.memory_space<vmem>>) attributes {dimension_semantics = [#tpu.dimension_semantics<parallel>], iteration_bounds = array<i64: 1>, scalar_prefetch = 0 : i64, scratch_operands = 0 : i64, tpu.core_type = #tpu.core_type<tc>, window_params = [{transform_indices = @transform_0, window_bounds = array<i64: 16, 1024>}, {pipeline_mode = #tpu.pipeline_mode<synchronous>, transform_indices = @transform_1, window_bounds = array<i64: 1024, 256>}, {pipeline_mode = #tpu.pipeline_mode<synchronous>, transform_indices = @transform_2, window_bounds = array<i64: 1, 256>}, {transform_indices = @transform_3, window_bounds = array<i64: 16, 256>}]} {
    %c0 = arith.constant 0 : index
    %c0_0 = arith.constant 0 : index
    %0 = vector.load %arg1[%c0, %c0_0] : memref<16x1024xf32, #tpu.memory_space<vmem>>, vector<16x1024xf32>
    %1 = arith.truncf %0 : vector<16x1024xf32> to vector<16x1024xbf16>
    %c0_1 = arith.constant 0 : index
    %c0_2 = arith.constant 0 : index
    %2 = vector.load %arg2[%c0_1, %c0_2] : memref<1024x256xbf16, #tpu.memory_space<vmem>>, vector<1024x256xbf16>
    %cst = arith.constant dense<0.000000e+00> : vector<16x256xf32>
    %3 = tpu.matmul %1, %2, %cst {dimension_numbers = #tpu.dot_dimension_numbers<[1], [0], [0], [1], [0, 0, 1, 1], [], []>} : vector<16x1024xbf16>, vector<1024x256xbf16>, vector<16x256xf32> -> vector<16x256xf32>
    %c0_3 = arith.constant 0 : index
    %c0_4 = arith.constant 0 : index
    %4 = vector.load %arg3[%c0_3, %c0_4] : memref<1x256xf32, #tpu.memory_space<vmem>>, vector<1x256xf32>
    %5 = vector.broadcast %4 : vector<1x256xf32> to vector<16x256xf32>
    %6 = arith.addf %3, %5 : vector<16x256xf32>
    %7 = arith.truncf %6 : vector<16x256xf32> to vector<16x256xbf16>
    %c0_5 = arith.constant 0 : index
    %c0_6 = arith.constant 0 : index
    %8 = vector.load %arg4[%c0_5, %c0_6] : memref<16x256xbf16, #tpu.memory_space<vmem>>, vector<16x256xbf16>
    tpu.vector_store %arg4[%c0_5, %c0_6], %7 {strides = array<i32>} : memref<16x256xbf16, #tpu.memory_space<vmem>>, vector<16x256xbf16>,
    return
  }
  func.func @transform_0(%arg0: i32) -> (i32, i32) {
    %c0_i32 = arith.constant 0 : i32
    %c0_i32_0 = arith.constant 0 : i32
    return %arg0, %c0_i32 : i32, i32
  }
  func.func @transform_1(%arg0: i32) -> (i32, i32) {
    %c0_i32 = arith.constant 0 : i32
    %c0_i32_0 = arith.constant 0 : i32
    %c0_i32_1 = arith.constant 0 : i32
    return %c0_i32, %c0_i32_0 : i32, i32
  }
  func.func @transform_2(%arg0: i32) -> (i32, i32) {
    %c0_i32 = arith.constant 0 : i32
    %c0_i32_0 = arith.constant 0 : i32
    %c0_i32_1 = arith.constant 0 : i32
    return %c0_i32, %c0_i32_0 : i32, i32
  }
  func.func @transform_3(%arg0: i32) -> (i32, i32) {
    %c0_i32 = arith.constant 0 : i32
    %c0_i32_0 = arith.constant 0 : i32
    return %arg0, %c0_i32 : i32, i32
  }
}

module attributes {stable_mosaic.version = 11 : i64} {
  func.func @rec_head_kernel(%arg0: i32, %arg1: memref<2x16x128xbf16, #tpu.memory_space<vmem>>, %arg2: memref<2x16x128xbf16, #tpu.memory_space<vmem>>, %arg3: memref<32x128xf32, #tpu.memory_space<vmem>>, %arg4: memref<32x128xf32, #tpu.memory_space<vmem>>, %arg5: memref<32x32xf32, #tpu.memory_space<vmem>>, %arg6: memref<32x32xf32, #tpu.memory_space<vmem>>, %arg7: memref<1x32xf32, #tpu.memory_space<vmem>>, %arg8: memref<32x128xf32, #tpu.memory_space<vmem>>, %arg9: memref<1x128xf32, #tpu.memory_space<vmem>>, %arg10: memref<2x128xf32, #tpu.memory_space<vmem>>, %arg11: memref<2x32xf32, #tpu.memory_space<vmem>>, %arg12: memref<2x32xf32, #tpu.memory_space<vmem>>, %arg13: memref<2x32xf32, #tpu.memory_space<vmem>>, %arg14: memref<2x32xf32, #tpu.memory_space<vmem>>) attributes {dimension_semantics = [#tpu.dimension_semantics<arbitrary>], iteration_bounds = array<i64: 1>, scalar_prefetch = 0 : i64, scratch_operands = 4 : i64, tpu.core_type = #tpu.core_type<tc>, window_params = [{transform_indices = @transform_0, window_bounds = array<i64: 2, 16, 128>}, {transform_indices = @transform_1, window_bounds = array<i64: 2, 16, 128>}, {pipeline_mode = #tpu.pipeline_mode<synchronous>, transform_indices = @transform_2, window_bounds = array<i64: 32, 128>}, {pipeline_mode = #tpu.pipeline_mode<synchronous>, transform_indices = @transform_3, window_bounds = array<i64: 32, 128>}, {pipeline_mode = #tpu.pipeline_mode<synchronous>, transform_indices = @transform_4, window_bounds = array<i64: 32, 32>}, {pipeline_mode = #tpu.pipeline_mode<synchronous>, transform_indices = @transform_5, window_bounds = array<i64: 32, 32>}, {pipeline_mode = #tpu.pipeline_mode<synchronous>, transform_indices = @transform_6, window_bounds = array<i64: 1, 32>}, {pipeline_mode = #tpu.pipeline_mode<synchronous>, transform_indices = @transform_7, window_bounds = array<i64: 32, 128>}, {pipeline_mode = #tpu.pipeline_mode<synchronous>, transform_indices = @transform_8, window_bounds = array<i64: 1, 128>}, {pipeline_mode = #tpu.pipeline_mode<synchronous>, transform_indices = @transform_9, window_bounds = array<i64: 2, 128>}]} {
    %c0_i32 = arith.constant 0 : i32
    %0 = arith.cmpi eq, %arg0, %c0_i32 : i32
    %1 = arith.extui %0 : i1 to i32
    %c0_i32_0 = arith.constant 0 : i32
    %2 = arith.cmpi ne, %1, %c0_i32_0 : i32
    scf.if %2 {
      %cst_230 = arith.constant 0.000000e+00 : f32
      %976 = vector.broadcast %cst_230 : f32 to vector<2x32xf32>
      %c0_231 = arith.constant 0 : index
      %c0_232 = arith.constant 0 : index
      %977 = vector.load %arg11[%c0_231, %c0_232] : memref<2x32xf32, #tpu.memory_space<vmem>>, vector<2x32xf32>
      tpu.vector_store %arg11[%c0_231, %c0_232], %976 {strides = array<i32>} : memref<2x32xf32, #tpu.memory_space<vmem>>, vector<2x32xf32>,
      %cst_233 = arith.constant 0.000000e+00 : f32
      %978 = vector.broadcast %cst_233 : f32 to vector<2x32xf32>
      %c0_234 = arith.constant 0 : index
      %c0_235 = arith.constant 0 : index
      %979 = vector.load %arg12[%c0_234, %c0_235] : memref<2x32xf32, #tpu.memory_space<vmem>>, vector<2x32xf32>
      tpu.vector_store %arg12[%c0_234, %c0_235], %978 {strides = array<i32>} : memref<2x32xf32, #tpu.memory_space<vmem>>, vector<2x32xf32>,
      %cst_236 = arith.constant 0.000000e+00 : f32
      %980 = vector.broadcast %cst_236 : f32 to vector<2x32xf32>
      %c0_237 = arith.constant 0 : index
      %c0_238 = arith.constant 0 : index
      %981 = vector.load %arg13[%c0_237, %c0_238] : memref<2x32xf32, #tpu.memory_space<vmem>>, vector<2x32xf32>
      tpu.vector_store %arg13[%c0_237, %c0_238], %980 {strides = array<i32>} : memref<2x32xf32, #tpu.memory_space<vmem>>, vector<2x32xf32>,
      %cst_239 = arith.constant 0.000000e+00 : f32
      %982 = vector.broadcast %cst_239 : f32 to vector<2x32xf32>
      %c0_240 = arith.constant 0 : index
      %c0_241 = arith.constant 0 : index
      %983 = vector.load %arg14[%c0_240, %c0_241] : memref<2x32xf32, #tpu.memory_space<vmem>>, vector<2x32xf32>
      tpu.vector_store %arg14[%c0_240, %c0_241], %982 {strides = array<i32>} : memref<2x32xf32, #tpu.memory_space<vmem>>, vector<2x32xf32>,
    } else {
    }
    %c0 = arith.constant 0 : index
    %c0_1 = arith.constant 0 : index
    %3 = vector.load %arg3[%c0, %c0_1] : memref<32x128xf32, #tpu.memory_space<vmem>>, vector<32x128xf32>
    %c0_2 = arith.constant 0 : index
    %c0_3 = arith.constant 0 : index
    %4 = vector.load %arg4[%c0_2, %c0_3] : memref<32x128xf32, #tpu.memory_space<vmem>>, vector<32x128xf32>
    %c0_4 = arith.constant 0 : index
    %c0_5 = arith.constant 0 : index
    %5 = vector.load %arg11[%c0_4, %c0_5] : memref<2x32xf32, #tpu.memory_space<vmem>>, vector<2x32xf32>
    %c0_6 = arith.constant 0 : index
    %c0_7 = arith.constant 0 : index
    %6 = vector.load %arg12[%c0_6, %c0_7] : memref<2x32xf32, #tpu.memory_space<vmem>>, vector<2x32xf32>
    %c0_8 = arith.constant 0 : index
    %c0_9 = arith.constant 0 : index
    %7 = vector.load %arg13[%c0_8, %c0_9] : memref<2x32xf32, #tpu.memory_space<vmem>>, vector<2x32xf32>
    %c0_10 = arith.constant 0 : index
    %c0_11 = arith.constant 0 : index
    %8 = vector.load %arg14[%c0_10, %c0_11] : memref<2x32xf32, #tpu.memory_space<vmem>>, vector<2x32xf32>
    %c0_12 = arith.constant 0 : index
    %c0_13 = arith.constant 0 : index
    %c0_14 = arith.constant 0 : index
    %9 = vector.load %arg1[%c0_12, %c0_13, %c0_14] : memref<2x16x128xbf16, #tpu.memory_space<vmem>>, vector<2x1x128xbf16>
    %10 = vector.shape_cast %9 : vector<2x1x128xbf16> to vector<2x128xbf16>
    %11 = arith.extf %10 : vector<2x128xbf16> to vector<2x128xf32>
    %cst = arith.constant dense<0.000000e+00> : vector<2x128xf32>
    %12 = tpu.matmul %5, %3, %cst {dimension_numbers = #tpu.dot_dimension_numbers<[1], [0], [0], [1], [0, 0, 1, 1], [], []>} : vector<2x32xf32>, vector<32x128xf32>, vector<2x128xf32> -> vector<2x128xf32>
    %13 = arith.addf %11, %12 : vector<2x128xf32>
    %14 = vector.extract_strided_slice %13 {offsets = [0, 0], sizes = [2, 32], strides = [1, 1]} : vector<2x128xf32> to vector<2x32xf32>
    %15 = arith.negf %14 : vector<2x32xf32>
    %16 = math.exp %15 : vector<2x32xf32>
    %cst_15 = arith.constant 1.000000e+00 : f32
    %17 = vector.broadcast %cst_15 : f32 to vector<2x32xf32>
    %18 = arith.addf %17, %16 : vector<2x32xf32>
    %19 = arith.divf %17, %18 : vector<2x32xf32>
    %20 = vector.extract_strided_slice %13 {offsets = [0, 32], sizes = [2, 32], strides = [1, 1]} : vector<2x128xf32> to vector<2x32xf32>
    %21 = arith.negf %20 : vector<2x32xf32>
    %22 = math.exp %21 : vector<2x32xf32>
    %cst_16 = arith.constant 1.000000e+00 : f32
    %23 = vector.broadcast %cst_16 : f32 to vector<2x32xf32>
    %24 = arith.addf %23, %22 : vector<2x32xf32>
    %25 = arith.divf %23, %24 : vector<2x32xf32>
    %26 = vector.extract_strided_slice %13 {offsets = [0, 64], sizes = [2, 32], strides = [1, 1]} : vector<2x128xf32> to vector<2x32xf32>
    %27 = math.tanh %26 : vector<2x32xf32>
    %28 = vector.extract_strided_slice %13 {offsets = [0, 96], sizes = [2, 32], strides = [1, 1]} : vector<2x128xf32> to vector<2x32xf32>
    %29 = arith.negf %28 : vector<2x32xf32>
    %30 = math.exp %29 : vector<2x32xf32>
    %cst_17 = arith.constant 1.000000e+00 : f32
    %31 = vector.broadcast %cst_17 : f32 to vector<2x32xf32>
    %32 = arith.addf %31, %30 : vector<2x32xf32>
    %33 = arith.divf %31, %32 : vector<2x32xf32>
    %34 = arith.mulf %25, %6 : vector<2x32xf32>
    %35 = arith.mulf %19, %27 : vector<2x32xf32>
    %36 = arith.addf %34, %35 : vector<2x32xf32>
    %37 = math.tanh %36 : vector<2x32xf32>
    %38 = arith.mulf %33, %37 : vector<2x32xf32>
    %c0_18 = arith.constant 0 : index
    %c15 = arith.constant 15 : index
    %c0_19 = arith.constant 0 : index
    %39 = vector.load %arg2[%c0_18, %c15, %c0_19] : memref<2x16x128xbf16, #tpu.memory_space<vmem>>, vector<2x1x128xbf16>
    %40 = vector.shape_cast %39 : vector<2x1x128xbf16> to vector<2x128xbf16>
    %41 = arith.extf %40 : vector<2x128xbf16> to vector<2x128xf32>
    %cst_20 = arith.constant dense<0.000000e+00> : vector<2x128xf32>
    %42 = tpu.matmul %7, %4, %cst_20 {dimension_numbers = #tpu.dot_dimension_numbers<[1], [0], [0], [1], [0, 0, 1, 1], [], []>} : vector<2x32xf32>, vector<32x128xf32>, vector<2x128xf32> -> vector<2x128xf32>
    %43 = arith.addf %41, %42 : vector<2x128xf32>
    %44 = vector.extract_strided_slice %43 {offsets = [0, 0], sizes = [2, 32], strides = [1, 1]} : vector<2x128xf32> to vector<2x32xf32>
    %45 = arith.negf %44 : vector<2x32xf32>
    %46 = math.exp %45 : vector<2x32xf32>
    %cst_21 = arith.constant 1.000000e+00 : f32
    %47 = vector.broadcast %cst_21 : f32 to vector<2x32xf32>
    %48 = arith.addf %47, %46 : vector<2x32xf32>
    %49 = arith.divf %47, %48 : vector<2x32xf32>
    %50 = vector.extract_strided_slice %43 {offsets = [0, 32], sizes = [2, 32], strides = [1, 1]} : vector<2x128xf32> to vector<2x32xf32>
    %51 = arith.negf %50 : vector<2x32xf32>
    %52 = math.exp %51 : vector<2x32xf32>
    %cst_22 = arith.constant 1.000000e+00 : f32
    %53 = vector.broadcast %cst_22 : f32 to vector<2x32xf32>
    %54 = arith.addf %53, %52 : vector<2x32xf32>
    %55 = arith.divf %53, %54 : vector<2x32xf32>
    %56 = vector.extract_strided_slice %43 {offsets = [0, 64], sizes = [2, 32], strides = [1, 1]} : vector<2x128xf32> to vector<2x32xf32>
    %57 = math.tanh %56 : vector<2x32xf32>
    %58 = vector.extract_strided_slice %43 {offsets = [0, 96], sizes = [2, 32], strides = [1, 1]} : vector<2x128xf32> to vector<2x32xf32>
    %59 = arith.negf %58 : vector<2x32xf32>
    %60 = math.exp %59 : vector<2x32xf32>
    %cst_23 = arith.constant 1.000000e+00 : f32
    %61 = vector.broadcast %cst_23 : f32 to vector<2x32xf32>
    %62 = arith.addf %61, %60 : vector<2x32xf32>
    %63 = arith.divf %61, %62 : vector<2x32xf32>
    %64 = arith.mulf %55, %8 : vector<2x32xf32>
    %65 = arith.mulf %49, %57 : vector<2x32xf32>
    %66 = arith.addf %64, %65 : vector<2x32xf32>
    %67 = math.tanh %66 : vector<2x32xf32>
    %68 = arith.mulf %63, %67 : vector<2x32xf32>
    %c0_24 = arith.constant 0 : index
    %c1 = arith.constant 1 : index
    %c0_25 = arith.constant 0 : index
    %69 = vector.load %arg1[%c0_24, %c1, %c0_25] : memref<2x16x128xbf16, #tpu.memory_space<vmem>>, vector<2x1x128xbf16>
    %70 = vector.shape_cast %69 : vector<2x1x128xbf16> to vector<2x128xbf16>
    %71 = arith.extf %70 : vector<2x128xbf16> to vector<2x128xf32>
    %cst_26 = arith.constant dense<0.000000e+00> : vector<2x128xf32>
    %72 = tpu.matmul %38, %3, %cst_26 {dimension_numbers = #tpu.dot_dimension_numbers<[1], [0], [0], [1], [0, 0, 1, 1], [], []>} : vector<2x32xf32>, vector<32x128xf32>, vector<2x128xf32> -> vector<2x128xf32>
    %73 = arith.addf %71, %72 : vector<2x128xf32>
    %74 = vector.extract_strided_slice %73 {offsets = [0, 0], sizes = [2, 32], strides = [1, 1]} : vector<2x128xf32> to vector<2x32xf32>
    %75 = arith.negf %74 : vector<2x32xf32>
    %76 = math.exp %75 : vector<2x32xf32>
    %cst_27 = arith.constant 1.000000e+00 : f32
    %77 = vector.broadcast %cst_27 : f32 to vector<2x32xf32>
    %78 = arith.addf %77, %76 : vector<2x32xf32>
    %79 = arith.divf %77, %78 : vector<2x32xf32>
    %80 = vector.extract_strided_slice %73 {offsets = [0, 32], sizes = [2, 32], strides = [1, 1]} : vector<2x128xf32> to vector<2x32xf32>
    %81 = arith.negf %80 : vector<2x32xf32>
    %82 = math.exp %81 : vector<2x32xf32>
    %cst_28 = arith.constant 1.000000e+00 : f32
    %83 = vector.broadcast %cst_28 : f32 to vector<2x32xf32>
    %84 = arith.addf %83, %82 : vector<2x32xf32>
    %85 = arith.divf %83, %84 : vector<2x32xf32>
    %86 = vector.extract_strided_slice %73 {offsets = [0, 64], sizes = [2, 32], strides = [1, 1]} : vector<2x128xf32> to vector<2x32xf32>
    %87 = math.tanh %86 : vector<2x32xf32>
    %88 = vector.extract_strided_slice %73 {offsets = [0, 96], sizes = [2, 32], strides = [1, 1]} : vector<2x128xf32> to vector<2x32xf32>
    %89 = arith.negf %88 : vector<2x32xf32>
    %90 = math.exp %89 : vector<2x32xf32>
    %cst_29 = arith.constant 1.000000e+00 : f32
    %91 = vector.broadcast %cst_29 : f32 to vector<2x32xf32>
    %92 = arith.addf %91, %90 : vector<2x32xf32>
    %93 = arith.divf %91, %92 : vector<2x32xf32>
    %94 = arith.mulf %85, %36 : vector<2x32xf32>
    %95 = arith.mulf %79, %87 : vector<2x32xf32>
    %96 = arith.addf %94, %95 : vector<2x32xf32>
    %97 = math.tanh %96 : vector<2x32xf32>
    %98 = arith.mulf %93, %97 : vector<2x32xf32>
    %c0_30 = arith.constant 0 : index
    %c14 = arith.constant 14 : index
    %c0_31 = arith.constant 0 : index
    %99 = vector.load %arg2[%c0_30, %c14, %c0_31] : memref<2x16x128xbf16, #tpu.memory_space<vmem>>, vector<2x1x128xbf16>
    %100 = vector.shape_cast %99 : vector<2x1x128xbf16> to vector<2x128xbf16>
    %101 = arith.extf %100 : vector<2x128xbf16> to vector<2x128xf32>
    %cst_32 = arith.constant dense<0.000000e+00> : vector<2x128xf32>
    %102 = tpu.matmul %68, %4, %cst_32 {dimension_numbers = #tpu.dot_dimension_numbers<[1], [0], [0], [1], [0, 0, 1, 1], [], []>} : vector<2x32xf32>, vector<32x128xf32>, vector<2x128xf32> -> vector<2x128xf32>
    %103 = arith.addf %101, %102 : vector<2x128xf32>
    %104 = vector.extract_strided_slice %103 {offsets = [0, 0], sizes = [2, 32], strides = [1, 1]} : vector<2x128xf32> to vector<2x32xf32>
    %105 = arith.negf %104 : vector<2x32xf32>
    %106 = math.exp %105 : vector<2x32xf32>
    %cst_33 = arith.constant 1.000000e+00 : f32
    %107 = vector.broadcast %cst_33 : f32 to vector<2x32xf32>
    %108 = arith.addf %107, %106 : vector<2x32xf32>
    %109 = arith.divf %107, %108 : vector<2x32xf32>
    %110 = vector.extract_strided_slice %103 {offsets = [0, 32], sizes = [2, 32], strides = [1, 1]} : vector<2x128xf32> to vector<2x32xf32>
    %111 = arith.negf %110 : vector<2x32xf32>
    %112 = math.exp %111 : vector<2x32xf32>
    %cst_34 = arith.constant 1.000000e+00 : f32
    %113 = vector.broadcast %cst_34 : f32 to vector<2x32xf32>
    %114 = arith.addf %113, %112 : vector<2x32xf32>
    %115 = arith.divf %113, %114 : vector<2x32xf32>
    %116 = vector.extract_strided_slice %103 {offsets = [0, 64], sizes = [2, 32], strides = [1, 1]} : vector<2x128xf32> to vector<2x32xf32>
    %117 = math.tanh %116 : vector<2x32xf32>
    %118 = vector.extract_strided_slice %103 {offsets = [0, 96], sizes = [2, 32], strides = [1, 1]} : vector<2x128xf32> to vector<2x32xf32>
    %119 = arith.negf %118 : vector<2x32xf32>
    %120 = math.exp %119 : vector<2x32xf32>
    %cst_35 = arith.constant 1.000000e+00 : f32
    %121 = vector.broadcast %cst_35 : f32 to vector<2x32xf32>
    %122 = arith.addf %121, %120 : vector<2x32xf32>
    %123 = arith.divf %121, %122 : vector<2x32xf32>
    %124 = arith.mulf %115, %66 : vector<2x32xf32>
    %125 = arith.mulf %109, %117 : vector<2x32xf32>
    %126 = arith.addf %124, %125 : vector<2x32xf32>
    %127 = math.tanh %126 : vector<2x32xf32>
    %128 = arith.mulf %123, %127 : vector<2x32xf32>
    %c0_36 = arith.constant 0 : index
    %c2 = arith.constant 2 : index
    %c0_37 = arith.constant 0 : index
    %129 = vector.load %arg1[%c0_36, %c2, %c0_37] : memref<2x16x128xbf16, #tpu.memory_space<vmem>>, vector<2x1x128xbf16>
    %130 = vector.shape_cast %129 : vector<2x1x128xbf16> to vector<2x128xbf16>
    %131 = arith.extf %130 : vector<2x128xbf16> to vector<2x128xf32>
    %cst_38 = arith.constant dense<0.000000e+00> : vector<2x128xf32>
    %132 = tpu.matmul %98, %3, %cst_38 {dimension_numbers = #tpu.dot_dimension_numbers<[1], [0], [0], [1], [0, 0, 1, 1], [], []>} : vector<2x32xf32>, vector<32x128xf32>, vector<2x128xf32> -> vector<2x128xf32>
    %133 = arith.addf %131, %132 : vector<2x128xf32>
    %134 = vector.extract_strided_slice %133 {offsets = [0, 0], sizes = [2, 32], strides = [1, 1]} : vector<2x128xf32> to vector<2x32xf32>
    %135 = arith.negf %134 : vector<2x32xf32>
    %136 = math.exp %135 : vector<2x32xf32>
    %cst_39 = arith.constant 1.000000e+00 : f32
    %137 = vector.broadcast %cst_39 : f32 to vector<2x32xf32>
    %138 = arith.addf %137, %136 : vector<2x32xf32>
    %139 = arith.divf %137, %138 : vector<2x32xf32>
    %140 = vector.extract_strided_slice %133 {offsets = [0, 32], sizes = [2, 32], strides = [1, 1]} : vector<2x128xf32> to vector<2x32xf32>
    %141 = arith.negf %140 : vector<2x32xf32>
    %142 = math.exp %141 : vector<2x32xf32>
    %cst_40 = arith.constant 1.000000e+00 : f32
    %143 = vector.broadcast %cst_40 : f32 to vector<2x32xf32>
    %144 = arith.addf %143, %142 : vector<2x32xf32>
    %145 = arith.divf %143, %144 : vector<2x32xf32>
    %146 = vector.extract_strided_slice %133 {offsets = [0, 64], sizes = [2, 32], strides = [1, 1]} : vector<2x128xf32> to vector<2x32xf32>
    %147 = math.tanh %146 : vector<2x32xf32>
    %148 = vector.extract_strided_slice %133 {offsets = [0, 96], sizes = [2, 32], strides = [1, 1]} : vector<2x128xf32> to vector<2x32xf32>
    %149 = arith.negf %148 : vector<2x32xf32>
    %150 = math.exp %149 : vector<2x32xf32>
    %cst_41 = arith.constant 1.000000e+00 : f32
    %151 = vector.broadcast %cst_41 : f32 to vector<2x32xf32>
    %152 = arith.addf %151, %150 : vector<2x32xf32>
    %153 = arith.divf %151, %152 : vector<2x32xf32>
    %154 = arith.mulf %145, %96 : vector<2x32xf32>
    %155 = arith.mulf %139, %147 : vector<2x32xf32>
    %156 = arith.addf %154, %155 : vector<2x32xf32>
    %157 = math.tanh %156 : vector<2x32xf32>
    %158 = arith.mulf %153, %157 : vector<2x32xf32>
    %c0_42 = arith.constant 0 : index
    %c13 = arith.constant 13 : index
    %c0_43 = arith.constant 0 : index
    %159 = vector.load %arg2[%c0_42, %c13, %c0_43] : memref<2x16x128xbf16, #tpu.memory_space<vmem>>, vector<2x1x128xbf16>
    %160 = vector.shape_cast %159 : vector<2x1x128xbf16> to vector<2x128xbf16>
    %161 = arith.extf %160 : vector<2x128xbf16> to vector<2x128xf32>
    %cst_44 = arith.constant dense<0.000000e+00> : vector<2x128xf32>
    %162 = tpu.matmul %128, %4, %cst_44 {dimension_numbers = #tpu.dot_dimension_numbers<[1], [0], [0], [1], [0, 0, 1, 1], [], []>} : vector<2x32xf32>, vector<32x128xf32>, vector<2x128xf32> -> vector<2x128xf32>
    %163 = arith.addf %161, %162 : vector<2x128xf32>
    %164 = vector.extract_strided_slice %163 {offsets = [0, 0], sizes = [2, 32], strides = [1, 1]} : vector<2x128xf32> to vector<2x32xf32>
    %165 = arith.negf %164 : vector<2x32xf32>
    %166 = math.exp %165 : vector<2x32xf32>
    %cst_45 = arith.constant 1.000000e+00 : f32
    %167 = vector.broadcast %cst_45 : f32 to vector<2x32xf32>
    %168 = arith.addf %167, %166 : vector<2x32xf32>
    %169 = arith.divf %167, %168 : vector<2x32xf32>
    %170 = vector.extract_strided_slice %163 {offsets = [0, 32], sizes = [2, 32], strides = [1, 1]} : vector<2x128xf32> to vector<2x32xf32>
    %171 = arith.negf %170 : vector<2x32xf32>
    %172 = math.exp %171 : vector<2x32xf32>
    %cst_46 = arith.constant 1.000000e+00 : f32
    %173 = vector.broadcast %cst_46 : f32 to vector<2x32xf32>
    %174 = arith.addf %173, %172 : vector<2x32xf32>
    %175 = arith.divf %173, %174 : vector<2x32xf32>
    %176 = vector.extract_strided_slice %163 {offsets = [0, 64], sizes = [2, 32], strides = [1, 1]} : vector<2x128xf32> to vector<2x32xf32>
    %177 = math.tanh %176 : vector<2x32xf32>
    %178 = vector.extract_strided_slice %163 {offsets = [0, 96], sizes = [2, 32], strides = [1, 1]} : vector<2x128xf32> to vector<2x32xf32>
    %179 = arith.negf %178 : vector<2x32xf32>
    %180 = math.exp %179 : vector<2x32xf32>
    %cst_47 = arith.constant 1.000000e+00 : f32
    %181 = vector.broadcast %cst_47 : f32 to vector<2x32xf32>
    %182 = arith.addf %181, %180 : vector<2x32xf32>
    %183 = arith.divf %181, %182 : vector<2x32xf32>
    %184 = arith.mulf %175, %126 : vector<2x32xf32>
    %185 = arith.mulf %169, %177 : vector<2x32xf32>
    %186 = arith.addf %184, %185 : vector<2x32xf32>
    %187 = math.tanh %186 : vector<2x32xf32>
    %188 = arith.mulf %183, %187 : vector<2x32xf32>
    %c0_48 = arith.constant 0 : index
    %c3 = arith.constant 3 : index
    %c0_49 = arith.constant 0 : index
    %189 = vector.load %arg1[%c0_48, %c3, %c0_49] : memref<2x16x128xbf16, #tpu.memory_space<vmem>>, vector<2x1x128xbf16>
    %190 = vector.shape_cast %189 : vector<2x1x128xbf16> to vector<2x128xbf16>
    %191 = arith.extf %190 : vector<2x128xbf16> to vector<2x128xf32>
    %cst_50 = arith.constant dense<0.000000e+00> : vector<2x128xf32>
    %192 = tpu.matmul %158, %3, %cst_50 {dimension_numbers = #tpu.dot_dimension_numbers<[1], [0], [0], [1], [0, 0, 1, 1], [], []>} : vector<2x32xf32>, vector<32x128xf32>, vector<2x128xf32> -> vector<2x128xf32>
    %193 = arith.addf %191, %192 : vector<2x128xf32>
    %194 = vector.extract_strided_slice %193 {offsets = [0, 0], sizes = [2, 32], strides = [1, 1]} : vector<2x128xf32> to vector<2x32xf32>
    %195 = arith.negf %194 : vector<2x32xf32>
    %196 = math.exp %195 : vector<2x32xf32>
    %cst_51 = arith.constant 1.000000e+00 : f32
    %197 = vector.broadcast %cst_51 : f32 to vector<2x32xf32>
    %198 = arith.addf %197, %196 : vector<2x32xf32>
    %199 = arith.divf %197, %198 : vector<2x32xf32>
    %200 = vector.extract_strided_slice %193 {offsets = [0, 32], sizes = [2, 32], strides = [1, 1]} : vector<2x128xf32> to vector<2x32xf32>
    %201 = arith.negf %200 : vector<2x32xf32>
    %202 = math.exp %201 : vector<2x32xf32>
    %cst_52 = arith.constant 1.000000e+00 : f32
    %203 = vector.broadcast %cst_52 : f32 to vector<2x32xf32>
    %204 = arith.addf %203, %202 : vector<2x32xf32>
    %205 = arith.divf %203, %204 : vector<2x32xf32>
    %206 = vector.extract_strided_slice %193 {offsets = [0, 64], sizes = [2, 32], strides = [1, 1]} : vector<2x128xf32> to vector<2x32xf32>
    %207 = math.tanh %206 : vector<2x32xf32>
    %208 = vector.extract_strided_slice %193 {offsets = [0, 96], sizes = [2, 32], strides = [1, 1]} : vector<2x128xf32> to vector<2x32xf32>
    %209 = arith.negf %208 : vector<2x32xf32>
    %210 = math.exp %209 : vector<2x32xf32>
    %cst_53 = arith.constant 1.000000e+00 : f32
    %211 = vector.broadcast %cst_53 : f32 to vector<2x32xf32>
    %212 = arith.addf %211, %210 : vector<2x32xf32>
    %213 = arith.divf %211, %212 : vector<2x32xf32>
    %214 = arith.mulf %205, %156 : vector<2x32xf32>
    %215 = arith.mulf %199, %207 : vector<2x32xf32>
    %216 = arith.addf %214, %215 : vector<2x32xf32>
    %217 = math.tanh %216 : vector<2x32xf32>
    %218 = arith.mulf %213, %217 : vector<2x32xf32>
    %c0_54 = arith.constant 0 : index
    %c12 = arith.constant 12 : index
    %c0_55 = arith.constant 0 : index
    %219 = vector.load %arg2[%c0_54, %c12, %c0_55] : memref<2x16x128xbf16, #tpu.memory_space<vmem>>, vector<2x1x128xbf16>
    %220 = vector.shape_cast %219 : vector<2x1x128xbf16> to vector<2x128xbf16>
    %221 = arith.extf %220 : vector<2x128xbf16> to vector<2x128xf32>
    %cst_56 = arith.constant dense<0.000000e+00> : vector<2x128xf32>
    %222 = tpu.matmul %188, %4, %cst_56 {dimension_numbers = #tpu.dot_dimension_numbers<[1], [0], [0], [1], [0, 0, 1, 1], [], []>} : vector<2x32xf32>, vector<32x128xf32>, vector<2x128xf32> -> vector<2x128xf32>
    %223 = arith.addf %221, %222 : vector<2x128xf32>
    %224 = vector.extract_strided_slice %223 {offsets = [0, 0], sizes = [2, 32], strides = [1, 1]} : vector<2x128xf32> to vector<2x32xf32>
    %225 = arith.negf %224 : vector<2x32xf32>
    %226 = math.exp %225 : vector<2x32xf32>
    %cst_57 = arith.constant 1.000000e+00 : f32
    %227 = vector.broadcast %cst_57 : f32 to vector<2x32xf32>
    %228 = arith.addf %227, %226 : vector<2x32xf32>
    %229 = arith.divf %227, %228 : vector<2x32xf32>
    %230 = vector.extract_strided_slice %223 {offsets = [0, 32], sizes = [2, 32], strides = [1, 1]} : vector<2x128xf32> to vector<2x32xf32>
    %231 = arith.negf %230 : vector<2x32xf32>
    %232 = math.exp %231 : vector<2x32xf32>
    %cst_58 = arith.constant 1.000000e+00 : f32
    %233 = vector.broadcast %cst_58 : f32 to vector<2x32xf32>
    %234 = arith.addf %233, %232 : vector<2x32xf32>
    %235 = arith.divf %233, %234 : vector<2x32xf32>
    %236 = vector.extract_strided_slice %223 {offsets = [0, 64], sizes = [2, 32], strides = [1, 1]} : vector<2x128xf32> to vector<2x32xf32>
    %237 = math.tanh %236 : vector<2x32xf32>
    %238 = vector.extract_strided_slice %223 {offsets = [0, 96], sizes = [2, 32], strides = [1, 1]} : vector<2x128xf32> to vector<2x32xf32>
    %239 = arith.negf %238 : vector<2x32xf32>
    %240 = math.exp %239 : vector<2x32xf32>
    %cst_59 = arith.constant 1.000000e+00 : f32
    %241 = vector.broadcast %cst_59 : f32 to vector<2x32xf32>
    %242 = arith.addf %241, %240 : vector<2x32xf32>
    %243 = arith.divf %241, %242 : vector<2x32xf32>
    %244 = arith.mulf %235, %186 : vector<2x32xf32>
    %245 = arith.mulf %229, %237 : vector<2x32xf32>
    %246 = arith.addf %244, %245 : vector<2x32xf32>
    %247 = math.tanh %246 : vector<2x32xf32>
    %248 = arith.mulf %243, %247 : vector<2x32xf32>
    %c0_60 = arith.constant 0 : index
    %c4 = arith.constant 4 : index
    %c0_61 = arith.constant 0 : index
    %249 = vector.load %arg1[%c0_60, %c4, %c0_61] : memref<2x16x128xbf16, #tpu.memory_space<vmem>>, vector<2x1x128xbf16>
    %250 = vector.shape_cast %249 : vector<2x1x128xbf16> to vector<2x128xbf16>
    %251 = arith.extf %250 : vector<2x128xbf16> to vector<2x128xf32>
    %cst_62 = arith.constant dense<0.000000e+00> : vector<2x128xf32>
    %252 = tpu.matmul %218, %3, %cst_62 {dimension_numbers = #tpu.dot_dimension_numbers<[1], [0], [0], [1], [0, 0, 1, 1], [], []>} : vector<2x32xf32>, vector<32x128xf32>, vector<2x128xf32> -> vector<2x128xf32>
    %253 = arith.addf %251, %252 : vector<2x128xf32>
    %254 = vector.extract_strided_slice %253 {offsets = [0, 0], sizes = [2, 32], strides = [1, 1]} : vector<2x128xf32> to vector<2x32xf32>
    %255 = arith.negf %254 : vector<2x32xf32>
    %256 = math.exp %255 : vector<2x32xf32>
    %cst_63 = arith.constant 1.000000e+00 : f32
    %257 = vector.broadcast %cst_63 : f32 to vector<2x32xf32>
    %258 = arith.addf %257, %256 : vector<2x32xf32>
    %259 = arith.divf %257, %258 : vector<2x32xf32>
    %260 = vector.extract_strided_slice %253 {offsets = [0, 32], sizes = [2, 32], strides = [1, 1]} : vector<2x128xf32> to vector<2x32xf32>
    %261 = arith.negf %260 : vector<2x32xf32>
    %262 = math.exp %261 : vector<2x32xf32>
    %cst_64 = arith.constant 1.000000e+00 : f32
    %263 = vector.broadcast %cst_64 : f32 to vector<2x32xf32>
    %264 = arith.addf %263, %262 : vector<2x32xf32>
    %265 = arith.divf %263, %264 : vector<2x32xf32>
    %266 = vector.extract_strided_slice %253 {offsets = [0, 64], sizes = [2, 32], strides = [1, 1]} : vector<2x128xf32> to vector<2x32xf32>
    %267 = math.tanh %266 : vector<2x32xf32>
    %268 = vector.extract_strided_slice %253 {offsets = [0, 96], sizes = [2, 32], strides = [1, 1]} : vector<2x128xf32> to vector<2x32xf32>
    %269 = arith.negf %268 : vector<2x32xf32>
    %270 = math.exp %269 : vector<2x32xf32>
    %cst_65 = arith.constant 1.000000e+00 : f32
    %271 = vector.broadcast %cst_65 : f32 to vector<2x32xf32>
    %272 = arith.addf %271, %270 : vector<2x32xf32>
    %273 = arith.divf %271, %272 : vector<2x32xf32>
    %274 = arith.mulf %265, %216 : vector<2x32xf32>
    %275 = arith.mulf %259, %267 : vector<2x32xf32>
    %276 = arith.addf %274, %275 : vector<2x32xf32>
    %277 = math.tanh %276 : vector<2x32xf32>
    %278 = arith.mulf %273, %277 : vector<2x32xf32>
    %c0_66 = arith.constant 0 : index
    %c11 = arith.constant 11 : index
    %c0_67 = arith.constant 0 : index
    %279 = vector.load %arg2[%c0_66, %c11, %c0_67] : memref<2x16x128xbf16, #tpu.memory_space<vmem>>, vector<2x1x128xbf16>
    %280 = vector.shape_cast %279 : vector<2x1x128xbf16> to vector<2x128xbf16>
    %281 = arith.extf %280 : vector<2x128xbf16> to vector<2x128xf32>
    %cst_68 = arith.constant dense<0.000000e+00> : vector<2x128xf32>
    %282 = tpu.matmul %248, %4, %cst_68 {dimension_numbers = #tpu.dot_dimension_numbers<[1], [0], [0], [1], [0, 0, 1, 1], [], []>} : vector<2x32xf32>, vector<32x128xf32>, vector<2x128xf32> -> vector<2x128xf32>
    %283 = arith.addf %281, %282 : vector<2x128xf32>
    %284 = vector.extract_strided_slice %283 {offsets = [0, 0], sizes = [2, 32], strides = [1, 1]} : vector<2x128xf32> to vector<2x32xf32>
    %285 = arith.negf %284 : vector<2x32xf32>
    %286 = math.exp %285 : vector<2x32xf32>
    %cst_69 = arith.constant 1.000000e+00 : f32
    %287 = vector.broadcast %cst_69 : f32 to vector<2x32xf32>
    %288 = arith.addf %287, %286 : vector<2x32xf32>
    %289 = arith.divf %287, %288 : vector<2x32xf32>
    %290 = vector.extract_strided_slice %283 {offsets = [0, 32], sizes = [2, 32], strides = [1, 1]} : vector<2x128xf32> to vector<2x32xf32>
    %291 = arith.negf %290 : vector<2x32xf32>
    %292 = math.exp %291 : vector<2x32xf32>
    %cst_70 = arith.constant 1.000000e+00 : f32
    %293 = vector.broadcast %cst_70 : f32 to vector<2x32xf32>
    %294 = arith.addf %293, %292 : vector<2x32xf32>
    %295 = arith.divf %293, %294 : vector<2x32xf32>
    %296 = vector.extract_strided_slice %283 {offsets = [0, 64], sizes = [2, 32], strides = [1, 1]} : vector<2x128xf32> to vector<2x32xf32>
    %297 = math.tanh %296 : vector<2x32xf32>
    %298 = vector.extract_strided_slice %283 {offsets = [0, 96], sizes = [2, 32], strides = [1, 1]} : vector<2x128xf32> to vector<2x32xf32>
    %299 = arith.negf %298 : vector<2x32xf32>
    %300 = math.exp %299 : vector<2x32xf32>
    %cst_71 = arith.constant 1.000000e+00 : f32
    %301 = vector.broadcast %cst_71 : f32 to vector<2x32xf32>
    %302 = arith.addf %301, %300 : vector<2x32xf32>
    %303 = arith.divf %301, %302 : vector<2x32xf32>
    %304 = arith.mulf %295, %246 : vector<2x32xf32>
    %305 = arith.mulf %289, %297 : vector<2x32xf32>
    %306 = arith.addf %304, %305 : vector<2x32xf32>
    %307 = math.tanh %306 : vector<2x32xf32>
    %308 = arith.mulf %303, %307 : vector<2x32xf32>
    %c0_72 = arith.constant 0 : index
    %c5 = arith.constant 5 : index
    %c0_73 = arith.constant 0 : index
    %309 = vector.load %arg1[%c0_72, %c5, %c0_73] : memref<2x16x128xbf16, #tpu.memory_space<vmem>>, vector<2x1x128xbf16>
    %310 = vector.shape_cast %309 : vector<2x1x128xbf16> to vector<2x128xbf16>
    %311 = arith.extf %310 : vector<2x128xbf16> to vector<2x128xf32>
    %cst_74 = arith.constant dense<0.000000e+00> : vector<2x128xf32>
    %312 = tpu.matmul %278, %3, %cst_74 {dimension_numbers = #tpu.dot_dimension_numbers<[1], [0], [0], [1], [0, 0, 1, 1], [], []>} : vector<2x32xf32>, vector<32x128xf32>, vector<2x128xf32> -> vector<2x128xf32>
    %313 = arith.addf %311, %312 : vector<2x128xf32>
    %314 = vector.extract_strided_slice %313 {offsets = [0, 0], sizes = [2, 32], strides = [1, 1]} : vector<2x128xf32> to vector<2x32xf32>
    %315 = arith.negf %314 : vector<2x32xf32>
    %316 = math.exp %315 : vector<2x32xf32>
    %cst_75 = arith.constant 1.000000e+00 : f32
    %317 = vector.broadcast %cst_75 : f32 to vector<2x32xf32>
    %318 = arith.addf %317, %316 : vector<2x32xf32>
    %319 = arith.divf %317, %318 : vector<2x32xf32>
    %320 = vector.extract_strided_slice %313 {offsets = [0, 32], sizes = [2, 32], strides = [1, 1]} : vector<2x128xf32> to vector<2x32xf32>
    %321 = arith.negf %320 : vector<2x32xf32>
    %322 = math.exp %321 : vector<2x32xf32>
    %cst_76 = arith.constant 1.000000e+00 : f32
    %323 = vector.broadcast %cst_76 : f32 to vector<2x32xf32>
    %324 = arith.addf %323, %322 : vector<2x32xf32>
    %325 = arith.divf %323, %324 : vector<2x32xf32>
    %326 = vector.extract_strided_slice %313 {offsets = [0, 64], sizes = [2, 32], strides = [1, 1]} : vector<2x128xf32> to vector<2x32xf32>
    %327 = math.tanh %326 : vector<2x32xf32>
    %328 = vector.extract_strided_slice %313 {offsets = [0, 96], sizes = [2, 32], strides = [1, 1]} : vector<2x128xf32> to vector<2x32xf32>
    %329 = arith.negf %328 : vector<2x32xf32>
    %330 = math.exp %329 : vector<2x32xf32>
    %cst_77 = arith.constant 1.000000e+00 : f32
    %331 = vector.broadcast %cst_77 : f32 to vector<2x32xf32>
    %332 = arith.addf %331, %330 : vector<2x32xf32>
    %333 = arith.divf %331, %332 : vector<2x32xf32>
    %334 = arith.mulf %325, %276 : vector<2x32xf32>
    %335 = arith.mulf %319, %327 : vector<2x32xf32>
    %336 = arith.addf %334, %335 : vector<2x32xf32>
    %337 = math.tanh %336 : vector<2x32xf32>
    %338 = arith.mulf %333, %337 : vector<2x32xf32>
    %c0_78 = arith.constant 0 : index
    %c10 = arith.constant 10 : index
    %c0_79 = arith.constant 0 : index
    %339 = vector.load %arg2[%c0_78, %c10, %c0_79] : memref<2x16x128xbf16, #tpu.memory_space<vmem>>, vector<2x1x128xbf16>
    %340 = vector.shape_cast %339 : vector<2x1x128xbf16> to vector<2x128xbf16>
    %341 = arith.extf %340 : vector<2x128xbf16> to vector<2x128xf32>
    %cst_80 = arith.constant dense<0.000000e+00> : vector<2x128xf32>
    %342 = tpu.matmul %308, %4, %cst_80 {dimension_numbers = #tpu.dot_dimension_numbers<[1], [0], [0], [1], [0, 0, 1, 1], [], []>} : vector<2x32xf32>, vector<32x128xf32>, vector<2x128xf32> -> vector<2x128xf32>
    %343 = arith.addf %341, %342 : vector<2x128xf32>
    %344 = vector.extract_strided_slice %343 {offsets = [0, 0], sizes = [2, 32], strides = [1, 1]} : vector<2x128xf32> to vector<2x32xf32>
    %345 = arith.negf %344 : vector<2x32xf32>
    %346 = math.exp %345 : vector<2x32xf32>
    %cst_81 = arith.constant 1.000000e+00 : f32
    %347 = vector.broadcast %cst_81 : f32 to vector<2x32xf32>
    %348 = arith.addf %347, %346 : vector<2x32xf32>
    %349 = arith.divf %347, %348 : vector<2x32xf32>
    %350 = vector.extract_strided_slice %343 {offsets = [0, 32], sizes = [2, 32], strides = [1, 1]} : vector<2x128xf32> to vector<2x32xf32>
    %351 = arith.negf %350 : vector<2x32xf32>
    %352 = math.exp %351 : vector<2x32xf32>
    %cst_82 = arith.constant 1.000000e+00 : f32
    %353 = vector.broadcast %cst_82 : f32 to vector<2x32xf32>
    %354 = arith.addf %353, %352 : vector<2x32xf32>
    %355 = arith.divf %353, %354 : vector<2x32xf32>
    %356 = vector.extract_strided_slice %343 {offsets = [0, 64], sizes = [2, 32], strides = [1, 1]} : vector<2x128xf32> to vector<2x32xf32>
    %357 = math.tanh %356 : vector<2x32xf32>
    %358 = vector.extract_strided_slice %343 {offsets = [0, 96], sizes = [2, 32], strides = [1, 1]} : vector<2x128xf32> to vector<2x32xf32>
    %359 = arith.negf %358 : vector<2x32xf32>
    %360 = math.exp %359 : vector<2x32xf32>
    %cst_83 = arith.constant 1.000000e+00 : f32
    %361 = vector.broadcast %cst_83 : f32 to vector<2x32xf32>
    %362 = arith.addf %361, %360 : vector<2x32xf32>
    %363 = arith.divf %361, %362 : vector<2x32xf32>
    %364 = arith.mulf %355, %306 : vector<2x32xf32>
    %365 = arith.mulf %349, %357 : vector<2x32xf32>
    %366 = arith.addf %364, %365 : vector<2x32xf32>
    %367 = math.tanh %366 : vector<2x32xf32>
    %368 = arith.mulf %363, %367 : vector<2x32xf32>
    %c0_84 = arith.constant 0 : index
    %c6 = arith.constant 6 : index
    %c0_85 = arith.constant 0 : index
    %369 = vector.load %arg1[%c0_84, %c6, %c0_85] : memref<2x16x128xbf16, #tpu.memory_space<vmem>>, vector<2x1x128xbf16>
    %370 = vector.shape_cast %369 : vector<2x1x128xbf16> to vector<2x128xbf16>
    %371 = arith.extf %370 : vector<2x128xbf16> to vector<2x128xf32>
    %cst_86 = arith.constant dense<0.000000e+00> : vector<2x128xf32>
    %372 = tpu.matmul %338, %3, %cst_86 {dimension_numbers = #tpu.dot_dimension_numbers<[1], [0], [0], [1], [0, 0, 1, 1], [], []>} : vector<2x32xf32>, vector<32x128xf32>, vector<2x128xf32> -> vector<2x128xf32>
    %373 = arith.addf %371, %372 : vector<2x128xf32>
    %374 = vector.extract_strided_slice %373 {offsets = [0, 0], sizes = [2, 32], strides = [1, 1]} : vector<2x128xf32> to vector<2x32xf32>
    %375 = arith.negf %374 : vector<2x32xf32>
    %376 = math.exp %375 : vector<2x32xf32>
    %cst_87 = arith.constant 1.000000e+00 : f32
    %377 = vector.broadcast %cst_87 : f32 to vector<2x32xf32>
    %378 = arith.addf %377, %376 : vector<2x32xf32>
    %379 = arith.divf %377, %378 : vector<2x32xf32>
    %380 = vector.extract_strided_slice %373 {offsets = [0, 32], sizes = [2, 32], strides = [1, 1]} : vector<2x128xf32> to vector<2x32xf32>
    %381 = arith.negf %380 : vector<2x32xf32>
    %382 = math.exp %381 : vector<2x32xf32>
    %cst_88 = arith.constant 1.000000e+00 : f32
    %383 = vector.broadcast %cst_88 : f32 to vector<2x32xf32>
    %384 = arith.addf %383, %382 : vector<2x32xf32>
    %385 = arith.divf %383, %384 : vector<2x32xf32>
    %386 = vector.extract_strided_slice %373 {offsets = [0, 64], sizes = [2, 32], strides = [1, 1]} : vector<2x128xf32> to vector<2x32xf32>
    %387 = math.tanh %386 : vector<2x32xf32>
    %388 = vector.extract_strided_slice %373 {offsets = [0, 96], sizes = [2, 32], strides = [1, 1]} : vector<2x128xf32> to vector<2x32xf32>
    %389 = arith.negf %388 : vector<2x32xf32>
    %390 = math.exp %389 : vector<2x32xf32>
    %cst_89 = arith.constant 1.000000e+00 : f32
    %391 = vector.broadcast %cst_89 : f32 to vector<2x32xf32>
    %392 = arith.addf %391, %390 : vector<2x32xf32>
    %393 = arith.divf %391, %392 : vector<2x32xf32>
    %394 = arith.mulf %385, %336 : vector<2x32xf32>
    %395 = arith.mulf %379, %387 : vector<2x32xf32>
    %396 = arith.addf %394, %395 : vector<2x32xf32>
    %397 = math.tanh %396 : vector<2x32xf32>
    %398 = arith.mulf %393, %397 : vector<2x32xf32>
    %c0_90 = arith.constant 0 : index
    %c9 = arith.constant 9 : index
    %c0_91 = arith.constant 0 : index
    %399 = vector.load %arg2[%c0_90, %c9, %c0_91] : memref<2x16x128xbf16, #tpu.memory_space<vmem>>, vector<2x1x128xbf16>
    %400 = vector.shape_cast %399 : vector<2x1x128xbf16> to vector<2x128xbf16>
    %401 = arith.extf %400 : vector<2x128xbf16> to vector<2x128xf32>
    %cst_92 = arith.constant dense<0.000000e+00> : vector<2x128xf32>
    %402 = tpu.matmul %368, %4, %cst_92 {dimension_numbers = #tpu.dot_dimension_numbers<[1], [0], [0], [1], [0, 0, 1, 1], [], []>} : vector<2x32xf32>, vector<32x128xf32>, vector<2x128xf32> -> vector<2x128xf32>
    %403 = arith.addf %401, %402 : vector<2x128xf32>
    %404 = vector.extract_strided_slice %403 {offsets = [0, 0], sizes = [2, 32], strides = [1, 1]} : vector<2x128xf32> to vector<2x32xf32>
    %405 = arith.negf %404 : vector<2x32xf32>
    %406 = math.exp %405 : vector<2x32xf32>
    %cst_93 = arith.constant 1.000000e+00 : f32
    %407 = vector.broadcast %cst_93 : f32 to vector<2x32xf32>
    %408 = arith.addf %407, %406 : vector<2x32xf32>
    %409 = arith.divf %407, %408 : vector<2x32xf32>
    %410 = vector.extract_strided_slice %403 {offsets = [0, 32], sizes = [2, 32], strides = [1, 1]} : vector<2x128xf32> to vector<2x32xf32>
    %411 = arith.negf %410 : vector<2x32xf32>
    %412 = math.exp %411 : vector<2x32xf32>
    %cst_94 = arith.constant 1.000000e+00 : f32
    %413 = vector.broadcast %cst_94 : f32 to vector<2x32xf32>
    %414 = arith.addf %413, %412 : vector<2x32xf32>
    %415 = arith.divf %413, %414 : vector<2x32xf32>
    %416 = vector.extract_strided_slice %403 {offsets = [0, 64], sizes = [2, 32], strides = [1, 1]} : vector<2x128xf32> to vector<2x32xf32>
    %417 = math.tanh %416 : vector<2x32xf32>
    %418 = vector.extract_strided_slice %403 {offsets = [0, 96], sizes = [2, 32], strides = [1, 1]} : vector<2x128xf32> to vector<2x32xf32>
    %419 = arith.negf %418 : vector<2x32xf32>
    %420 = math.exp %419 : vector<2x32xf32>
    %cst_95 = arith.constant 1.000000e+00 : f32
    %421 = vector.broadcast %cst_95 : f32 to vector<2x32xf32>
    %422 = arith.addf %421, %420 : vector<2x32xf32>
    %423 = arith.divf %421, %422 : vector<2x32xf32>
    %424 = arith.mulf %415, %366 : vector<2x32xf32>
    %425 = arith.mulf %409, %417 : vector<2x32xf32>
    %426 = arith.addf %424, %425 : vector<2x32xf32>
    %427 = math.tanh %426 : vector<2x32xf32>
    %428 = arith.mulf %423, %427 : vector<2x32xf32>
    %c0_96 = arith.constant 0 : index
    %c7 = arith.constant 7 : index
    %c0_97 = arith.constant 0 : index
    %429 = vector.load %arg1[%c0_96, %c7, %c0_97] : memref<2x16x128xbf16, #tpu.memory_space<vmem>>, vector<2x1x128xbf16>
    %430 = vector.shape_cast %429 : vector<2x1x128xbf16> to vector<2x128xbf16>
    %431 = arith.extf %430 : vector<2x128xbf16> to vector<2x128xf32>
    %cst_98 = arith.constant dense<0.000000e+00> : vector<2x128xf32>
    %432 = tpu.matmul %398, %3, %cst_98 {dimension_numbers = #tpu.dot_dimension_numbers<[1], [0], [0], [1], [0, 0, 1, 1], [], []>} : vector<2x32xf32>, vector<32x128xf32>, vector<2x128xf32> -> vector<2x128xf32>
    %433 = arith.addf %431, %432 : vector<2x128xf32>
    %434 = vector.extract_strided_slice %433 {offsets = [0, 0], sizes = [2, 32], strides = [1, 1]} : vector<2x128xf32> to vector<2x32xf32>
    %435 = arith.negf %434 : vector<2x32xf32>
    %436 = math.exp %435 : vector<2x32xf32>
    %cst_99 = arith.constant 1.000000e+00 : f32
    %437 = vector.broadcast %cst_99 : f32 to vector<2x32xf32>
    %438 = arith.addf %437, %436 : vector<2x32xf32>
    %439 = arith.divf %437, %438 : vector<2x32xf32>
    %440 = vector.extract_strided_slice %433 {offsets = [0, 32], sizes = [2, 32], strides = [1, 1]} : vector<2x128xf32> to vector<2x32xf32>
    %441 = arith.negf %440 : vector<2x32xf32>
    %442 = math.exp %441 : vector<2x32xf32>
    %cst_100 = arith.constant 1.000000e+00 : f32
    %443 = vector.broadcast %cst_100 : f32 to vector<2x32xf32>
    %444 = arith.addf %443, %442 : vector<2x32xf32>
    %445 = arith.divf %443, %444 : vector<2x32xf32>
    %446 = vector.extract_strided_slice %433 {offsets = [0, 64], sizes = [2, 32], strides = [1, 1]} : vector<2x128xf32> to vector<2x32xf32>
    %447 = math.tanh %446 : vector<2x32xf32>
    %448 = vector.extract_strided_slice %433 {offsets = [0, 96], sizes = [2, 32], strides = [1, 1]} : vector<2x128xf32> to vector<2x32xf32>
    %449 = arith.negf %448 : vector<2x32xf32>
    %450 = math.exp %449 : vector<2x32xf32>
    %cst_101 = arith.constant 1.000000e+00 : f32
    %451 = vector.broadcast %cst_101 : f32 to vector<2x32xf32>
    %452 = arith.addf %451, %450 : vector<2x32xf32>
    %453 = arith.divf %451, %452 : vector<2x32xf32>
    %454 = arith.mulf %445, %396 : vector<2x32xf32>
    %455 = arith.mulf %439, %447 : vector<2x32xf32>
    %456 = arith.addf %454, %455 : vector<2x32xf32>
    %457 = math.tanh %456 : vector<2x32xf32>
    %458 = arith.mulf %453, %457 : vector<2x32xf32>
    %c0_102 = arith.constant 0 : index
    %c8 = arith.constant 8 : index
    %c0_103 = arith.constant 0 : index
    %459 = vector.load %arg2[%c0_102, %c8, %c0_103] : memref<2x16x128xbf16, #tpu.memory_space<vmem>>, vector<2x1x128xbf16>
    %460 = vector.shape_cast %459 : vector<2x1x128xbf16> to vector<2x128xbf16>
    %461 = arith.extf %460 : vector<2x128xbf16> to vector<2x128xf32>
    %cst_104 = arith.constant dense<0.000000e+00> : vector<2x128xf32>
    %462 = tpu.matmul %428, %4, %cst_104 {dimension_numbers = #tpu.dot_dimension_numbers<[1], [0], [0], [1], [0, 0, 1, 1], [], []>} : vector<2x32xf32>, vector<32x128xf32>, vector<2x128xf32> -> vector<2x128xf32>
    %463 = arith.addf %461, %462 : vector<2x128xf32>
    %464 = vector.extract_strided_slice %463 {offsets = [0, 0], sizes = [2, 32], strides = [1, 1]} : vector<2x128xf32> to vector<2x32xf32>
    %465 = arith.negf %464 : vector<2x32xf32>
    %466 = math.exp %465 : vector<2x32xf32>
    %cst_105 = arith.constant 1.000000e+00 : f32
    %467 = vector.broadcast %cst_105 : f32 to vector<2x32xf32>
    %468 = arith.addf %467, %466 : vector<2x32xf32>
    %469 = arith.divf %467, %468 : vector<2x32xf32>
    %470 = vector.extract_strided_slice %463 {offsets = [0, 32], sizes = [2, 32], strides = [1, 1]} : vector<2x128xf32> to vector<2x32xf32>
    %471 = arith.negf %470 : vector<2x32xf32>
    %472 = math.exp %471 : vector<2x32xf32>
    %cst_106 = arith.constant 1.000000e+00 : f32
    %473 = vector.broadcast %cst_106 : f32 to vector<2x32xf32>
    %474 = arith.addf %473, %472 : vector<2x32xf32>
    %475 = arith.divf %473, %474 : vector<2x32xf32>
    %476 = vector.extract_strided_slice %463 {offsets = [0, 64], sizes = [2, 32], strides = [1, 1]} : vector<2x128xf32> to vector<2x32xf32>
    %477 = math.tanh %476 : vector<2x32xf32>
    %478 = vector.extract_strided_slice %463 {offsets = [0, 96], sizes = [2, 32], strides = [1, 1]} : vector<2x128xf32> to vector<2x32xf32>
    %479 = arith.negf %478 : vector<2x32xf32>
    %480 = math.exp %479 : vector<2x32xf32>
    %cst_107 = arith.constant 1.000000e+00 : f32
    %481 = vector.broadcast %cst_107 : f32 to vector<2x32xf32>
    %482 = arith.addf %481, %480 : vector<2x32xf32>
    %483 = arith.divf %481, %482 : vector<2x32xf32>
    %484 = arith.mulf %475, %426 : vector<2x32xf32>
    %485 = arith.mulf %469, %477 : vector<2x32xf32>
    %486 = arith.addf %484, %485 : vector<2x32xf32>
    %487 = math.tanh %486 : vector<2x32xf32>
    %488 = arith.mulf %483, %487 : vector<2x32xf32>
    %c0_108 = arith.constant 0 : index
    %c8_109 = arith.constant 8 : index
    %c0_110 = arith.constant 0 : index
    %489 = vector.load %arg1[%c0_108, %c8_109, %c0_110] : memref<2x16x128xbf16, #tpu.memory_space<vmem>>, vector<2x1x128xbf16>
    %490 = vector.shape_cast %489 : vector<2x1x128xbf16> to vector<2x128xbf16>
    %491 = arith.extf %490 : vector<2x128xbf16> to vector<2x128xf32>
    %cst_111 = arith.constant dense<0.000000e+00> : vector<2x128xf32>
    %492 = tpu.matmul %458, %3, %cst_111 {dimension_numbers = #tpu.dot_dimension_numbers<[1], [0], [0], [1], [0, 0, 1, 1], [], []>} : vector<2x32xf32>, vector<32x128xf32>, vector<2x128xf32> -> vector<2x128xf32>
    %493 = arith.addf %491, %492 : vector<2x128xf32>
    %494 = vector.extract_strided_slice %493 {offsets = [0, 0], sizes = [2, 32], strides = [1, 1]} : vector<2x128xf32> to vector<2x32xf32>
    %495 = arith.negf %494 : vector<2x32xf32>
    %496 = math.exp %495 : vector<2x32xf32>
    %cst_112 = arith.constant 1.000000e+00 : f32
    %497 = vector.broadcast %cst_112 : f32 to vector<2x32xf32>
    %498 = arith.addf %497, %496 : vector<2x32xf32>
    %499 = arith.divf %497, %498 : vector<2x32xf32>
    %500 = vector.extract_strided_slice %493 {offsets = [0, 32], sizes = [2, 32], strides = [1, 1]} : vector<2x128xf32> to vector<2x32xf32>
    %501 = arith.negf %500 : vector<2x32xf32>
    %502 = math.exp %501 : vector<2x32xf32>
    %cst_113 = arith.constant 1.000000e+00 : f32
    %503 = vector.broadcast %cst_113 : f32 to vector<2x32xf32>
    %504 = arith.addf %503, %502 : vector<2x32xf32>
    %505 = arith.divf %503, %504 : vector<2x32xf32>
    %506 = vector.extract_strided_slice %493 {offsets = [0, 64], sizes = [2, 32], strides = [1, 1]} : vector<2x128xf32> to vector<2x32xf32>
    %507 = math.tanh %506 : vector<2x32xf32>
    %508 = vector.extract_strided_slice %493 {offsets = [0, 96], sizes = [2, 32], strides = [1, 1]} : vector<2x128xf32> to vector<2x32xf32>
    %509 = arith.negf %508 : vector<2x32xf32>
    %510 = math.exp %509 : vector<2x32xf32>
    %cst_114 = arith.constant 1.000000e+00 : f32
    %511 = vector.broadcast %cst_114 : f32 to vector<2x32xf32>
    %512 = arith.addf %511, %510 : vector<2x32xf32>
    %513 = arith.divf %511, %512 : vector<2x32xf32>
    %514 = arith.mulf %505, %456 : vector<2x32xf32>
    %515 = arith.mulf %499, %507 : vector<2x32xf32>
    %516 = arith.addf %514, %515 : vector<2x32xf32>
    %517 = math.tanh %516 : vector<2x32xf32>
    %518 = arith.mulf %513, %517 : vector<2x32xf32>
    %c0_115 = arith.constant 0 : index
    %c7_116 = arith.constant 7 : index
    %c0_117 = arith.constant 0 : index
    %519 = vector.load %arg2[%c0_115, %c7_116, %c0_117] : memref<2x16x128xbf16, #tpu.memory_space<vmem>>, vector<2x1x128xbf16>
    %520 = vector.shape_cast %519 : vector<2x1x128xbf16> to vector<2x128xbf16>
    %521 = arith.extf %520 : vector<2x128xbf16> to vector<2x128xf32>
    %cst_118 = arith.constant dense<0.000000e+00> : vector<2x128xf32>
    %522 = tpu.matmul %488, %4, %cst_118 {dimension_numbers = #tpu.dot_dimension_numbers<[1], [0], [0], [1], [0, 0, 1, 1], [], []>} : vector<2x32xf32>, vector<32x128xf32>, vector<2x128xf32> -> vector<2x128xf32>
    %523 = arith.addf %521, %522 : vector<2x128xf32>
    %524 = vector.extract_strided_slice %523 {offsets = [0, 0], sizes = [2, 32], strides = [1, 1]} : vector<2x128xf32> to vector<2x32xf32>
    %525 = arith.negf %524 : vector<2x32xf32>
    %526 = math.exp %525 : vector<2x32xf32>
    %cst_119 = arith.constant 1.000000e+00 : f32
    %527 = vector.broadcast %cst_119 : f32 to vector<2x32xf32>
    %528 = arith.addf %527, %526 : vector<2x32xf32>
    %529 = arith.divf %527, %528 : vector<2x32xf32>
    %530 = vector.extract_strided_slice %523 {offsets = [0, 32], sizes = [2, 32], strides = [1, 1]} : vector<2x128xf32> to vector<2x32xf32>
    %531 = arith.negf %530 : vector<2x32xf32>
    %532 = math.exp %531 : vector<2x32xf32>
    %cst_120 = arith.constant 1.000000e+00 : f32
    %533 = vector.broadcast %cst_120 : f32 to vector<2x32xf32>
    %534 = arith.addf %533, %532 : vector<2x32xf32>
    %535 = arith.divf %533, %534 : vector<2x32xf32>
    %536 = vector.extract_strided_slice %523 {offsets = [0, 64], sizes = [2, 32], strides = [1, 1]} : vector<2x128xf32> to vector<2x32xf32>
    %537 = math.tanh %536 : vector<2x32xf32>
    %538 = vector.extract_strided_slice %523 {offsets = [0, 96], sizes = [2, 32], strides = [1, 1]} : vector<2x128xf32> to vector<2x32xf32>
    %539 = arith.negf %538 : vector<2x32xf32>
    %540 = math.exp %539 : vector<2x32xf32>
    %cst_121 = arith.constant 1.000000e+00 : f32
    %541 = vector.broadcast %cst_121 : f32 to vector<2x32xf32>
    %542 = arith.addf %541, %540 : vector<2x32xf32>
    %543 = arith.divf %541, %542 : vector<2x32xf32>
    %544 = arith.mulf %535, %486 : vector<2x32xf32>
    %545 = arith.mulf %529, %537 : vector<2x32xf32>
    %546 = arith.addf %544, %545 : vector<2x32xf32>
    %547 = math.tanh %546 : vector<2x32xf32>
    %548 = arith.mulf %543, %547 : vector<2x32xf32>
    %c0_122 = arith.constant 0 : index
    %c9_123 = arith.constant 9 : index
    %c0_124 = arith.constant 0 : index
    %549 = vector.load %arg1[%c0_122, %c9_123, %c0_124] : memref<2x16x128xbf16, #tpu.memory_space<vmem>>, vector<2x1x128xbf16>
    %550 = vector.shape_cast %549 : vector<2x1x128xbf16> to vector<2x128xbf16>
    %551 = arith.extf %550 : vector<2x128xbf16> to vector<2x128xf32>
    %cst_125 = arith.constant dense<0.000000e+00> : vector<2x128xf32>
    %552 = tpu.matmul %518, %3, %cst_125 {dimension_numbers = #tpu.dot_dimension_numbers<[1], [0], [0], [1], [0, 0, 1, 1], [], []>} : vector<2x32xf32>, vector<32x128xf32>, vector<2x128xf32> -> vector<2x128xf32>
    %553 = arith.addf %551, %552 : vector<2x128xf32>
    %554 = vector.extract_strided_slice %553 {offsets = [0, 0], sizes = [2, 32], strides = [1, 1]} : vector<2x128xf32> to vector<2x32xf32>
    %555 = arith.negf %554 : vector<2x32xf32>
    %556 = math.exp %555 : vector<2x32xf32>
    %cst_126 = arith.constant 1.000000e+00 : f32
    %557 = vector.broadcast %cst_126 : f32 to vector<2x32xf32>
    %558 = arith.addf %557, %556 : vector<2x32xf32>
    %559 = arith.divf %557, %558 : vector<2x32xf32>
    %560 = vector.extract_strided_slice %553 {offsets = [0, 32], sizes = [2, 32], strides = [1, 1]} : vector<2x128xf32> to vector<2x32xf32>
    %561 = arith.negf %560 : vector<2x32xf32>
    %562 = math.exp %561 : vector<2x32xf32>
    %cst_127 = arith.constant 1.000000e+00 : f32
    %563 = vector.broadcast %cst_127 : f32 to vector<2x32xf32>
    %564 = arith.addf %563, %562 : vector<2x32xf32>
    %565 = arith.divf %563, %564 : vector<2x32xf32>
    %566 = vector.extract_strided_slice %553 {offsets = [0, 64], sizes = [2, 32], strides = [1, 1]} : vector<2x128xf32> to vector<2x32xf32>
    %567 = math.tanh %566 : vector<2x32xf32>
    %568 = vector.extract_strided_slice %553 {offsets = [0, 96], sizes = [2, 32], strides = [1, 1]} : vector<2x128xf32> to vector<2x32xf32>
    %569 = arith.negf %568 : vector<2x32xf32>
    %570 = math.exp %569 : vector<2x32xf32>
    %cst_128 = arith.constant 1.000000e+00 : f32
    %571 = vector.broadcast %cst_128 : f32 to vector<2x32xf32>
    %572 = arith.addf %571, %570 : vector<2x32xf32>
    %573 = arith.divf %571, %572 : vector<2x32xf32>
    %574 = arith.mulf %565, %516 : vector<2x32xf32>
    %575 = arith.mulf %559, %567 : vector<2x32xf32>
    %576 = arith.addf %574, %575 : vector<2x32xf32>
    %577 = math.tanh %576 : vector<2x32xf32>
    %578 = arith.mulf %573, %577 : vector<2x32xf32>
    %c0_129 = arith.constant 0 : index
    %c6_130 = arith.constant 6 : index
    %c0_131 = arith.constant 0 : index
    %579 = vector.load %arg2[%c0_129, %c6_130, %c0_131] : memref<2x16x128xbf16, #tpu.memory_space<vmem>>, vector<2x1x128xbf16>
    %580 = vector.shape_cast %579 : vector<2x1x128xbf16> to vector<2x128xbf16>
    %581 = arith.extf %580 : vector<2x128xbf16> to vector<2x128xf32>
    %cst_132 = arith.constant dense<0.000000e+00> : vector<2x128xf32>
    %582 = tpu.matmul %548, %4, %cst_132 {dimension_numbers = #tpu.dot_dimension_numbers<[1], [0], [0], [1], [0, 0, 1, 1], [], []>} : vector<2x32xf32>, vector<32x128xf32>, vector<2x128xf32> -> vector<2x128xf32>
    %583 = arith.addf %581, %582 : vector<2x128xf32>
    %584 = vector.extract_strided_slice %583 {offsets = [0, 0], sizes = [2, 32], strides = [1, 1]} : vector<2x128xf32> to vector<2x32xf32>
    %585 = arith.negf %584 : vector<2x32xf32>
    %586 = math.exp %585 : vector<2x32xf32>
    %cst_133 = arith.constant 1.000000e+00 : f32
    %587 = vector.broadcast %cst_133 : f32 to vector<2x32xf32>
    %588 = arith.addf %587, %586 : vector<2x32xf32>
    %589 = arith.divf %587, %588 : vector<2x32xf32>
    %590 = vector.extract_strided_slice %583 {offsets = [0, 32], sizes = [2, 32], strides = [1, 1]} : vector<2x128xf32> to vector<2x32xf32>
    %591 = arith.negf %590 : vector<2x32xf32>
    %592 = math.exp %591 : vector<2x32xf32>
    %cst_134 = arith.constant 1.000000e+00 : f32
    %593 = vector.broadcast %cst_134 : f32 to vector<2x32xf32>
    %594 = arith.addf %593, %592 : vector<2x32xf32>
    %595 = arith.divf %593, %594 : vector<2x32xf32>
    %596 = vector.extract_strided_slice %583 {offsets = [0, 64], sizes = [2, 32], strides = [1, 1]} : vector<2x128xf32> to vector<2x32xf32>
    %597 = math.tanh %596 : vector<2x32xf32>
    %598 = vector.extract_strided_slice %583 {offsets = [0, 96], sizes = [2, 32], strides = [1, 1]} : vector<2x128xf32> to vector<2x32xf32>
    %599 = arith.negf %598 : vector<2x32xf32>
    %600 = math.exp %599 : vector<2x32xf32>
    %cst_135 = arith.constant 1.000000e+00 : f32
    %601 = vector.broadcast %cst_135 : f32 to vector<2x32xf32>
    %602 = arith.addf %601, %600 : vector<2x32xf32>
    %603 = arith.divf %601, %602 : vector<2x32xf32>
    %604 = arith.mulf %595, %546 : vector<2x32xf32>
    %605 = arith.mulf %589, %597 : vector<2x32xf32>
    %606 = arith.addf %604, %605 : vector<2x32xf32>
    %607 = math.tanh %606 : vector<2x32xf32>
    %608 = arith.mulf %603, %607 : vector<2x32xf32>
    %c0_136 = arith.constant 0 : index
    %c10_137 = arith.constant 10 : index
    %c0_138 = arith.constant 0 : index
    %609 = vector.load %arg1[%c0_136, %c10_137, %c0_138] : memref<2x16x128xbf16, #tpu.memory_space<vmem>>, vector<2x1x128xbf16>
    %610 = vector.shape_cast %609 : vector<2x1x128xbf16> to vector<2x128xbf16>
    %611 = arith.extf %610 : vector<2x128xbf16> to vector<2x128xf32>
    %cst_139 = arith.constant dense<0.000000e+00> : vector<2x128xf32>
    %612 = tpu.matmul %578, %3, %cst_139 {dimension_numbers = #tpu.dot_dimension_numbers<[1], [0], [0], [1], [0, 0, 1, 1], [], []>} : vector<2x32xf32>, vector<32x128xf32>, vector<2x128xf32> -> vector<2x128xf32>
    %613 = arith.addf %611, %612 : vector<2x128xf32>
    %614 = vector.extract_strided_slice %613 {offsets = [0, 0], sizes = [2, 32], strides = [1, 1]} : vector<2x128xf32> to vector<2x32xf32>
    %615 = arith.negf %614 : vector<2x32xf32>
    %616 = math.exp %615 : vector<2x32xf32>
    %cst_140 = arith.constant 1.000000e+00 : f32
    %617 = vector.broadcast %cst_140 : f32 to vector<2x32xf32>
    %618 = arith.addf %617, %616 : vector<2x32xf32>
    %619 = arith.divf %617, %618 : vector<2x32xf32>
    %620 = vector.extract_strided_slice %613 {offsets = [0, 32], sizes = [2, 32], strides = [1, 1]} : vector<2x128xf32> to vector<2x32xf32>
    %621 = arith.negf %620 : vector<2x32xf32>
    %622 = math.exp %621 : vector<2x32xf32>
    %cst_141 = arith.constant 1.000000e+00 : f32
    %623 = vector.broadcast %cst_141 : f32 to vector<2x32xf32>
    %624 = arith.addf %623, %622 : vector<2x32xf32>
    %625 = arith.divf %623, %624 : vector<2x32xf32>
    %626 = vector.extract_strided_slice %613 {offsets = [0, 64], sizes = [2, 32], strides = [1, 1]} : vector<2x128xf32> to vector<2x32xf32>
    %627 = math.tanh %626 : vector<2x32xf32>
    %628 = vector.extract_strided_slice %613 {offsets = [0, 96], sizes = [2, 32], strides = [1, 1]} : vector<2x128xf32> to vector<2x32xf32>
    %629 = arith.negf %628 : vector<2x32xf32>
    %630 = math.exp %629 : vector<2x32xf32>
    %cst_142 = arith.constant 1.000000e+00 : f32
    %631 = vector.broadcast %cst_142 : f32 to vector<2x32xf32>
    %632 = arith.addf %631, %630 : vector<2x32xf32>
    %633 = arith.divf %631, %632 : vector<2x32xf32>
    %634 = arith.mulf %625, %576 : vector<2x32xf32>
    %635 = arith.mulf %619, %627 : vector<2x32xf32>
    %636 = arith.addf %634, %635 : vector<2x32xf32>
    %637 = math.tanh %636 : vector<2x32xf32>
    %638 = arith.mulf %633, %637 : vector<2x32xf32>
    %c0_143 = arith.constant 0 : index
    %c5_144 = arith.constant 5 : index
    %c0_145 = arith.constant 0 : index
    %639 = vector.load %arg2[%c0_143, %c5_144, %c0_145] : memref<2x16x128xbf16, #tpu.memory_space<vmem>>, vector<2x1x128xbf16>
    %640 = vector.shape_cast %639 : vector<2x1x128xbf16> to vector<2x128xbf16>
    %641 = arith.extf %640 : vector<2x128xbf16> to vector<2x128xf32>
    %cst_146 = arith.constant dense<0.000000e+00> : vector<2x128xf32>
    %642 = tpu.matmul %608, %4, %cst_146 {dimension_numbers = #tpu.dot_dimension_numbers<[1], [0], [0], [1], [0, 0, 1, 1], [], []>} : vector<2x32xf32>, vector<32x128xf32>, vector<2x128xf32> -> vector<2x128xf32>
    %643 = arith.addf %641, %642 : vector<2x128xf32>
    %644 = vector.extract_strided_slice %643 {offsets = [0, 0], sizes = [2, 32], strides = [1, 1]} : vector<2x128xf32> to vector<2x32xf32>
    %645 = arith.negf %644 : vector<2x32xf32>
    %646 = math.exp %645 : vector<2x32xf32>
    %cst_147 = arith.constant 1.000000e+00 : f32
    %647 = vector.broadcast %cst_147 : f32 to vector<2x32xf32>
    %648 = arith.addf %647, %646 : vector<2x32xf32>
    %649 = arith.divf %647, %648 : vector<2x32xf32>
    %650 = vector.extract_strided_slice %643 {offsets = [0, 32], sizes = [2, 32], strides = [1, 1]} : vector<2x128xf32> to vector<2x32xf32>
    %651 = arith.negf %650 : vector<2x32xf32>
    %652 = math.exp %651 : vector<2x32xf32>
    %cst_148 = arith.constant 1.000000e+00 : f32
    %653 = vector.broadcast %cst_148 : f32 to vector<2x32xf32>
    %654 = arith.addf %653, %652 : vector<2x32xf32>
    %655 = arith.divf %653, %654 : vector<2x32xf32>
    %656 = vector.extract_strided_slice %643 {offsets = [0, 64], sizes = [2, 32], strides = [1, 1]} : vector<2x128xf32> to vector<2x32xf32>
    %657 = math.tanh %656 : vector<2x32xf32>
    %658 = vector.extract_strided_slice %643 {offsets = [0, 96], sizes = [2, 32], strides = [1, 1]} : vector<2x128xf32> to vector<2x32xf32>
    %659 = arith.negf %658 : vector<2x32xf32>
    %660 = math.exp %659 : vector<2x32xf32>
    %cst_149 = arith.constant 1.000000e+00 : f32
    %661 = vector.broadcast %cst_149 : f32 to vector<2x32xf32>
    %662 = arith.addf %661, %660 : vector<2x32xf32>
    %663 = arith.divf %661, %662 : vector<2x32xf32>
    %664 = arith.mulf %655, %606 : vector<2x32xf32>
    %665 = arith.mulf %649, %657 : vector<2x32xf32>
    %666 = arith.addf %664, %665 : vector<2x32xf32>
    %667 = math.tanh %666 : vector<2x32xf32>
    %668 = arith.mulf %663, %667 : vector<2x32xf32>
    %c0_150 = arith.constant 0 : index
    %c11_151 = arith.constant 11 : index
    %c0_152 = arith.constant 0 : index
    %669 = vector.load %arg1[%c0_150, %c11_151, %c0_152] : memref<2x16x128xbf16, #tpu.memory_space<vmem>>, vector<2x1x128xbf16>
    %670 = vector.shape_cast %669 : vector<2x1x128xbf16> to vector<2x128xbf16>
    %671 = arith.extf %670 : vector<2x128xbf16> to vector<2x128xf32>
    %cst_153 = arith.constant dense<0.000000e+00> : vector<2x128xf32>
    %672 = tpu.matmul %638, %3, %cst_153 {dimension_numbers = #tpu.dot_dimension_numbers<[1], [0], [0], [1], [0, 0, 1, 1], [], []>} : vector<2x32xf32>, vector<32x128xf32>, vector<2x128xf32> -> vector<2x128xf32>
    %673 = arith.addf %671, %672 : vector<2x128xf32>
    %674 = vector.extract_strided_slice %673 {offsets = [0, 0], sizes = [2, 32], strides = [1, 1]} : vector<2x128xf32> to vector<2x32xf32>
    %675 = arith.negf %674 : vector<2x32xf32>
    %676 = math.exp %675 : vector<2x32xf32>
    %cst_154 = arith.constant 1.000000e+00 : f32
    %677 = vector.broadcast %cst_154 : f32 to vector<2x32xf32>
    %678 = arith.addf %677, %676 : vector<2x32xf32>
    %679 = arith.divf %677, %678 : vector<2x32xf32>
    %680 = vector.extract_strided_slice %673 {offsets = [0, 32], sizes = [2, 32], strides = [1, 1]} : vector<2x128xf32> to vector<2x32xf32>
    %681 = arith.negf %680 : vector<2x32xf32>
    %682 = math.exp %681 : vector<2x32xf32>
    %cst_155 = arith.constant 1.000000e+00 : f32
    %683 = vector.broadcast %cst_155 : f32 to vector<2x32xf32>
    %684 = arith.addf %683, %682 : vector<2x32xf32>
    %685 = arith.divf %683, %684 : vector<2x32xf32>
    %686 = vector.extract_strided_slice %673 {offsets = [0, 64], sizes = [2, 32], strides = [1, 1]} : vector<2x128xf32> to vector<2x32xf32>
    %687 = math.tanh %686 : vector<2x32xf32>
    %688 = vector.extract_strided_slice %673 {offsets = [0, 96], sizes = [2, 32], strides = [1, 1]} : vector<2x128xf32> to vector<2x32xf32>
    %689 = arith.negf %688 : vector<2x32xf32>
    %690 = math.exp %689 : vector<2x32xf32>
    %cst_156 = arith.constant 1.000000e+00 : f32
    %691 = vector.broadcast %cst_156 : f32 to vector<2x32xf32>
    %692 = arith.addf %691, %690 : vector<2x32xf32>
    %693 = arith.divf %691, %692 : vector<2x32xf32>
    %694 = arith.mulf %685, %636 : vector<2x32xf32>
    %695 = arith.mulf %679, %687 : vector<2x32xf32>
    %696 = arith.addf %694, %695 : vector<2x32xf32>
    %697 = math.tanh %696 : vector<2x32xf32>
    %698 = arith.mulf %693, %697 : vector<2x32xf32>
    %c0_157 = arith.constant 0 : index
    %c4_158 = arith.constant 4 : index
    %c0_159 = arith.constant 0 : index
    %699 = vector.load %arg2[%c0_157, %c4_158, %c0_159] : memref<2x16x128xbf16, #tpu.memory_space<vmem>>, vector<2x1x128xbf16>
    %700 = vector.shape_cast %699 : vector<2x1x128xbf16> to vector<2x128xbf16>
    %701 = arith.extf %700 : vector<2x128xbf16> to vector<2x128xf32>
    %cst_160 = arith.constant dense<0.000000e+00> : vector<2x128xf32>
    %702 = tpu.matmul %668, %4, %cst_160 {dimension_numbers = #tpu.dot_dimension_numbers<[1], [0], [0], [1], [0, 0, 1, 1], [], []>} : vector<2x32xf32>, vector<32x128xf32>, vector<2x128xf32> -> vector<2x128xf32>
    %703 = arith.addf %701, %702 : vector<2x128xf32>
    %704 = vector.extract_strided_slice %703 {offsets = [0, 0], sizes = [2, 32], strides = [1, 1]} : vector<2x128xf32> to vector<2x32xf32>
    %705 = arith.negf %704 : vector<2x32xf32>
    %706 = math.exp %705 : vector<2x32xf32>
    %cst_161 = arith.constant 1.000000e+00 : f32
    %707 = vector.broadcast %cst_161 : f32 to vector<2x32xf32>
    %708 = arith.addf %707, %706 : vector<2x32xf32>
    %709 = arith.divf %707, %708 : vector<2x32xf32>
    %710 = vector.extract_strided_slice %703 {offsets = [0, 32], sizes = [2, 32], strides = [1, 1]} : vector<2x128xf32> to vector<2x32xf32>
    %711 = arith.negf %710 : vector<2x32xf32>
    %712 = math.exp %711 : vector<2x32xf32>
    %cst_162 = arith.constant 1.000000e+00 : f32
    %713 = vector.broadcast %cst_162 : f32 to vector<2x32xf32>
    %714 = arith.addf %713, %712 : vector<2x32xf32>
    %715 = arith.divf %713, %714 : vector<2x32xf32>
    %716 = vector.extract_strided_slice %703 {offsets = [0, 64], sizes = [2, 32], strides = [1, 1]} : vector<2x128xf32> to vector<2x32xf32>
    %717 = math.tanh %716 : vector<2x32xf32>
    %718 = vector.extract_strided_slice %703 {offsets = [0, 96], sizes = [2, 32], strides = [1, 1]} : vector<2x128xf32> to vector<2x32xf32>
    %719 = arith.negf %718 : vector<2x32xf32>
    %720 = math.exp %719 : vector<2x32xf32>
    %cst_163 = arith.constant 1.000000e+00 : f32
    %721 = vector.broadcast %cst_163 : f32 to vector<2x32xf32>
    %722 = arith.addf %721, %720 : vector<2x32xf32>
    %723 = arith.divf %721, %722 : vector<2x32xf32>
    %724 = arith.mulf %715, %666 : vector<2x32xf32>
    %725 = arith.mulf %709, %717 : vector<2x32xf32>
    %726 = arith.addf %724, %725 : vector<2x32xf32>
    %727 = math.tanh %726 : vector<2x32xf32>
    %728 = arith.mulf %723, %727 : vector<2x32xf32>
    %c0_164 = arith.constant 0 : index
    %c12_165 = arith.constant 12 : index
    %c0_166 = arith.constant 0 : index
    %729 = vector.load %arg1[%c0_164, %c12_165, %c0_166] : memref<2x16x128xbf16, #tpu.memory_space<vmem>>, vector<2x1x128xbf16>
    %730 = vector.shape_cast %729 : vector<2x1x128xbf16> to vector<2x128xbf16>
    %731 = arith.extf %730 : vector<2x128xbf16> to vector<2x128xf32>
    %cst_167 = arith.constant dense<0.000000e+00> : vector<2x128xf32>
    %732 = tpu.matmul %698, %3, %cst_167 {dimension_numbers = #tpu.dot_dimension_numbers<[1], [0], [0], [1], [0, 0, 1, 1], [], []>} : vector<2x32xf32>, vector<32x128xf32>, vector<2x128xf32> -> vector<2x128xf32>
    %733 = arith.addf %731, %732 : vector<2x128xf32>
    %734 = vector.extract_strided_slice %733 {offsets = [0, 0], sizes = [2, 32], strides = [1, 1]} : vector<2x128xf32> to vector<2x32xf32>
    %735 = arith.negf %734 : vector<2x32xf32>
    %736 = math.exp %735 : vector<2x32xf32>
    %cst_168 = arith.constant 1.000000e+00 : f32
    %737 = vector.broadcast %cst_168 : f32 to vector<2x32xf32>
    %738 = arith.addf %737, %736 : vector<2x32xf32>
    %739 = arith.divf %737, %738 : vector<2x32xf32>
    %740 = vector.extract_strided_slice %733 {offsets = [0, 32], sizes = [2, 32], strides = [1, 1]} : vector<2x128xf32> to vector<2x32xf32>
    %741 = arith.negf %740 : vector<2x32xf32>
    %742 = math.exp %741 : vector<2x32xf32>
    %cst_169 = arith.constant 1.000000e+00 : f32
    %743 = vector.broadcast %cst_169 : f32 to vector<2x32xf32>
    %744 = arith.addf %743, %742 : vector<2x32xf32>
    %745 = arith.divf %743, %744 : vector<2x32xf32>
    %746 = vector.extract_strided_slice %733 {offsets = [0, 64], sizes = [2, 32], strides = [1, 1]} : vector<2x128xf32> to vector<2x32xf32>
    %747 = math.tanh %746 : vector<2x32xf32>
    %748 = vector.extract_strided_slice %733 {offsets = [0, 96], sizes = [2, 32], strides = [1, 1]} : vector<2x128xf32> to vector<2x32xf32>
    %749 = arith.negf %748 : vector<2x32xf32>
    %750 = math.exp %749 : vector<2x32xf32>
    %cst_170 = arith.constant 1.000000e+00 : f32
    %751 = vector.broadcast %cst_170 : f32 to vector<2x32xf32>
    %752 = arith.addf %751, %750 : vector<2x32xf32>
    %753 = arith.divf %751, %752 : vector<2x32xf32>
    %754 = arith.mulf %745, %696 : vector<2x32xf32>
    %755 = arith.mulf %739, %747 : vector<2x32xf32>
    %756 = arith.addf %754, %755 : vector<2x32xf32>
    %757 = math.tanh %756 : vector<2x32xf32>
    %758 = arith.mulf %753, %757 : vector<2x32xf32>
    %c0_171 = arith.constant 0 : index
    %c3_172 = arith.constant 3 : index
    %c0_173 = arith.constant 0 : index
    %759 = vector.load %arg2[%c0_171, %c3_172, %c0_173] : memref<2x16x128xbf16, #tpu.memory_space<vmem>>, vector<2x1x128xbf16>
    %760 = vector.shape_cast %759 : vector<2x1x128xbf16> to vector<2x128xbf16>
    %761 = arith.extf %760 : vector<2x128xbf16> to vector<2x128xf32>
    %cst_174 = arith.constant dense<0.000000e+00> : vector<2x128xf32>
    %762 = tpu.matmul %728, %4, %cst_174 {dimension_numbers = #tpu.dot_dimension_numbers<[1], [0], [0], [1], [0, 0, 1, 1], [], []>} : vector<2x32xf32>, vector<32x128xf32>, vector<2x128xf32> -> vector<2x128xf32>
    %763 = arith.addf %761, %762 : vector<2x128xf32>
    %764 = vector.extract_strided_slice %763 {offsets = [0, 0], sizes = [2, 32], strides = [1, 1]} : vector<2x128xf32> to vector<2x32xf32>
    %765 = arith.negf %764 : vector<2x32xf32>
    %766 = math.exp %765 : vector<2x32xf32>
    %cst_175 = arith.constant 1.000000e+00 : f32
    %767 = vector.broadcast %cst_175 : f32 to vector<2x32xf32>
    %768 = arith.addf %767, %766 : vector<2x32xf32>
    %769 = arith.divf %767, %768 : vector<2x32xf32>
    %770 = vector.extract_strided_slice %763 {offsets = [0, 32], sizes = [2, 32], strides = [1, 1]} : vector<2x128xf32> to vector<2x32xf32>
    %771 = arith.negf %770 : vector<2x32xf32>
    %772 = math.exp %771 : vector<2x32xf32>
    %cst_176 = arith.constant 1.000000e+00 : f32
    %773 = vector.broadcast %cst_176 : f32 to vector<2x32xf32>
    %774 = arith.addf %773, %772 : vector<2x32xf32>
    %775 = arith.divf %773, %774 : vector<2x32xf32>
    %776 = vector.extract_strided_slice %763 {offsets = [0, 64], sizes = [2, 32], strides = [1, 1]} : vector<2x128xf32> to vector<2x32xf32>
    %777 = math.tanh %776 : vector<2x32xf32>
    %778 = vector.extract_strided_slice %763 {offsets = [0, 96], sizes = [2, 32], strides = [1, 1]} : vector<2x128xf32> to vector<2x32xf32>
    %779 = arith.negf %778 : vector<2x32xf32>
    %780 = math.exp %779 : vector<2x32xf32>
    %cst_177 = arith.constant 1.000000e+00 : f32
    %781 = vector.broadcast %cst_177 : f32 to vector<2x32xf32>
    %782 = arith.addf %781, %780 : vector<2x32xf32>
    %783 = arith.divf %781, %782 : vector<2x32xf32>
    %784 = arith.mulf %775, %726 : vector<2x32xf32>
    %785 = arith.mulf %769, %777 : vector<2x32xf32>
    %786 = arith.addf %784, %785 : vector<2x32xf32>
    %787 = math.tanh %786 : vector<2x32xf32>
    %788 = arith.mulf %783, %787 : vector<2x32xf32>
    %c0_178 = arith.constant 0 : index
    %c13_179 = arith.constant 13 : index
    %c0_180 = arith.constant 0 : index
    %789 = vector.load %arg1[%c0_178, %c13_179, %c0_180] : memref<2x16x128xbf16, #tpu.memory_space<vmem>>, vector<2x1x128xbf16>
    %790 = vector.shape_cast %789 : vector<2x1x128xbf16> to vector<2x128xbf16>
    %791 = arith.extf %790 : vector<2x128xbf16> to vector<2x128xf32>
    %cst_181 = arith.constant dense<0.000000e+00> : vector<2x128xf32>
    %792 = tpu.matmul %758, %3, %cst_181 {dimension_numbers = #tpu.dot_dimension_numbers<[1], [0], [0], [1], [0, 0, 1, 1], [], []>} : vector<2x32xf32>, vector<32x128xf32>, vector<2x128xf32> -> vector<2x128xf32>
    %793 = arith.addf %791, %792 : vector<2x128xf32>
    %794 = vector.extract_strided_slice %793 {offsets = [0, 0], sizes = [2, 32], strides = [1, 1]} : vector<2x128xf32> to vector<2x32xf32>
    %795 = arith.negf %794 : vector<2x32xf32>
    %796 = math.exp %795 : vector<2x32xf32>
    %cst_182 = arith.constant 1.000000e+00 : f32
    %797 = vector.broadcast %cst_182 : f32 to vector<2x32xf32>
    %798 = arith.addf %797, %796 : vector<2x32xf32>
    %799 = arith.divf %797, %798 : vector<2x32xf32>
    %800 = vector.extract_strided_slice %793 {offsets = [0, 32], sizes = [2, 32], strides = [1, 1]} : vector<2x128xf32> to vector<2x32xf32>
    %801 = arith.negf %800 : vector<2x32xf32>
    %802 = math.exp %801 : vector<2x32xf32>
    %cst_183 = arith.constant 1.000000e+00 : f32
    %803 = vector.broadcast %cst_183 : f32 to vector<2x32xf32>
    %804 = arith.addf %803, %802 : vector<2x32xf32>
    %805 = arith.divf %803, %804 : vector<2x32xf32>
    %806 = vector.extract_strided_slice %793 {offsets = [0, 64], sizes = [2, 32], strides = [1, 1]} : vector<2x128xf32> to vector<2x32xf32>
    %807 = math.tanh %806 : vector<2x32xf32>
    %808 = vector.extract_strided_slice %793 {offsets = [0, 96], sizes = [2, 32], strides = [1, 1]} : vector<2x128xf32> to vector<2x32xf32>
    %809 = arith.negf %808 : vector<2x32xf32>
    %810 = math.exp %809 : vector<2x32xf32>
    %cst_184 = arith.constant 1.000000e+00 : f32
    %811 = vector.broadcast %cst_184 : f32 to vector<2x32xf32>
    %812 = arith.addf %811, %810 : vector<2x32xf32>
    %813 = arith.divf %811, %812 : vector<2x32xf32>
    %814 = arith.mulf %805, %756 : vector<2x32xf32>
    %815 = arith.mulf %799, %807 : vector<2x32xf32>
    %816 = arith.addf %814, %815 : vector<2x32xf32>
    %817 = math.tanh %816 : vector<2x32xf32>
    %818 = arith.mulf %813, %817 : vector<2x32xf32>
    %c0_185 = arith.constant 0 : index
    %c2_186 = arith.constant 2 : index
    %c0_187 = arith.constant 0 : index
    %819 = vector.load %arg2[%c0_185, %c2_186, %c0_187] : memref<2x16x128xbf16, #tpu.memory_space<vmem>>, vector<2x1x128xbf16>
    %820 = vector.shape_cast %819 : vector<2x1x128xbf16> to vector<2x128xbf16>
    %821 = arith.extf %820 : vector<2x128xbf16> to vector<2x128xf32>
    %cst_188 = arith.constant dense<0.000000e+00> : vector<2x128xf32>
    %822 = tpu.matmul %788, %4, %cst_188 {dimension_numbers = #tpu.dot_dimension_numbers<[1], [0], [0], [1], [0, 0, 1, 1], [], []>} : vector<2x32xf32>, vector<32x128xf32>, vector<2x128xf32> -> vector<2x128xf32>
    %823 = arith.addf %821, %822 : vector<2x128xf32>
    %824 = vector.extract_strided_slice %823 {offsets = [0, 0], sizes = [2, 32], strides = [1, 1]} : vector<2x128xf32> to vector<2x32xf32>
    %825 = arith.negf %824 : vector<2x32xf32>
    %826 = math.exp %825 : vector<2x32xf32>
    %cst_189 = arith.constant 1.000000e+00 : f32
    %827 = vector.broadcast %cst_189 : f32 to vector<2x32xf32>
    %828 = arith.addf %827, %826 : vector<2x32xf32>
    %829 = arith.divf %827, %828 : vector<2x32xf32>
    %830 = vector.extract_strided_slice %823 {offsets = [0, 32], sizes = [2, 32], strides = [1, 1]} : vector<2x128xf32> to vector<2x32xf32>
    %831 = arith.negf %830 : vector<2x32xf32>
    %832 = math.exp %831 : vector<2x32xf32>
    %cst_190 = arith.constant 1.000000e+00 : f32
    %833 = vector.broadcast %cst_190 : f32 to vector<2x32xf32>
    %834 = arith.addf %833, %832 : vector<2x32xf32>
    %835 = arith.divf %833, %834 : vector<2x32xf32>
    %836 = vector.extract_strided_slice %823 {offsets = [0, 64], sizes = [2, 32], strides = [1, 1]} : vector<2x128xf32> to vector<2x32xf32>
    %837 = math.tanh %836 : vector<2x32xf32>
    %838 = vector.extract_strided_slice %823 {offsets = [0, 96], sizes = [2, 32], strides = [1, 1]} : vector<2x128xf32> to vector<2x32xf32>
    %839 = arith.negf %838 : vector<2x32xf32>
    %840 = math.exp %839 : vector<2x32xf32>
    %cst_191 = arith.constant 1.000000e+00 : f32
    %841 = vector.broadcast %cst_191 : f32 to vector<2x32xf32>
    %842 = arith.addf %841, %840 : vector<2x32xf32>
    %843 = arith.divf %841, %842 : vector<2x32xf32>
    %844 = arith.mulf %835, %786 : vector<2x32xf32>
    %845 = arith.mulf %829, %837 : vector<2x32xf32>
    %846 = arith.addf %844, %845 : vector<2x32xf32>
    %847 = math.tanh %846 : vector<2x32xf32>
    %848 = arith.mulf %843, %847 : vector<2x32xf32>
    %c0_192 = arith.constant 0 : index
    %c14_193 = arith.constant 14 : index
    %c0_194 = arith.constant 0 : index
    %849 = vector.load %arg1[%c0_192, %c14_193, %c0_194] : memref<2x16x128xbf16, #tpu.memory_space<vmem>>, vector<2x1x128xbf16>
    %850 = vector.shape_cast %849 : vector<2x1x128xbf16> to vector<2x128xbf16>
    %851 = arith.extf %850 : vector<2x128xbf16> to vector<2x128xf32>
    %cst_195 = arith.constant dense<0.000000e+00> : vector<2x128xf32>
    %852 = tpu.matmul %818, %3, %cst_195 {dimension_numbers = #tpu.dot_dimension_numbers<[1], [0], [0], [1], [0, 0, 1, 1], [], []>} : vector<2x32xf32>, vector<32x128xf32>, vector<2x128xf32> -> vector<2x128xf32>
    %853 = arith.addf %851, %852 : vector<2x128xf32>
    %854 = vector.extract_strided_slice %853 {offsets = [0, 0], sizes = [2, 32], strides = [1, 1]} : vector<2x128xf32> to vector<2x32xf32>
    %855 = arith.negf %854 : vector<2x32xf32>
    %856 = math.exp %855 : vector<2x32xf32>
    %cst_196 = arith.constant 1.000000e+00 : f32
    %857 = vector.broadcast %cst_196 : f32 to vector<2x32xf32>
    %858 = arith.addf %857, %856 : vector<2x32xf32>
    %859 = arith.divf %857, %858 : vector<2x32xf32>
    %860 = vector.extract_strided_slice %853 {offsets = [0, 32], sizes = [2, 32], strides = [1, 1]} : vector<2x128xf32> to vector<2x32xf32>
    %861 = arith.negf %860 : vector<2x32xf32>
    %862 = math.exp %861 : vector<2x32xf32>
    %cst_197 = arith.constant 1.000000e+00 : f32
    %863 = vector.broadcast %cst_197 : f32 to vector<2x32xf32>
    %864 = arith.addf %863, %862 : vector<2x32xf32>
    %865 = arith.divf %863, %864 : vector<2x32xf32>
    %866 = vector.extract_strided_slice %853 {offsets = [0, 64], sizes = [2, 32], strides = [1, 1]} : vector<2x128xf32> to vector<2x32xf32>
    %867 = math.tanh %866 : vector<2x32xf32>
    %868 = vector.extract_strided_slice %853 {offsets = [0, 96], sizes = [2, 32], strides = [1, 1]} : vector<2x128xf32> to vector<2x32xf32>
    %869 = arith.negf %868 : vector<2x32xf32>
    %870 = math.exp %869 : vector<2x32xf32>
    %cst_198 = arith.constant 1.000000e+00 : f32
    %871 = vector.broadcast %cst_198 : f32 to vector<2x32xf32>
    %872 = arith.addf %871, %870 : vector<2x32xf32>
    %873 = arith.divf %871, %872 : vector<2x32xf32>
    %874 = arith.mulf %865, %816 : vector<2x32xf32>
    %875 = arith.mulf %859, %867 : vector<2x32xf32>
    %876 = arith.addf %874, %875 : vector<2x32xf32>
    %877 = math.tanh %876 : vector<2x32xf32>
    %878 = arith.mulf %873, %877 : vector<2x32xf32>
    %c0_199 = arith.constant 0 : index
    %c1_200 = arith.constant 1 : index
    %c0_201 = arith.constant 0 : index
    %879 = vector.load %arg2[%c0_199, %c1_200, %c0_201] : memref<2x16x128xbf16, #tpu.memory_space<vmem>>, vector<2x1x128xbf16>
    %880 = vector.shape_cast %879 : vector<2x1x128xbf16> to vector<2x128xbf16>
    %881 = arith.extf %880 : vector<2x128xbf16> to vector<2x128xf32>
    %cst_202 = arith.constant dense<0.000000e+00> : vector<2x128xf32>
    %882 = tpu.matmul %848, %4, %cst_202 {dimension_numbers = #tpu.dot_dimension_numbers<[1], [0], [0], [1], [0, 0, 1, 1], [], []>} : vector<2x32xf32>, vector<32x128xf32>, vector<2x128xf32> -> vector<2x128xf32>
    %883 = arith.addf %881, %882 : vector<2x128xf32>
    %884 = vector.extract_strided_slice %883 {offsets = [0, 0], sizes = [2, 32], strides = [1, 1]} : vector<2x128xf32> to vector<2x32xf32>
    %885 = arith.negf %884 : vector<2x32xf32>
    %886 = math.exp %885 : vector<2x32xf32>
    %cst_203 = arith.constant 1.000000e+00 : f32
    %887 = vector.broadcast %cst_203 : f32 to vector<2x32xf32>
    %888 = arith.addf %887, %886 : vector<2x32xf32>
    %889 = arith.divf %887, %888 : vector<2x32xf32>
    %890 = vector.extract_strided_slice %883 {offsets = [0, 32], sizes = [2, 32], strides = [1, 1]} : vector<2x128xf32> to vector<2x32xf32>
    %891 = arith.negf %890 : vector<2x32xf32>
    %892 = math.exp %891 : vector<2x32xf32>
    %cst_204 = arith.constant 1.000000e+00 : f32
    %893 = vector.broadcast %cst_204 : f32 to vector<2x32xf32>
    %894 = arith.addf %893, %892 : vector<2x32xf32>
    %895 = arith.divf %893, %894 : vector<2x32xf32>
    %896 = vector.extract_strided_slice %883 {offsets = [0, 64], sizes = [2, 32], strides = [1, 1]} : vector<2x128xf32> to vector<2x32xf32>
    %897 = math.tanh %896 : vector<2x32xf32>
    %898 = vector.extract_strided_slice %883 {offsets = [0, 96], sizes = [2, 32], strides = [1, 1]} : vector<2x128xf32> to vector<2x32xf32>
    %899 = arith.negf %898 : vector<2x32xf32>
    %900 = math.exp %899 : vector<2x32xf32>
    %cst_205 = arith.constant 1.000000e+00 : f32
    %901 = vector.broadcast %cst_205 : f32 to vector<2x32xf32>
    %902 = arith.addf %901, %900 : vector<2x32xf32>
    %903 = arith.divf %901, %902 : vector<2x32xf32>
    %904 = arith.mulf %895, %846 : vector<2x32xf32>
    %905 = arith.mulf %889, %897 : vector<2x32xf32>
    %906 = arith.addf %904, %905 : vector<2x32xf32>
    %907 = math.tanh %906 : vector<2x32xf32>
    %908 = arith.mulf %903, %907 : vector<2x32xf32>
    %c0_206 = arith.constant 0 : index
    %c15_207 = arith.constant 15 : index
    %c0_208 = arith.constant 0 : index
    %909 = vector.load %arg1[%c0_206, %c15_207, %c0_208] : memref<2x16x128xbf16, #tpu.memory_space<vmem>>, vector<2x1x128xbf16>
    %910 = vector.shape_cast %909 : vector<2x1x128xbf16> to vector<2x128xbf16>
    %911 = arith.extf %910 : vector<2x128xbf16> to vector<2x128xf32>
    %cst_209 = arith.constant dense<0.000000e+00> : vector<2x128xf32>
    %912 = tpu.matmul %878, %3, %cst_209 {dimension_numbers = #tpu.dot_dimension_numbers<[1], [0], [0], [1], [0, 0, 1, 1], [], []>} : vector<2x32xf32>, vector<32x128xf32>, vector<2x128xf32> -> vector<2x128xf32>
    %913 = arith.addf %911, %912 : vector<2x128xf32>
    %914 = vector.extract_strided_slice %913 {offsets = [0, 0], sizes = [2, 32], strides = [1, 1]} : vector<2x128xf32> to vector<2x32xf32>
    %915 = arith.negf %914 : vector<2x32xf32>
    %916 = math.exp %915 : vector<2x32xf32>
    %cst_210 = arith.constant 1.000000e+00 : f32
    %917 = vector.broadcast %cst_210 : f32 to vector<2x32xf32>
    %918 = arith.addf %917, %916 : vector<2x32xf32>
    %919 = arith.divf %917, %918 : vector<2x32xf32>
    %920 = vector.extract_strided_slice %913 {offsets = [0, 32], sizes = [2, 32], strides = [1, 1]} : vector<2x128xf32> to vector<2x32xf32>
    %921 = arith.negf %920 : vector<2x32xf32>
    %922 = math.exp %921 : vector<2x32xf32>
    %cst_211 = arith.constant 1.000000e+00 : f32
    %923 = vector.broadcast %cst_211 : f32 to vector<2x32xf32>
    %924 = arith.addf %923, %922 : vector<2x32xf32>
    %925 = arith.divf %923, %924 : vector<2x32xf32>
    %926 = vector.extract_strided_slice %913 {offsets = [0, 64], sizes = [2, 32], strides = [1, 1]} : vector<2x128xf32> to vector<2x32xf32>
    %927 = math.tanh %926 : vector<2x32xf32>
    %928 = vector.extract_strided_slice %913 {offsets = [0, 96], sizes = [2, 32], strides = [1, 1]} : vector<2x128xf32> to vector<2x32xf32>
    %929 = arith.negf %928 : vector<2x32xf32>
    %930 = math.exp %929 : vector<2x32xf32>
    %cst_212 = arith.constant 1.000000e+00 : f32
    %931 = vector.broadcast %cst_212 : f32 to vector<2x32xf32>
    %932 = arith.addf %931, %930 : vector<2x32xf32>
    %933 = arith.divf %931, %932 : vector<2x32xf32>
    %934 = arith.mulf %925, %876 : vector<2x32xf32>
    %935 = arith.mulf %919, %927 : vector<2x32xf32>
    %936 = arith.addf %934, %935 : vector<2x32xf32>
    %937 = math.tanh %936 : vector<2x32xf32>
    %938 = arith.mulf %933, %937 : vector<2x32xf32>
    %c0_213 = arith.constant 0 : index
    %c0_214 = arith.constant 0 : index
    %c0_215 = arith.constant 0 : index
    %939 = vector.load %arg2[%c0_213, %c0_214, %c0_215] : memref<2x16x128xbf16, #tpu.memory_space<vmem>>, vector<2x1x128xbf16>
    %940 = vector.shape_cast %939 : vector<2x1x128xbf16> to vector<2x128xbf16>
    %941 = arith.extf %940 : vector<2x128xbf16> to vector<2x128xf32>
    %cst_216 = arith.constant dense<0.000000e+00> : vector<2x128xf32>
    %942 = tpu.matmul %908, %4, %cst_216 {dimension_numbers = #tpu.dot_dimension_numbers<[1], [0], [0], [1], [0, 0, 1, 1], [], []>} : vector<2x32xf32>, vector<32x128xf32>, vector<2x128xf32> -> vector<2x128xf32>
    %943 = arith.addf %941, %942 : vector<2x128xf32>
    %944 = vector.extract_strided_slice %943 {offsets = [0, 0], sizes = [2, 32], strides = [1, 1]} : vector<2x128xf32> to vector<2x32xf32>
    %945 = arith.negf %944 : vector<2x32xf32>
    %946 = math.exp %945 : vector<2x32xf32>
    %cst_217 = arith.constant 1.000000e+00 : f32
    %947 = vector.broadcast %cst_217 : f32 to vector<2x32xf32>
    %948 = arith.addf %947, %946 : vector<2x32xf32>
    %949 = arith.divf %947, %948 : vector<2x32xf32>
    %950 = vector.extract_strided_slice %943 {offsets = [0, 32], sizes = [2, 32], strides = [1, 1]} : vector<2x128xf32> to vector<2x32xf32>
    %951 = arith.negf %950 : vector<2x32xf32>
    %952 = math.exp %951 : vector<2x32xf32>
    %cst_218 = arith.constant 1.000000e+00 : f32
    %953 = vector.broadcast %cst_218 : f32 to vector<2x32xf32>
    %954 = arith.addf %953, %952 : vector<2x32xf32>
    %955 = arith.divf %953, %954 : vector<2x32xf32>
    %956 = vector.extract_strided_slice %943 {offsets = [0, 64], sizes = [2, 32], strides = [1, 1]} : vector<2x128xf32> to vector<2x32xf32>
    %957 = math.tanh %956 : vector<2x32xf32>
    %958 = vector.extract_strided_slice %943 {offsets = [0, 96], sizes = [2, 32], strides = [1, 1]} : vector<2x128xf32> to vector<2x32xf32>
    %959 = arith.negf %958 : vector<2x32xf32>
    %960 = math.exp %959 : vector<2x32xf32>
    %cst_219 = arith.constant 1.000000e+00 : f32
    %961 = vector.broadcast %cst_219 : f32 to vector<2x32xf32>
    %962 = arith.addf %961, %960 : vector<2x32xf32>
    %963 = arith.divf %961, %962 : vector<2x32xf32>
    %964 = arith.mulf %955, %906 : vector<2x32xf32>
    %965 = arith.mulf %949, %957 : vector<2x32xf32>
    %966 = arith.addf %964, %965 : vector<2x32xf32>
    %967 = math.tanh %966 : vector<2x32xf32>
    %968 = arith.mulf %963, %967 : vector<2x32xf32>
    %c0_220 = arith.constant 0 : index
    %c0_221 = arith.constant 0 : index
    %969 = vector.load %arg11[%c0_220, %c0_221] : memref<2x32xf32, #tpu.memory_space<vmem>>, vector<2x32xf32>
    tpu.vector_store %arg11[%c0_220, %c0_221], %938 {strides = array<i32>} : memref<2x32xf32, #tpu.memory_space<vmem>>, vector<2x32xf32>,
    %c0_222 = arith.constant 0 : index
    %c0_223 = arith.constant 0 : index
    %970 = vector.load %arg12[%c0_222, %c0_223] : memref<2x32xf32, #tpu.memory_space<vmem>>, vector<2x32xf32>
    tpu.vector_store %arg12[%c0_222, %c0_223], %936 {strides = array<i32>} : memref<2x32xf32, #tpu.memory_space<vmem>>, vector<2x32xf32>,
    %c0_224 = arith.constant 0 : index
    %c0_225 = arith.constant 0 : index
    %971 = vector.load %arg13[%c0_224, %c0_225] : memref<2x32xf32, #tpu.memory_space<vmem>>, vector<2x32xf32>
    tpu.vector_store %arg13[%c0_224, %c0_225], %968 {strides = array<i32>} : memref<2x32xf32, #tpu.memory_space<vmem>>, vector<2x32xf32>,
    %c0_226 = arith.constant 0 : index
    %c0_227 = arith.constant 0 : index
    %972 = vector.load %arg14[%c0_226, %c0_227] : memref<2x32xf32, #tpu.memory_space<vmem>>, vector<2x32xf32>
    tpu.vector_store %arg14[%c0_226, %c0_227], %966 {strides = array<i32>} : memref<2x32xf32, #tpu.memory_space<vmem>>, vector<2x32xf32>,
    %c0_i32_228 = arith.constant 0 : i32
    %973 = arith.cmpi eq, %arg0, %c0_i32_228 : i32
    %974 = arith.extui %973 : i1 to i32
    %c0_i32_229 = arith.constant 0 : i32
    %975 = arith.cmpi ne, %974, %c0_i32_229 : i32
    scf.if %975 {
      %c0_230 = arith.constant 0 : index
      %c0_231 = arith.constant 0 : index
      %976 = vector.load %arg5[%c0_230, %c0_231] : memref<32x32xf32, #tpu.memory_space<vmem>>, vector<32x32xf32>
      %cst_232 = arith.constant dense<0.000000e+00> : vector<2x32xf32>
      %977 = tpu.matmul %938, %976, %cst_232 {dimension_numbers = #tpu.dot_dimension_numbers<[1], [0], [0], [1], [0, 0, 1, 1], [], []>} : vector<2x32xf32>, vector<32x32xf32>, vector<2x32xf32> -> vector<2x32xf32>
      %c0_233 = arith.constant 0 : index
      %c0_234 = arith.constant 0 : index
      %978 = vector.load %arg6[%c0_233, %c0_234] : memref<32x32xf32, #tpu.memory_space<vmem>>, vector<32x32xf32>
      %cst_235 = arith.constant dense<0.000000e+00> : vector<2x32xf32>
      %979 = tpu.matmul %968, %978, %cst_235 {dimension_numbers = #tpu.dot_dimension_numbers<[1], [0], [0], [1], [0, 0, 1, 1], [], []>} : vector<2x32xf32>, vector<32x32xf32>, vector<2x32xf32> -> vector<2x32xf32>
      %980 = arith.addf %977, %979 : vector<2x32xf32>
      %c0_236 = arith.constant 0 : index
      %c0_237 = arith.constant 0 : index
      %981 = vector.load %arg7[%c0_236, %c0_237] : memref<1x32xf32, #tpu.memory_space<vmem>>, vector<1x32xf32>
      %982 = vector.broadcast %981 : vector<1x32xf32> to vector<2x32xf32>
      %983 = arith.addf %980, %982 : vector<2x32xf32>
      %cst_238 = arith.constant 0.000000e+00 : f32
      %984 = vector.broadcast %cst_238 : f32 to vector<2x32xf32>
      %985 = arith.maximumf %983, %984 : vector<2x32xf32>
      %c0_239 = arith.constant 0 : index
      %c0_240 = arith.constant 0 : index
      %986 = vector.load %arg8[%c0_239, %c0_240] : memref<32x128xf32, #tpu.memory_space<vmem>>, vector<32x128xf32>
      %cst_241 = arith.constant dense<0.000000e+00> : vector<2x128xf32>
      %987 = tpu.matmul %985, %986, %cst_241 {dimension_numbers = #tpu.dot_dimension_numbers<[1], [0], [0], [1], [0, 0, 1, 1], [], []>} : vector<2x32xf32>, vector<32x128xf32>, vector<2x128xf32> -> vector<2x128xf32>
      %c0_242 = arith.constant 0 : index
      %c0_243 = arith.constant 0 : index
      %988 = vector.load %arg9[%c0_242, %c0_243] : memref<1x128xf32, #tpu.memory_space<vmem>>, vector<1x128xf32>
      %989 = vector.broadcast %988 : vector<1x128xf32> to vector<2x128xf32>
      %990 = arith.addf %987, %989 : vector<2x128xf32>
      %c0_244 = arith.constant 0 : index
      %c0_245 = arith.constant 0 : index
      %991 = vector.load %arg10[%c0_244, %c0_245] : memref<2x128xf32, #tpu.memory_space<vmem>>, vector<2x128xf32>
      tpu.vector_store %arg10[%c0_244, %c0_245], %990 {strides = array<i32>} : memref<2x128xf32, #tpu.memory_space<vmem>>, vector<2x128xf32>,
    } else {
    }
    return
  }
  func.func @transform_0(%arg0: i32) -> (i32, i32, i32) {
    %c0_i32 = arith.constant 0 : i32
    %c0_i32_0 = arith.constant 0 : i32
    %c0_i32_1 = arith.constant 0 : i32
    return %c0_i32, %arg0, %c0_i32_0 : i32, i32, i32
  }
  func.func @transform_1(%arg0: i32) -> (i32, i32, i32) {
    %c0_i32 = arith.constant 0 : i32
    %0 = arith.subi %c0_i32, %arg0 : i32
    %c0_i32_0 = arith.constant 0 : i32
    %c1_i32 = arith.constant 1 : i32
    %c0_i32_1 = arith.constant 0 : i32
    return %c0_i32_0, %0, %c1_i32 : i32, i32, i32
  }
  func.func @transform_2(%arg0: i32) -> (i32, i32) {
    %c0_i32 = arith.constant 0 : i32
    %c0_i32_0 = arith.constant 0 : i32
    %c0_i32_1 = arith.constant 0 : i32
    return %c0_i32, %c0_i32_0 : i32, i32
  }
  func.func @transform_3(%arg0: i32) -> (i32, i32) {
    %c0_i32 = arith.constant 0 : i32
    %c0_i32_0 = arith.constant 0 : i32
    %c0_i32_1 = arith.constant 0 : i32
    return %c0_i32, %c0_i32_0 : i32, i32
  }
  func.func @transform_4(%arg0: i32) -> (i32, i32) {
    %c0_i32 = arith.constant 0 : i32
    %c0_i32_0 = arith.constant 0 : i32
    %c0_i32_1 = arith.constant 0 : i32
    return %c0_i32, %c0_i32_0 : i32, i32
  }
  func.func @transform_5(%arg0: i32) -> (i32, i32) {
    %c0_i32 = arith.constant 0 : i32
    %c0_i32_0 = arith.constant 0 : i32
    %c0_i32_1 = arith.constant 0 : i32
    return %c0_i32, %c0_i32_0 : i32, i32
  }
  func.func @transform_6(%arg0: i32) -> (i32, i32) {
    %c0_i32 = arith.constant 0 : i32
    %c0_i32_0 = arith.constant 0 : i32
    %c0_i32_1 = arith.constant 0 : i32
    return %c0_i32, %c0_i32_0 : i32, i32
  }
  func.func @transform_7(%arg0: i32) -> (i32, i32) {
    %c0_i32 = arith.constant 0 : i32
    %c0_i32_0 = arith.constant 0 : i32
    %c0_i32_1 = arith.constant 0 : i32
    return %c0_i32, %c0_i32_0 : i32, i32
  }
  func.func @transform_8(%arg0: i32) -> (i32, i32) {
    %c0_i32 = arith.constant 0 : i32
    %c0_i32_0 = arith.constant 0 : i32
    %c0_i32_1 = arith.constant 0 : i32
    return %c0_i32, %c0_i32_0 : i32, i32
  }
  func.func @transform_9(%arg0: i32) -> (i32, i32) {
    %c0_i32 = arith.constant 0 : i32
    %c0_i32_0 = arith.constant 0 : i32
    %c0_i32_1 = arith.constant 0 : i32
    return %c0_i32, %c0_i32_0 : i32, i32
  }
}

</mosaic_0001>

<bundles_post_ra>
// kernel: birnn_forward.2
= control target key start
LH: loop header
LB: loop body
LE: loop exit
PB: predicated region body
PF: predicated region fallthrough
CT: control target
= control target key end

     0   :  { %8 = vsyncpa [#allocation3], 0  ;;  %s1491_s0 = inlined_call_operand.hbm [shape: f32[16,1024], index: 0, kind: input, shape index: {}]   ;;  %s1492_s1 = inlined_call_operand.hbm [shape: bf16[1024,256], index: 1, kind: input, shape index: {}]   ;;  %s1493_s2 = inlined_call_operand.vmem [shape: f32[1,256], index: 2, kind: input, shape index: {}]   ;;  %s1494_s3 = inlined_call_operand.vmem [shape: bf16[16,256], index: 3, kind: output, shape index: {}]  }
   0x1   :  { %9 = vsyncpa [#allocation5], 0  ;;  %s1432_s12 = smov [#allocation2]   ;;  %s1384_s16 = scalar_lea.hbm %s1491_s0, 2048 }
   0x2   :  { %s15_s13 = sshll.u32 %s1432_s12, 4  ;;  %p1385_p0 = scmp.ne.s32.totalorder %s1491_s0, %s1384_s16  ;;  %s16_s13 = int_to_ptr.vmem [resolvable:$true] %s15_s13 }
   0x3   :  { %p1388_p1 = scmp.lt.u32.totalorder %s1384_s16, %s1491_s0 }
   0x5   :  { %p1390_p2 = pnand %p1388_p1, %p1385_p0 }
   0x7   :  { %1393 = shalt.err (!%p1390_p2)
}
   0x8   :  { %s1394_s21 = scalar_lea.vmem %s16_s13, 2048  ;;  %p1399_p4 = scmp.lt.s32.totalorder %s16_s13, %s16_s13 }
   0x9   :  { %p1395_p3 = scmp.ne.s32.totalorder %s16_s13, %s1394_s21  ;;  %p1400_p5 = scmp.lt.s32.totalorder %s1394_s21, %s1394_s21 }
   0xb   :  { %p1401_p6 = por %p1400_p5, %p1399_p4 }
   0xd   :  { %p1402_p7 = pnand %p1401_p6, %p1395_p3 }
   0xf   :  { %1405 = shalt.err (!%p1402_p7)
}
  0x10   :  { %s1433_s22 = smov 1024   ;;  %s1434_s23 = smov 64  }
  0x11   :  { %21 = dma.hbm_to_vmem [thread:$0]  %s1491_s0, 2048, %s16_s13, [#allocation3], %s1433_s22, %s1433_s22, %s1434_s23  }
  0x12   :  { %s1435_s26 = smov [#allocation4]   ;;  %s1406_s30 = scalar_lea.hbm %s1492_s1, 16384 }
  0x13   :  { %s27_s27 = sshll.u32 %s1435_s26, 4  ;;  %p1407_p8 = scmp.ne.s32.totalorder %s1492_s1, %s1406_s30  ;;  %s28_s27 = int_to_ptr.vmem [resolvable:$true] %s27_s27 }
  0x14   :  { %p1410_p9 = scmp.lt.u32.totalorder %s1406_s30, %s1492_s1 }
  0x16   :  { %p1412_p10 = pnand %p1410_p9, %p1407_p8 }
  0x18   :  { %1415 = shalt.err (!%p1412_p10)
}
  0x19   :  { %s1416_s8 = scalar_lea.vmem %s28_s27, 16384  ;;  %p1421_p12 = scmp.lt.s32.totalorder %s28_s27, %s28_s27 }
  0x1a   :  { %p1417_p11 = scmp.ne.s32.totalorder %s28_s27, %s1416_s8  ;;  %p1422_p13 = scmp.lt.s32.totalorder %s1416_s8, %s1416_s8 }
  0x1c   :  { %p1423_p0 = por %p1422_p13, %p1421_p12 }
  0x1e   :  { %p1424_p1 = pnand %p1423_p0, %p1417_p11 }
  0x20   :  { %1427 = shalt.err (!%p1424_p1)
}
  0x21   :  { %s1436_s0 = smov 128   ;;  %s1437_s9 = smov 8  }
  0x22   :  { %33 = dma.hbm_to_vmem [thread:$0]  %s1492_s1, 16384, %s28_s27, [#allocation5], %s1436_s0, %s1436_s0, %s1437_s9  }
  0x23   :  { %1428 = dma.done.wait [#allocation3], 2048  }
  0x24   :  { %1429 = vsyncadd [#allocation3], 4294965248 }
  0x25   :  { %1430 = dma.done.wait [#allocation5], 16384  }
  0x26   :  { %1431 = vsyncadd [#allocation5], 4294950912  ;;  %v1192_v0 = vld [vmem:[#allocation4 + $0x4] ss:$8 sps:$4 sm:$0xff]   ;;  %v1196_v2 = vld [vmem:[#allocation4] ss:$8 sps:$4 sm:$0xff]  }
  0x27   :  { %v1194_v1 = vld [vmem:[#allocation4 + $0x204] ss:$8 sps:$4 sm:$0xff]   ;;  %846 = vmatprep.subr.bf16.mxu1 %v1192_v0  ;;  %v1197_v3 = vld [vmem:[#allocation4 + $0x200] ss:$8 sps:$4 sm:$0xff]   ;;  %v1198_v4 = vld [vmem:[#allocation4 + $0x14] ss:$8 sps:$4 sm:$0xff]  }
  0x28   :  { %932 = vmatprep.subr.bf16.mxu0 %v1194_v1  ;;  %847 = vmatpush1.bf16.msra.mxu1 %v1196_v2  ;;  %v1200_v5 = vld [vmem:[#allocation4 + $0x214] ss:$8 sps:$4 sm:$0xff]   ;;  %v1202_v6 = vld [vmem:[#allocation4 + $0x10] ss:$8 sps:$4 sm:$0xff]   ;;  %v1204_v8 = vld [vmem:[#allocation4 + $0x24] ss:$8 sps:$4 sm:$0xff]  }
  0x29   :  { %933 = vmatpush1.bf16.msra.mxu0 %v1197_v3  ;;  %848 = vmatprep.subr.bf16.mxu1 %v1198_v4  ;;  %v1203_v7 = vld [vmem:[#allocation4 + $0x210] ss:$8 sps:$4 sm:$0xff]   ;;  %v1206_v9 = vld [vmem:[#allocation4 + $0x224] ss:$8 sps:$4 sm:$0xff]   ;;  %v1208_v10 = vld [vmem:[#allocation4 + $0x20] ss:$8 sps:$4 sm:$0xff]  }
  0x2a   :  { %934 = vmatprep.subr.bf16.mxu0 %v1200_v5  ;;  %v1209_v11 = vld [vmem:[#allocation4 + $0x220] ss:$8 sps:$4 sm:$0xff]   ;;  %v1210_v12 = vld [vmem:[#allocation4 + $0x34] ss:$8 sps:$4 sm:$0xff]   ;;  %v1214_v14 = vld [vmem:[#allocation4 + $0x30] ss:$8 sps:$4 sm:$0xff]  }
  0x2b   :  { %v1212_v13 = vld [vmem:[#allocation4 + $0x234] ss:$8 sps:$4 sm:$0xff]   ;;  %v1215_v15 = vld [vmem:[#allocation4 + $0x230] ss:$8 sps:$4 sm:$0xff]   ;;  %v1216_v16 = vld [vmem:[#allocation4 + $0x44] ss:$8 sps:$4 sm:$0xff]  }
  0x2c   :  { %849 = vmatpush1.bf16.msra.mxu1 %v1202_v6  ;;  %v1218_v17 = vld [vmem:[#allocation4 + $0x244] ss:$8 sps:$4 sm:$0xff]   ;;  %v1220_v18 = vld [vmem:[#allocation4 + $0x40] ss:$8 sps:$4 sm:$0xff]   ;;  %v1222_v20 = vld [vmem:[#allocation4 + $0x54] ss:$8 sps:$4 sm:$0xff]  }
  0x2d   :  { %935 = vmatpush1.bf16.msra.mxu0 %v1203_v7  ;;  %850 = vmatprep.subr.bf16.mxu1 %v1204_v8  ;;  %v1221_v19 = vld [vmem:[#allocation4 + $0x240] ss:$8 sps:$4 sm:$0xff]   ;;  %v1224_v21 = vld [vmem:[#allocation4 + $0x254] ss:$8 sps:$4 sm:$0xff]   ;;  %v1226_v22 = vld [vmem:[#allocation4 + $0x50] ss:$8 sps:$4 sm:$0xff]  }
  0x2e   :  { %936 = vmatprep.subr.bf16.mxu0 %v1206_v9  ;;  %v1227_v23 = vld [vmem:[#allocation4 + $0x250] ss:$8 sps:$4 sm:$0xff]   ;;  %v1228_v24 = vld [vmem:[#allocation4 + $0x64] ss:$8 sps:$4 sm:$0xff]   ;;  %v1232_v26 = vld [vmem:[#allocation4 + $0x60] ss:$8 sps:$4 sm:$0xff]  }
  0x2f   :  { %v1230_v25 = vld [vmem:[#allocation4 + $0x264] ss:$8 sps:$4 sm:$0xff]   ;;  %v1233_v27 = vld [vmem:[#allocation4 + $0x260] ss:$8 sps:$4 sm:$0xff]   ;;  %v1234_v28 = vld [vmem:[#allocation4 + $0x74] ss:$8 sps:$4 sm:$0xff]  }
  0x30   :  { %851 = vmatpush1.bf16.msra.mxu1 %v1208_v10  ;;  %v1236_v29 = vld [vmem:[#allocation4 + $0x274] ss:$8 sps:$4 sm:$0xff]   ;;  %v1238_v30 = vld [vmem:[#allocation4 + $0x70] ss:$8 sps:$4 sm:$0xff]   ;;  %v1240_v32 = vld [vmem:[#allocation4 + $0x84] ss:$8 sps:$4 sm:$0xff]  }
  0x31   :  { %937 = vmatpush1.bf16.msra.mxu0 %v1209_v11  ;;  %852 = vmatprep.subr.bf16.mxu1 %v1210_v12  ;;  %v1239_v31 = vld [vmem:[#allocation4 + $0x270] ss:$8 sps:$4 sm:$0xff]   ;;  %v1242_v33 = vld [vmem:[#allocation4 + $0x284] ss:$8 sps:$4 sm:$0xff]   ;;  %v1244_v34 = vld [vmem:[#allocation4 + $0x80] ss:$8 sps:$4 sm:$0xff]  }
  0x32   :  { %938 = vmatprep.subr.bf16.mxu0 %v1212_v13  ;;  %v1245_v35 = vld [vmem:[#allocation4 + $0x280] ss:$8 sps:$4 sm:$0xff]   ;;  %v1246_v36 = vld [vmem:[#allocation4 + $0x94] ss:$8 sps:$4 sm:$0xff]   ;;  %v1250_v38 = vld [vmem:[#allocation4 + $0x90] ss:$8 sps:$4 sm:$0xff]  }
  0x33   :  { %v1248_v37 = vld [vmem:[#allocation4 + $0x294] ss:$8 sps:$4 sm:$0xff]   ;;  %v1251_v39 = vld [vmem:[#allocation4 + $0x290] ss:$8 sps:$4 sm:$0xff]   ;;  %v1252_v40 = vld [vmem:[#allocation4 + $0xa4] ss:$8 sps:$4 sm:$0xff]  }
  0x34   :  { %853 = vmatpush1.bf16.msra.mxu1 %v1214_v14  ;;  %v1254_v41 = vld [vmem:[#allocation4 + $0x2a4] ss:$8 sps:$4 sm:$0xff]   ;;  %v1256_v42 = vld [vmem:[#allocation4 + $0xa0] ss:$8 sps:$4 sm:$0xff]   ;;  %v1258_v44 = vld [vmem:[#allocation4 + $0xb4] ss:$8 sps:$4 sm:$0xff]  }
  0x35   :  { %939 = vmatpush1.bf16.msra.mxu0 %v1215_v15  ;;  %854 = vmatprep.subr.bf16.mxu1 %v1216_v16  ;;  %v1257_v43 = vld [vmem:[#allocation4 + $0x2a0] ss:$8 sps:$4 sm:$0xff]   ;;  %v1260_v45 = vld [vmem:[#allocation4 + $0x2b4] ss:$8 sps:$4 sm:$0xff]   ;;  %v1262_v46 = vld [vmem:[#allocation4 + $0xb0] ss:$8 sps:$4 sm:$0xff]  }
  0x36   :  { %940 = vmatprep.subr.bf16.mxu0 %v1218_v17  ;;  %v1263_v47 = vld [vmem:[#allocation4 + $0x2b0] ss:$8 sps:$4 sm:$0xff]   ;;  %v43_v48 = vld [vmem:[#allocation2 + $0x8] sm:$0xff]  ;;  %v1270_v58 = vld [vmem:[#allocation4 + $0xd4] ss:$8 sps:$4 sm:$0xff]  }
  0x37   :  { %v51_v49 = vld [vmem:[#allocation2 + $0x48] sm:$0xff]  ;;  %v1272_v59 = vld [vmem:[#allocation4 + $0x2d4] ss:$8 sps:$4 sm:$0xff]   ;;  %v1274_v60 = vld [vmem:[#allocation4 + $0xd0] ss:$8 sps:$4 sm:$0xff]  }
  0x38   :  { %855 = vmatpush1.bf16.msra.mxu1 %v1220_v18  ;;  %v1264_v50 = vld [vmem:[#allocation4 + $0xc4] ss:$8 sps:$4 sm:$0xff]   ;;  %v59_v52 = vpack.c.bf16 %v51_v49, %v43_v48  ;;  %v1268_v56 = vld [vmem:[#allocation4 + $0xc0] ss:$8 sps:$4 sm:$0xff]   ;;  %v1275_v61 = vld [vmem:[#allocation4 + $0x2d0] ss:$8 sps:$4 sm:$0xff]  }
  0x39   :  { %941 = vmatpush1.bf16.msra.mxu0 %v1221_v19  ;;  %856 = vmatprep.subr.bf16.mxu1 %v1222_v20  ;;  %v1266_v51 = vld [vmem:[#allocation4 + $0x2c4] ss:$8 sps:$4 sm:$0xff]   ;;  %v1269_v57 = vld [vmem:[#allocation4 + $0x2c0] ss:$8 sps:$4 sm:$0xff]   ;;  %v1282_v2 = vld [vmem:[#allocation4 + $0xf4] ss:$8 sps:$4 sm:$0xff]  }
  0x3a   :  { %942 = vmatprep.subr.bf16.mxu0 %v1224_v21  ;;  %v47_v53 = vld [vmem:[#allocation2 + $0x28] sm:$0xff]  ;;  %878 = vmatprep.mubr.bf16.mxu1 %v59_v52  ;;  %v1284_v3 = vld [vmem:[#allocation4 + $0x2f4] ss:$8 sps:$4 sm:$0xff]   ;;  %v1286_v4 = vld [vmem:[#allocation4 + $0xf0] ss:$8 sps:$4 sm:$0xff]  }
  0x3b   :  { %v55_v54 = vld [vmem:[#allocation2 + $0x68] sm:$0xff]  ;;  %v1287_v5 = vld [vmem:[#allocation4 + $0x2f0] ss:$8 sps:$4 sm:$0xff]   ;;  %v42_v6 = vld [vmem:[#allocation2] sm:$0xff] }
  0x3c   :  { %857 = vmatpush1.bf16.msra.mxu1 %v1226_v22  ;;  %v63_v55 = vpack.c.bf16 %v55_v54, %v47_v53  ;;  %v1276_v62 = vld [vmem:[#allocation4 + $0xe4] ss:$8 sps:$4 sm:$0xff]   ;;  %v1280_v0 = vld [vmem:[#allocation4 + $0xe0] ss:$8 sps:$4 sm:$0xff]   ;;  %v1296_v16 = vld [vmem:[#allocation4 + $0x114] ss:$8 sps:$4 sm:$0xff]  }
  0x3d   :  { %943 = vmatpush1.bf16.msra.mxu0 %v1227_v23  ;;  %858 = vmatprep.subr.bf16.mxu1 %v1228_v24  ;;  %v1278_v63 = vld [vmem:[#allocation4 + $0x2e4] ss:$8 sps:$4 sm:$0xff]   ;;  %v1281_v1 = vld [vmem:[#allocation4 + $0x2e0] ss:$8 sps:$4 sm:$0xff]   ;;  %v1299_v17 = vld [vmem:[#allocation4 + $0x314] ss:$8 sps:$4 sm:$0xff]  }
  0x3e   :  { %944 = vmatprep.subr.bf16.mxu0 %v1230_v25  ;;  %964 = vmatprep.mubr.bf16.mxu0 %v63_v55  ;;  %v1290_v7 = vld [vmem:[#allocation4 + $0x104] ss:$8 sps:$4 sm:$0xff]   ;;  %v1288_v12 = vld [vmem:[#allocation4 + $0x100] ss:$8 sps:$4 sm:$0xff]   ;;  %v1294_v18 = vld [vmem:[#allocation4 + $0x110] ss:$8 sps:$4 sm:$0xff]  }
  0x3f   :  { %v50_v8 = vld [vmem:[#allocation2 + $0x40] sm:$0xff]  ;;  %v1297_v19 = vld [vmem:[#allocation4 + $0x310] ss:$8 sps:$4 sm:$0xff]   ;;  %v1308_v24 = vld [vmem:[#allocation4 + $0x134] ss:$8 sps:$4 sm:$0xff]  }
  0x40   :  { %859 = vmatpush1.bf16.msra.mxu1 %v1232_v26  ;;  %v46_v9 = vld [vmem:[#allocation2 + $0x20] sm:$0xff]  ;;  %v58_v14 = vpack.c.bf16 %v50_v8, %v42_v6  ;;  %v1311_v25 = vld [vmem:[#allocation4 + $0x334] ss:$8 sps:$4 sm:$0xff]   ;;  %v1306_v26 = vld [vmem:[#allocation4 + $0x130] ss:$8 sps:$4 sm:$0xff]  }
  0x41   :  { %945 = vmatpush1.bf16.msra.mxu0 %v1233_v27  ;;  %860 = vmatprep.subr.bf16.mxu1 %v1234_v28  ;;  %v54_v10 = vld [vmem:[#allocation2 + $0x60] sm:$0xff]  ;;  %v1309_v27 = vld [vmem:[#allocation4 + $0x330] ss:$8 sps:$4 sm:$0xff]   ;;  %v1344_v54 = vld [vmem:[#allocation4 + $0x194] ss:$8 sps:$4 sm:$0xff]  }
  0x42   :  { %946 = vmatprep.subr.bf16.mxu0 %v1236_v29  ;;  %v1293_v11 = vld [vmem:[#allocation4 + $0x304] ss:$8 sps:$4 sm:$0xff]   ;;  %v1291_v13 = vld [vmem:[#allocation4 + $0x300] ss:$8 sps:$4 sm:$0xff]   ;;  %v62_v15 = vpack.c.bf16 %v54_v10, %v46_v9  ;;  %v1330_v48 = vld [vmem:[#allocation4 + $0x170] ss:$8 sps:$4 sm:$0xff]  }
  0x43   :  { %v1302_v20 = vld [vmem:[#allocation4 + $0x124] ss:$8 sps:$4 sm:$0xff]   ;;  %v1300_v22 = vld [vmem:[#allocation4 + $0x120] ss:$8 sps:$4 sm:$0xff]   ;;  %v1333_v49 = vld [vmem:[#allocation4 + $0x370] ss:$8 sps:$4 sm:$0xff]  }
  0x44   :  { %861 = vmatpush1.bf16.msra.mxu1 %v1238_v30  ;;  %v1305_v21 = vld [vmem:[#allocation4 + $0x324] ss:$8 sps:$4 sm:$0xff]   ;;  %v1303_v23 = vld [vmem:[#allocation4 + $0x320] ss:$8 sps:$4 sm:$0xff]   ;;  %v1347_v55 = vld [vmem:[#allocation4 + $0x394] ss:$8 sps:$4 sm:$0xff]  }
  0x45   :  { %947 = vmatpush1.bf16.msra.mxu0 %v1239_v31  ;;  %862 = vmatprep.subr.bf16.mxu1 %v1240_v32  ;;  %v1314_v28 = vld [vmem:[#allocation4 + $0x144] ss:$8 sps:$4 sm:$0xff]   ;;  %v1312_v30 = vld [vmem:[#allocation4 + $0x140] ss:$8 sps:$4 sm:$0xff]   ;;  %v1320_v32 = vld [vmem:[#allocation4 + $0x154] ss:$8 sps:$4 sm:$0xff]  }
  0x46   :  { %948 = vmatprep.subr.bf16.mxu0 %v1242_v33  ;;  %v1317_v29 = vld [vmem:[#allocation4 + $0x344] ss:$8 sps:$4 sm:$0xff]   ;;  %v1315_v31 = vld [vmem:[#allocation4 + $0x340] ss:$8 sps:$4 sm:$0xff]   ;;  %v1323_v33 = vld [vmem:[#allocation4 + $0x354] ss:$8 sps:$4 sm:$0xff]  }
  0x47   :  { %v1336_v52 = vld [vmem:[#allocation4 + $0x180] ss:$8 sps:$4 sm:$0xff]   ;;  %v1368_v6 = vld [vmem:[#allocation4 + $0x1d4] ss:$8 sps:$4 sm:$0xff]   ;;  %v1366_v8 = vld [vmem:[#allocation4 + $0x1d0] ss:$8 sps:$4 sm:$0xff]  }
  0x48   :  { %863 = vmatpush1.bf16.msra.mxu1 %v1244_v34  ;;  %v1318_v34 = vld [vmem:[#allocation4 + $0x150] ss:$8 sps:$4 sm:$0xff]   ;;  %v1339_v53 = vld [vmem:[#allocation4 + $0x380] ss:$8 sps:$4 sm:$0xff]   ;;  %v1374_v10 = vld [vmem:[#allocation4 + $0x1e4] ss:$8 sps:$4 sm:$0xff]  }
  0x49   :  { %949 = vmatpush1.bf16.msra.mxu0 %v1245_v35  ;;  %864 = vmatprep.subr.bf16.mxu1 %v1246_v36  ;;  %v1321_v35 = vld [vmem:[#allocation4 + $0x350] ss:$8 sps:$4 sm:$0xff]   ;;  %v1326_v36 = vld [vmem:[#allocation4 + $0x164] ss:$8 sps:$4 sm:$0xff]  }
  0x4a   :  { %950 = vmatprep.subr.bf16.mxu0 %v1248_v37  ;;  %v1329_v37 = vld [vmem:[#allocation4 + $0x364] ss:$8 sps:$4 sm:$0xff]   ;;  %v1369_v9 = vld [vmem:[#allocation4 + $0x3d0] ss:$8 sps:$4 sm:$0xff]  }
  0x4c   :  { %865 = vmatpush1.bf16.msra.mxu1 %v1250_v38  ;;  %v1324_v38 = vld [vmem:[#allocation4 + $0x160] ss:$8 sps:$4 sm:$0xff]  }
  0x4d   :  { %951 = vmatpush1.bf16.msra.mxu0 %v1251_v39  ;;  %866 = vmatprep.subr.bf16.mxu1 %v1252_v40  ;;  %v1327_v39 = vld [vmem:[#allocation4 + $0x360] ss:$8 sps:$4 sm:$0xff]   ;;  %v45_v40 = vld [vmem:[#allocation2 + $0x18] sm:$0xff] }
  0x4e   :  { %952 = vmatprep.subr.bf16.mxu0 %v1254_v41  ;;  %v53_v41 = vld [vmem:[#allocation2 + $0x58] sm:$0xff] }
  0x50   :  { %867 = vmatpush1.bf16.msra.mxu1 %v1256_v42  ;;  %v49_v42 = vld [vmem:[#allocation2 + $0x38] sm:$0xff] }
  0x51   :  { %953 = vmatpush1.bf16.msra.mxu0 %v1257_v43  ;;  %868 = vmatprep.subr.bf16.mxu1 %v1258_v44  ;;  %v1332_v43 = vld [vmem:[#allocation4 + $0x174] ss:$8 sps:$4 sm:$0xff]  }
  0x52   :  { %954 = vmatprep.subr.bf16.mxu0 %v1260_v45  ;;  %v1335_v44 = vld [vmem:[#allocation4 + $0x374] ss:$8 sps:$4 sm:$0xff]   ;;  %v61_v45 = vpack.c.bf16 %v53_v41, %v45_v40 }
  0x54   :  { %869 = vmatpush1.bf16.msra.mxu1 %v1262_v46  ;;  %v57_v46 = vld [vmem:[#allocation2 + $0x78] sm:$0xff] }
  0x55   :  { %955 = vmatpush1.bf16.msra.mxu0 %v1263_v47  ;;  %870 = vmatprep.subr.bf16.mxu1 %v1264_v50  ;;  %v65_v47 = vpack.c.bf16 %v57_v46, %v49_v42  ;;  %v1338_v50 = vld [vmem:[#allocation4 + $0x184] ss:$8 sps:$4 sm:$0xff]  }
  0x56   :  { %956 = vmatprep.subr.bf16.mxu0 %v1266_v51  ;;  %v1341_v51 = vld [vmem:[#allocation4 + $0x384] ss:$8 sps:$4 sm:$0xff]  }
  0x58   :  { %871 = vmatpush1.bf16.msra.mxu1 %v1268_v56  ;;  %v1342_v56 = vld [vmem:[#allocation4 + $0x190] ss:$8 sps:$4 sm:$0xff]  }
  0x59   :  { %957 = vmatpush1.bf16.msra.mxu0 %v1269_v57  ;;  %872 = vmatprep.subr.bf16.mxu1 %v1270_v58  ;;  %v1345_v57 = vld [vmem:[#allocation4 + $0x390] ss:$8 sps:$4 sm:$0xff]   ;;  %v1350_v58 = vld [vmem:[#allocation4 + $0x1a4] ss:$8 sps:$4 sm:$0xff]  }
  0x5a   :  { %958 = vmatprep.subr.bf16.mxu0 %v1272_v59  ;;  %v1353_v59 = vld [vmem:[#allocation4 + $0x3a4] ss:$8 sps:$4 sm:$0xff]  }
  0x5c   :  { %873 = vmatpush1.bf16.msra.mxu1 %v1274_v60  ;;  %v1348_v60 = vld [vmem:[#allocation4 + $0x1a0] ss:$8 sps:$4 sm:$0xff]  }
  0x5d   :  { %959 = vmatpush1.bf16.msra.mxu0 %v1275_v61  ;;  %874 = vmatprep.subr.bf16.mxu1 %v1276_v62  ;;  %v1351_v61 = vld [vmem:[#allocation4 + $0x3a0] ss:$8 sps:$4 sm:$0xff]   ;;  %v1356_v62 = vld [vmem:[#allocation4 + $0x1b4] ss:$8 sps:$4 sm:$0xff]  }
  0x5e   :  { %960 = vmatprep.subr.bf16.mxu0 %v1278_v63  ;;  %v1359_v63 = vld [vmem:[#allocation4 + $0x3b4] ss:$8 sps:$4 sm:$0xff]  }
  0x60   :  { %875 = vmatpush1.bf16.msra.mxu1 %v1280_v0  ;;  %v1354_v0 = vld [vmem:[#allocation4 + $0x1b0] ss:$8 sps:$4 sm:$0xff]  }
  0x61   :  { %961 = vmatpush1.bf16.msra.mxu0 %v1281_v1  ;;  %876 = vmatprep.subr.bf16.mxu1 %v1282_v2  ;;  %v1357_v1 = vld [vmem:[#allocation4 + $0x3b0] ss:$8 sps:$4 sm:$0xff]   ;;  %v1362_v2 = vld [vmem:[#allocation4 + $0x1c4] ss:$8 sps:$4 sm:$0xff]  }
  0x62   :  { %962 = vmatprep.subr.bf16.mxu0 %v1284_v3  ;;  %v1365_v3 = vld [vmem:[#allocation4 + $0x3c4] ss:$8 sps:$4 sm:$0xff]  }
  0x64   :  { %877 = vmatpush1.bf16.msra.mxu1 %v1286_v4  ;;  %v1360_v4 = vld [vmem:[#allocation4 + $0x1c0] ss:$8 sps:$4 sm:$0xff]  }
  0x65   :  { %963 = vmatpush1.bf16.msra.mxu0 %v1287_v5  ;;  %889 = vmatprep.subr.bf16.mxu1 %v1290_v7  ;;  %v1363_v5 = vld [vmem:[#allocation4 + $0x3c0] ss:$8 sps:$4 sm:$0xff]   ;;  %v1371_v7 = vld [vmem:[#allocation4 + $0x3d4] ss:$8 sps:$4 sm:$0xff]  }
  0x66   :  { %975 = vmatprep.subr.bf16.mxu0 %v1293_v11  ;;  %v1377_v11 = vld [vmem:[#allocation4 + $0x3e4] ss:$8 sps:$4 sm:$0xff]  }
  0x67   :  { %879 = vmatmul.mubr.bf16.vlgmr.msra.gmra.mrb[0].mxu1 %v58_v14  ;;  %v1380_v14 = vld [vmem:[#allocation4 + $0x1f4] ss:$8 sps:$4 sm:$0xff]  }
  0x68   :  { %965 = vmatmul.mubr.bf16.vlgmr.msra.gmra.mrb[0].mxu0 %v62_v15  ;;  %890 = vmatpush1.bf16.msra.mxu1 %v1288_v12  ;;  %v1372_v12 = vld [vmem:[#allocation4 + $0x1e0] ss:$8 sps:$4 sm:$0xff]   ;;  %v1383_v15 = vld [vmem:[#allocation4 + $0x3f4] ss:$8 sps:$4 sm:$0xff]  }
  0x69   :  { %976 = vmatpush1.bf16.msra.mxu0 %v1291_v13  ;;  %891 = vmatprep.subr.bf16.mxu1 %v1296_v16  ;;  %v1375_v13 = vld [vmem:[#allocation4 + $0x3e0] ss:$8 sps:$4 sm:$0xff]   ;;  %v1378_v16 = vld [vmem:[#allocation4 + $0x1f0] ss:$8 sps:$4 sm:$0xff]  }
  0x6a   :  { %977 = vmatprep.subr.bf16.mxu0 %v1299_v17  ;;  %921 = vmatprep.mubr.bf16.mxu1 %v61_v45  ;;  %v1381_v17 = vld [vmem:[#allocation4 + $0x3f0] ss:$8 sps:$4 sm:$0xff]  }
  0x6b   :  { %1007 = vmatprep.mubr.bf16.mxu0 %v65_v47 }
  0x6c   :  { %892 = vmatpush1.bf16.msra.mxu1 %v1294_v18  ;;  %v44_v18 = vld [vmem:[#allocation2 + $0x10] sm:$0xff] }
  0x6d   :  { %978 = vmatpush1.bf16.msra.mxu0 %v1297_v19  ;;  %893 = vmatprep.subr.bf16.mxu1 %v1302_v20  ;;  %v52_v19 = vld [vmem:[#allocation2 + $0x50] sm:$0xff] }
  0x6e   :  { %979 = vmatprep.subr.bf16.mxu0 %v1305_v21  ;;  %v48_v20 = vld [vmem:[#allocation2 + $0x30] sm:$0xff] }
  0x6f   :  { %v56_v21 = vld [vmem:[#allocation2 + $0x70] sm:$0xff] }
  0x70   :  { %894 = vmatpush1.bf16.msra.mxu1 %v1300_v22  ;;  %v60_v22 = vpack.c.bf16 %v52_v19, %v44_v18 }
  0x71   :  { %980 = vmatpush1.bf16.msra.mxu0 %v1303_v23  ;;  %895 = vmatprep.subr.bf16.mxu1 %v1308_v24  ;;  %v64_v23 = vpack.c.bf16 %v56_v21, %v48_v20  ;;  %v196_v24 = vlaneseq }
  0x72   :  { %981 = vmatprep.subr.bf16.mxu0 %v1311_v25 }
  0x73   :  { %v197_v25 = vshrl.u32 %v196_v24, 7 }
  0x74   :  { %896 = vmatpush1.bf16.msra.mxu1 %v1306_v26 }
  0x75   :  { %982 = vmatpush1.bf16.msra.mxu0 %v1309_v27  ;;  %897 = vmatprep.subr.bf16.mxu1 %v1314_v28  ;;  %v198_v26 = vsub.s32 0, %v197_v25  ;;  %v194_v27 = vld [vmem:[%s1493_s2] sm:$0x3]  ;;  %v202_v28 = vsub.s32 1, %v197_v25 }
  0x76   :  { %983 = vmatprep.subr.bf16.mxu0 %v1317_v29 }
  0x77   :  { %v199_v29 = vrot.slane %v194_v27, %v198_v26 }
  0x78   :  { %898 = vmatpush1.bf16.msra.mxu1 %v1312_v30  ;;  %v203_v30 = vrot.slane %v194_v27, %v202_v28 }
  0x79   :  { %984 = vmatpush1.bf16.msra.mxu0 %v1315_v31  ;;  %899 = vmatprep.subr.bf16.mxu1 %v1320_v32 }
  0x7a   :  { %985 = vmatprep.subr.bf16.mxu0 %v1323_v33 }
  0x7c   :  { %900 = vmatpush1.bf16.msra.mxu1 %v1318_v34 }
  0x7d   :  { %986 = vmatpush1.bf16.msra.mxu0 %v1321_v35  ;;  %901 = vmatprep.subr.bf16.mxu1 %v1326_v36 }
  0x7e   :  { %987 = vmatprep.subr.bf16.mxu0 %v1329_v37 }
  0x80   :  { %902 = vmatpush1.bf16.msra.mxu1 %v1324_v38 }
  0x81   :  { %988 = vmatpush1.bf16.msra.mxu0 %v1327_v39  ;;  %903 = vmatprep.subr.bf16.mxu1 %v1332_v43 }
  0x82   :  { %989 = vmatprep.subr.bf16.mxu0 %v1335_v44 }
  0x84   :  { %904 = vmatpush1.bf16.msra.mxu1 %v1330_v48 }
  0x85   :  { %990 = vmatpush1.bf16.msra.mxu0 %v1333_v49  ;;  %905 = vmatprep.subr.bf16.mxu1 %v1338_v50 }
  0x86   :  { %991 = vmatprep.subr.bf16.mxu0 %v1341_v51 }
  0x88   :  { %906 = vmatpush1.bf16.msra.mxu1 %v1336_v52 }
  0x89   :  { %992 = vmatpush1.bf16.msra.mxu0 %v1339_v53  ;;  %907 = vmatprep.subr.bf16.mxu1 %v1344_v54 }
  0x8a   :  { %993 = vmatprep.subr.bf16.mxu0 %v1347_v55 }
  0x8c   :  { %908 = vmatpush1.bf16.msra.mxu1 %v1342_v56 }
  0x8d   :  { %994 = vmatpush1.bf16.msra.mxu0 %v1345_v57  ;;  %909 = vmatprep.subr.bf16.mxu1 %v1350_v58 }
  0x8e   :  { %995 = vmatprep.subr.bf16.mxu0 %v1353_v59 }
  0x90   :  { %910 = vmatpush1.bf16.msra.mxu1 %v1348_v60 }
  0x91   :  { %996 = vmatpush1.bf16.msra.mxu0 %v1351_v61  ;;  %911 = vmatprep.subr.bf16.mxu1 %v1356_v62 }
  0x92   :  { %997 = vmatprep.subr.bf16.mxu0 %v1359_v63 }
  0x94   :  { %912 = vmatpush1.bf16.msra.mxu1 %v1354_v0 }
  0x95   :  { %998 = vmatpush1.bf16.msra.mxu0 %v1357_v1  ;;  %913 = vmatprep.subr.bf16.mxu1 %v1362_v2 }
  0x96   :  { %999 = vmatprep.subr.bf16.mxu0 %v1365_v3 }
  0x98   :  { %914 = vmatpush1.bf16.msra.mxu1 %v1360_v4 }
  0x99   :  { %1000 = vmatpush1.bf16.msra.mxu0 %v1363_v5  ;;  %915 = vmatprep.subr.bf16.mxu1 %v1368_v6 }
  0x9a   :  { %1001 = vmatprep.subr.bf16.mxu0 %v1371_v7 }
  0x9c   :  { %916 = vmatpush1.bf16.msra.mxu1 %v1366_v8 }
  0x9d   :  { %1002 = vmatpush1.bf16.msra.mxu0 %v1369_v9  ;;  %917 = vmatprep.subr.bf16.mxu1 %v1374_v10 }
  0x9e   :  { %1003 = vmatprep.subr.bf16.mxu0 %v1377_v11 }
  0xa0   :  { %918 = vmatpush1.bf16.msra.mxu1 %v1372_v12 }
  0xa1   :  { %1004 = vmatpush1.bf16.msra.mxu0 %v1375_v13  ;;  %919 = vmatprep.subr.bf16.mxu1 %v1380_v14 }
  0xa2   :  { %1005 = vmatprep.subr.bf16.mxu0 %v1383_v15 }
  0xa4   :  { %920 = vmatpush1.bf16.msra.mxu1 %v1378_v16 }
  0xa5   :  { %1006 = vmatpush1.bf16.msra.mxu0 %v1381_v17 }
  0xa7   :  { %922 = vmatmul.mubr.bf16.vlgmr.msra.gmra.mrb[0].mxu1 %v60_v22 }
  0xa8   :  { %1008 = vmatmul.mubr.bf16.vlgmr.msra.gmra.mrb[0].mxu0 %v64_v23 }
 0x17a   :  { %v923_v31 = vpop.f32.mrb[0].mxu1 }
 0x17b   :  { %v1009_v32 = vpop.f32.mrb[0].mxu0  ;;  %v1170_v33 = vadd.f32 %v923_v31, %v199_v29  ;;  %v925_v34 = vpop.f32.mrb[1].mxu1 }
 0x17c   :  { %v1011_v35 = vpop.f32.mrb[1].mxu0  ;;  %v1172_v36 = vadd.f32 %v925_v34, %v203_v30  ;;  %v927_v37 = vpop.f32.mrb[2].mxu1 }
 0x17d   :  { %v1013_v38 = vpop.f32.mrb[2].mxu0  ;;  %v1171_v39 = vadd.f32 %v1170_v33, %v1009_v32  ;;  %v1174_v40 = vadd.f32 %v927_v37, %v199_v29  ;;  %v929_v41 = vpop.f32.mrb[3].mxu1 }
 0x17e   :  { %v1015_v42 = vpop.f32.mrb[3].mxu0  ;;  %v1173_v43 = vadd.f32 %v1172_v36, %v1011_v35  ;;  %v1176_v44 = vadd.f32 %v929_v41, %v203_v30 }
 0x17f   :  { %v1175_v45 = vadd.f32 %v1174_v40, %v1013_v38 }
 0x180   :  { %v1168_v46 = vpack.c.bf16 %v1173_v43, %v1171_v39  ;;  %v1177_v47 = vadd.f32 %v1176_v44, %v1015_v42 }
 0x182   :  { %1030 = vst [vmem:[%s1494_s3] sm:$0xff] %v1168_v46  ;;  %v1169_v48 = vpack.c.bf16 %v1177_v47, %v1175_v45 }
 0x184   :  { %1031 = vst [vmem:[%s1494_s3 + $0x8] sm:$0xff] %v1169_v48 }
 0x185   :  { %1036 = vsyncpa [#allocation3], 1 }
 0x186   :  { %1037 = vsyncpa [#allocation5], 1 }

// kernel: birnn_forward.3
= control target key start
LH: loop header
LB: loop body
LE: loop exit
PB: predicated region body
PF: predicated region fallthrough
CT: control target
= control target key end

     0   :  { %v6431_v3 = vmov 0.0|0.0   ;;  %vm151_vm0 = vcmask 254976   ;;  %vm6432_vm1 = vmmov 0   ;;  %v6433_v11 = vmov 0.0   ;;  %s7598_s0 = inlined_call_operand.vmem [shape: bf16[2,16,256], index: 0, kind: input, shape index: {}, may-alias: {0,1}]   ;;  %s7599_s1 = inlined_call_operand.vmem [shape: bf16[2,16,256], index: 1, kind: input, shape index: {}, may-alias: {0,1}]   ;;  %s7600_s2 = inlined_call_operand.vmem [shape: f32[32,128], index: 2, kind: input, shape index: {}]   ;;  %s7601_s3 = inlined_call_operand.vmem [shape: f32[32,128], index: 3, kind: input, shape index: {}]   ;;  %s7602_s4 = inlined_call_operand.vmem [shape: f32[32,32], index: 4, kind: input, shape index: {}]   ;;  %s7603_s5 = inlined_call_operand.vmem [shape: f32[32,32], index: 5, kind: input, shape index: {}]   ;;  %s7604_s6 = inlined_call_operand.vmem [shape: f32[1,32], index: 6, kind: input, shape index: {}]   ;;  %s7605_s7 = inlined_call_operand.vmem [shape: f32[32,128], index: 7, kind: input, shape index: {}]   ;;  %s7606_s8 = inlined_call_operand.vmem [shape: f32[1,128], index: 8, kind: input, shape index: {}]   ;;  %s7607_s9 = inlined_call_operand.hbm [shape: f32[2,128], index: 9, kind: output, shape index: {}]  }
   0x1   :  { %v156_v0 = vld [vmem:[%s7600_s2] sm:$0xff]  ;;  %v157_v1 = vld [vmem:[%s7600_s2 + $0x8] sm:$0xff]  ;;  %5678 = vmatprep.subr.bf16.mxu0 %v6431_v3  ;;  %5684 = vmatprep.subr.bf16.mxu1 %v6431_v3  ;;  %v158_v6 = vld [vmem:[%s7600_s2 + $0x10] sm:$0xff]  ;;  %152 = vst.msk [vmem:[#allocation2] sm:$0x3] %vm151_vm0, %v6433_v11 }
   0x2   :  { %v160_v2 = vld [vmem:[%s7601_s3] sm:$0xff]  ;;  %v6499_v4 = vpack.c.bf16 %v157_v1, %v156_v0  ;;  %v161_v5 = vld [vmem:[%s7601_s3 + $0x8] sm:$0xff]  ;;  %v159_v7 = vld [vmem:[%s7600_s2 + $0x18] sm:$0xff]  ;;  %5301 = vmatprep.mubr.msk.f32.mxu0 %vm6432_vm1, %v6433_v11  ;;  %5312 = vmatprep.mubr.msk.f32.mxu1 %vm6432_vm1, %v6433_v11  ;;  %153 = vst.msk [vmem:[#allocation3] sm:$0x3] %vm151_vm0, %v6433_v11 }
   0x3   :  { %v6510_v8 = vpack.c.bf16 %v161_v5, %v160_v2  ;;  %v162_v9 = vld [vmem:[%s7601_s3 + $0x10] sm:$0xff]  ;;  %v163_v10 = vld [vmem:[%s7601_s3 + $0x18] sm:$0xff]  ;;  %154 = vst.msk [vmem:[#allocation4] sm:$0x3] %vm151_vm0, %v6433_v11  ;;  %155 = vst.msk [vmem:[#allocation5] sm:$0x3] %vm151_vm0, %v6433_v11  ;;  %v6534_v13 = vpack.c.bf16 %v159_v7, %v158_v6 }
   0x4   :  { %v32_v12 = vld [vmem:[%s7598_s0] sm:$0xf]  ;;  %5680 = vmatpush3.bf16.msra.mxu0 %v6499_v4  ;;  %v36_v14 = vld [vmem:[%s7598_s0 + $0x10] sm:$0xf] }
   0x5   :  { %33 = vst [vmem:[#allocation6] sm:$0xf] %v32_v12 }
   0x6   :  { %14 = vsyncpa [#allocation9], 0  ;;  %5686 = vmatpush3.bf16.msra.mxu1 %v6510_v8  ;;  %5681 = vmatprep.subr.bf16.mxu0 %v6431_v3  ;;  %v6541_v15 = vpack.c.bf16 %v163_v10, %v162_v9  ;;  %37 = vst [vmem:[#allocation6 + $0x8] sm:$0xf] %v36_v14  ;;  %vm172_vm2 = vcmask 261120   ;;  %s6434_s10 = smov 64  }
   0x7   :  { %5687 = vmatprep.subr.bf16.mxu1 %v6431_v3  ;;  %v5016_v18 = vld [vmem:[%s7599_s1 + $0x1c] sm:$0xf]  ;;  %v5014_v19 = vld [vmem:[%s7599_s1 + $0xc] sm:$0xf]  ;;  %s6435_s11 = smov 32   ;;  %vm452_vm3 = vcmask 1041409  }
   0x8   :  { %5683 = vmatpush3.bf16.msra.mxu0 %v6534_v13  ;;  %v164_v16 = vld [vmem:[#allocation2] sm:$0x3]  ;;  %98 = vst [vmem:[#allocation7 + $0xc] sm:$0xf] %v5016_v18  ;;  %94 = vst [vmem:[#allocation7 + $0x4] sm:$0xf] %v5014_v19 }
   0x9   :  { %5690 = vmatprep.subr.bf16.mxu0 %v6431_v3  ;;  %v165_v40 = vld [vmem:[#allocation3] sm:$0x3]  ;;  %vm4703_vm4 = vcmask 253952   ;;  %vm4701_vm5 = vcmask 261127  }
   0xa   :  { %5689 = vmatpush3.bf16.msra.mxu1 %v6541_v15  ;;  %v166_v17 = vld [vmem:[#allocation4] sm:$0x3]  ;;  %v267_v43 = vrot.slane %v165_v40, 1  ;;  %v167_v44 = vld [vmem:[#allocation5] sm:$0x3] }
   0xb   :  { %5696 = vmatprep.subr.bf16.mxu1 %v6431_v3  ;;  %5302 = vmatmul.mubr.msk.f32.vlgmr.msra.gmra.mrb[0].mxu0 %vm172_vm2, %v164_v16  ;;  %v408_v46 = vrot.slane %v167_v44, 2  ;;  %v407_v47 = vrot.slane %v167_v44, 1 }
   0xc   :  { %5692 = vmatpush3.bf16.msra.mxu0 %v6499_v4  ;;  %5323 = vmatprep.mubr.msk.f32.mxu0 %vm6432_vm1, %v6433_v11  ;;  %v6579_v34 = vld [vmem:[#allocation6] sm:$0x1] }
   0xd   :  { %5313 = vmatmul.mubr.msk.f32.vlgmr.msra.gmra.mrb[0].mxu1 %vm172_vm2, %v166_v17  ;;  %5693 = vmatprep.subr.bf16.mxu0 %v6431_v3  ;;  %v6568_v20 = vld [vmem:[#allocation6 + $0x8] sm:$0x1]  ;;  %v170_v36 = vunpack.c.l.bf16 %v6579_v34 }
   0xe   :  { %5698 = vmatpush3.bf16.msra.mxu1 %v6510_v8  ;;  %5334 = vmatprep.mubr.msk.f32.mxu1 %vm6432_vm1, %v6433_v11  ;;  %v171_v21 = vunpack.c.l.bf16 %v6568_v20 }
   0xf   :  { %5699 = vmatprep.subr.bf16.mxu1 %v6431_v3  ;;  %v6571_v22 = vld [vmem:[#allocation7 + $0x4] sm:$0x8]  ;;  %v6573_v24 = vld [vmem:[#allocation7 + $0xc] sm:$0x8] }
  0x10   :  { %5695 = vmatpush3.bf16.msra.mxu0 %v6534_v13  ;;  %v310_v28 = vunpack.c.l.bf16 %v6571_v22  ;;  %v311_v32 = vunpack.c.l.bf16 %v6573_v24 }
  0x11   :  { %5702 = vmatprep.subr.bf16.mxu0 %v6431_v3 }
  0x12   :  { %5701 = vmatpush3.bf16.msra.mxu1 %v6541_v15 }
  0x13   :  { %5708 = vmatprep.subr.bf16.mxu1 %v6431_v3 }
  0xde   :  { %v242_v23 = vpop.f32.mrb[0].mxu0 }
  0xdf   :  { %v247_v25 = vrot.slane %v242_v23, 1  ;;  %v5303_v27 = vpop.f32.mrb[1].mxu0  ;;  %v250_v38 = vadd.f32 %v242_v23, %v170_v36 }
  0xe0   :  { %v381_v26 = vpop.f32.mrb[0].mxu1 }
  0xe1   :  { %v386_v29 = vrot.slane %v381_v26, 1  ;;  %v5314_v30 = vpop.f32.mrb[1].mxu1  ;;  %v251_v31 = vadd.f32 %v247_v25, %v171_v21  ;;  %v387_v33 = vrot.slane %v381_v26, 2  ;;  %v5018_v51 = vmul.f32 -1.442695, %v250_v38 }
  0xe3   :  { %5895 = vtanh.f32 %v251_v31  ;;  %v390_v35 = vadd.f32 %v386_v29, %v310_v28  ;;  %v391_v37 = vadd.f32 %v387_v33, %v311_v32  ;;  %v5019_v48 = vmul.f32 -1.442695, %v251_v31 }
  0xe5   :  { %5897 = vtanh.f32 %v390_v35  ;;  %v5021_v49 = vmul.f32 -1.442695, %v390_v35  ;;  %v5022_v50 = vmul.f32 -1.442695, %v391_v37 }
  0xe6   :  { %5899 = vtanh.f32 %v391_v37 }
  0xe7   :  { %5901 = vtanh.f32 %v250_v38 }
  0xe8   :  { %5903 = vpow2.f32 %v5019_v48 }
  0xe9   :  { %5905 = vpow2.f32 %v5021_v49 }
  0xea   :  { %5907 = vpow2.f32 %v5022_v50 }
  0xeb   :  { %5909 = vpow2.f32 %v5018_v51 }
  0xed   :  { %v5896_v39 = vpop.eup %5895 }
  0xee   :  { %280 = vrot.lane.b32.xlu0 %v5896_v39, %s6434_s10 }
  0xef   :  { %v5898_v41 = vpop.eup %5897 }
  0xf0   :  { %v5900_v42 = vpop.eup %5899 }
  0xf1   :  { %421 = vrot.lane.b32.xlu1 %v5900_v42, %s6434_s10  ;;  %v5902_v45 = vpop.eup %5901 }
  0xf2   :  { %419 = vrot.lane.b32.xlu0 %v5898_v41, %s6434_s10  ;;  %v5904_v52 = vpop.eup %5903 }
  0xf3   :  { %v259_v53 = vadd.f32 1.0, %v5904_v52  ;;  %v5906_v54 = vpop.eup %5905 }
  0xf4   :  { %v5908_v55 = vpop.eup %5907  ;;  %v398_v56 = vadd.f32 1.0, %v5906_v54 }
  0xf5   :  { %278 = vrot.lane.b32.xlu1 %v5902_v45, %s6434_s10  ;;  %5911 = vrcp.f32 %v259_v53  ;;  %v399_v57 = vadd.f32 1.0, %v5908_v55  ;;  %v5910_v58 = vpop.eup %5909 }
  0xf6   :  { %270 = vrot.lane.b32.xlu0 %v267_v43, %s6435_s11  ;;  %5913 = vrcp.f32 %v398_v56  ;;  %v258_v59 = vadd.f32 1.0, %v5910_v58 }
  0xf7   :  { %5915 = vrcp.f32 %v399_v57 }
  0xf8   :  { %5917 = vrcp.f32 %v258_v59 }
  0xf9   :  { %409 = vrot.lane.b32.xlu1 %v407_v47, %s6435_s11 }
  0xfa   :  { %411 = vrot.lane.b32.xlu0 %v408_v46, %s6435_s11 }
  0xfd   :  { %268 = vrot.lane.b32.xlu1 %v165_v40, %s6435_s11 }
  0xff   :  { %v5912_v60 = vpop.eup %5911 }
 0x100   :  { %v5914_v63 = vpop.eup %5913 }
 0x101   :  { %v5916_v1 = vpop.eup %5915 }
 0x102   :  { %v5918_v7 = vpop.eup %5917 }
 0x160   :  { %v281_v61 = vpop.permute.xlu0 %280 }
 0x161   :  { %v285_v62 = vmul.f32 %v5912_v60, %v281_v61 }
 0x163   :  { %290 = vrot.lane.b32.xlu0 %v285_v62, %s6435_s11  ;;  %v422_v2 = vpop.permute.xlu1 %421 }
 0x164   :  { %v420_v0 = vpop.permute.xlu0 %419  ;;  %v426_v6 = vmul.f32 %v5916_v1, %v422_v2 }
 0x165   :  { %v425_v5 = vmul.f32 %v5914_v63, %v420_v0 }
 0x167   :  { %429 = vrot.lane.b32.xlu1 %v425_v5, %s6435_s11  ;;  %431 = vrot.lane.b32.xlu0 %v426_v6, %s6435_s11  ;;  %v279_v9 = vpop.permute.xlu1 %278 }
 0x168   :  { %v284_v10 = vmul.f32 %v5918_v7, %v279_v9  ;;  %v271_v12 = vpop.permute.xlu0 %270 }
 0x169   :  { %v275_v17 = vmul.f32 %v5912_v60, %v271_v12 }
 0x16b   :  { %288 = vrot.lane.b32.xlu1 %v284_v10, %s6435_s11  ;;  %v410_v14 = vpop.permute.xlu1 %409 }
 0x16c   :  { %v412_v16 = vpop.permute.xlu0 %411  ;;  %v415_v25 = vmul.f32 %v5914_v63, %v410_v14 }
 0x16d   :  { %v416_v26 = vmul.f32 %v5916_v1, %v412_v16 }
 0x16f   :  { %v269_v18 = vpop.permute.xlu1 %268 }
 0x170   :  { %v274_v33 = vmul.f32 %v5918_v7, %v269_v18 }
 0x1d5   :  { %v291_v19 = vpop.permute.xlu0 %290 }
 0x1d6   :  { %v6600_v23 = vadd.f32 %v291_v19, %v275_v17 }
 0x1d8   :  { %5919 = vtanh.f32 %v6600_v23 }
 0x1d9   :  { %v430_v27 = vpop.permute.xlu1 %429  ;;  %v432_v29 = vpop.permute.xlu0 %431 }
 0x1da   :  { %v6603_v30 = vadd.f32 %v430_v27, %v415_v25  ;;  %v6605_v31 = vadd.f32 %v432_v29, %v416_v26 }
 0x1dc   :  { %5921 = vtanh.f32 %v6603_v30 }
 0x1dd   :  { %5923 = vtanh.f32 %v6605_v31  ;;  %v289_v35 = vpop.permute.xlu1 %288 }
 0x1de   :  { %v6609_v37 = vadd.f32 %v289_v35, %v274_v33 }
 0x1e0   :  { %5925 = vtanh.f32 %v6609_v37 }
 0x1e2   :  { %v5920_v38 = vpop.eup %5919 }
 0x1e3   :  { %302 = vrot.lane.b32.xlu0 %v5920_v38, %s6434_s10 }
 0x1e6   :  { %v5922_v39 = vpop.eup %5921 }
 0x1e7   :  { %v5924_v40 = vpop.eup %5923  ;;  %441 = vrot.lane.b32.xlu1 %v5922_v39, %s6434_s10 }
 0x1e8   :  { %443 = vrot.lane.b32.xlu0 %v5924_v40, %s6434_s10 }
 0x1ea   :  { %v5926_v41 = vpop.eup %5925 }
 0x1eb   :  { %300 = vrot.lane.b32.xlu1 %v5926_v41, %s6434_s10 }
 0x255   :  { %v303_v42 = vpop.permute.xlu0 %302 }
 0x256   :  { %v307_v46 = vmul.f32 %v5912_v60, %v303_v42  ;;  %v690_v42 = vrot.slane %v6603_v30, 1 }
 0x258   :  { %v451_v51 = vrot.slane %v307_v46, 7  ;;  %v550_v46 = vrot.slane %v6609_v37, 7 }
 0x259   :  { %v442_v43 = vpop.permute.xlu1 %441 }
 0x25a   :  { %v444_v44 = vpop.permute.xlu0 %443  ;;  %v447_v45 = vmul.f32 %v5914_v63, %v442_v43 }
 0x25b   :  { %v448_v47 = vmul.f32 %v5916_v1, %v444_v44 }
 0x25c   :  { %v590_v48 = vrot.slane %v447_v45, 7 }
 0x25d   :  { %v591_v49 = vrot.slane %v448_v47, 6  ;;  %v301_v50 = vpop.permute.xlu1 %300  ;;  %v551_v47 = vrot.slane %v6600_v23, 7 }
 0x25e   :  { %v306_v52 = vmul.f32 %v5918_v7, %v301_v50 }
 0x25f   :  { %v592_v53 = vsel %vm452_vm3, %v591_v49, %v590_v48 }
 0x260   :  { %593 = vrot.lane.b32.xlu1 %v592_v53, %s6435_s11  ;;  %v453_v54 = vsel %vm452_vm3, %v451_v51, %v306_v52  ;;  %v691_v51 = vrot.slane %v6605_v31, 1 }
 0x261   :  { %454 = vrot.lane.b32.xlu0 %v453_v54, %s6435_s11 }
 0x2d2   :  { %v594_v55 = vpop.permute.xlu1 %593 }
 0x2d3   :  { %5335 = vmatmul.mubr.msk.f32.vlgmr.msra.gmra.mrb[2].mxu1 %vm172_vm2, %v594_v55  ;;  %v455_v56 = vpop.permute.xlu0 %454 }
 0x2d4   :  { %5710 = vmatpush3.bf16.msra.mxu1 %v6510_v8  ;;  %5356 = vmatprep.mubr.msk.f32.mxu1 %vm6432_vm1, %v6433_v11 }
 0x2d5   :  { %5324 = vmatmul.mubr.msk.f32.vlgmr.msra.gmra.mrb[2].mxu0 %vm172_vm2, %v455_v56  ;;  %5711 = vmatprep.subr.bf16.mxu1 %v6431_v3 }
 0x2d6   :  { %5704 = vmatpush3.bf16.msra.mxu0 %v6499_v4  ;;  %5345 = vmatprep.mubr.msk.f32.mxu0 %vm6432_vm1, %v6433_v11 }
 0x2d7   :  { %5705 = vmatprep.subr.bf16.mxu0 %v6431_v3 }
 0x2d8   :  { %5713 = vmatpush3.bf16.msra.mxu1 %v6541_v15 }
 0x2d9   :  { %5720 = vmatprep.subr.bf16.mxu1 %v6431_v3 }
 0x2da   :  { %5707 = vmatpush3.bf16.msra.mxu0 %v6534_v13 }
 0x2db   :  { %5714 = vmatprep.subr.bf16.mxu0 %v6431_v3 }
 0x3a6   :  { %v663_v57 = vpop.f32.mrb[2].mxu1 }
 0x3a7   :  { %v668_v58 = vrot.slane %v663_v57, 2  ;;  %v5336_v59 = vpop.f32.mrb[3].mxu1  ;;  %v669_v0 = vrot.slane %v663_v57, 3 }
 0x3a8   :  { %v524_v60 = vpop.f32.mrb[2].mxu0 }
 0x3a9   :  { %v672_v61 = vadd.f32 %v668_v58, %v310_v28  ;;  %v529_v62 = vrot.slane %v524_v60, 7  ;;  %v5325_v63 = vpop.f32.mrb[3].mxu0  ;;  %v533_v2 = vadd.f32 %v524_v60, %v171_v21  ;;  %v673_v5 = vadd.f32 %v669_v0, %v311_v32 }
 0x3ab   :  { %5927 = vtanh.f32 %v672_v61  ;;  %v532_v1 = vadd.f32 %v529_v62, %v170_v36  ;;  %v5027_v20 = vmul.f32 -1.442695, %v672_v61  ;;  %v5025_v24 = vmul.f32 -1.442695, %v533_v2 }
 0x3ac   :  { %v5028_v32 = vmul.f32 -1.442695, %v673_v5 }
 0x3ad   :  { %5929 = vtanh.f32 %v532_v1  ;;  %v5024_v21 = vmul.f32 -1.442695, %v532_v1 }
 0x3ae   :  { %5931 = vtanh.f32 %v533_v2 }
 0x3af   :  { %5933 = vtanh.f32 %v673_v5 }
 0x3b0   :  { %5935 = vpow2.f32 %v5027_v20 }
 0x3b1   :  { %5937 = vpow2.f32 %v5024_v21  ;;  %v6688_v21 = vld [vmem:[#allocation6] sm:$0x2] }
 0x3b2   :  { %5939 = vpow2.f32 %v5025_v24  ;;  %v6690_v24 = vld [vmem:[#allocation6 + $0x8] sm:$0x2] }
 0x3b3   :  { %5941 = vpow2.f32 %v5028_v32  ;;  %v730_v32 = vunpack.c.l.bf16 %v6688_v21 }
 0x3b5   :  { %v5928_v6 = vpop.eup %5927 }
 0x3b6   :  { %698 = vrot.lane.b32.xlu1 %v5928_v6, %s6434_s10 }
 0x3b7   :  { %v5930_v22 = vpop.eup %5929 }
 0x3b8   :  { %v5932_v28 = vpop.eup %5931  ;;  %558 = vrot.lane.b32.xlu0 %v5930_v22, %s6434_s10 }
 0x3b9   :  { %v5934_v34 = vpop.eup %5933 }
 0x3ba   :  { %560 = vrot.lane.b32.xlu1 %v5932_v28, %s6434_s10  ;;  %v5936_v36 = vpop.eup %5935 }
 0x3bb   :  { %v680_v7 = vadd.f32 1.0, %v5936_v36  ;;  %v5938_v9 = vpop.eup %5937  ;;  %v731_v36 = vunpack.c.l.bf16 %v6690_v24 }
 0x3bc   :  { %700 = vrot.lane.b32.xlu0 %v5934_v34, %s6434_s10  ;;  %v5940_v10 = vpop.eup %5939  ;;  %v540_v12 = vadd.f32 1.0, %v5938_v9  ;;  %v6694_v9 = vld [vmem:[#allocation7 + $0x4] sm:$0x4] }
 0x3bd   :  { %5943 = vrcp.f32 %v680_v7  ;;  %v5942_v14 = vpop.eup %5941  ;;  %v541_v16 = vadd.f32 1.0, %v5940_v10 }
 0x3be   :  { %v681_v17 = vadd.f32 1.0, %v5942_v14  ;;  %5945 = vrcp.f32 %v540_v12 }
 0x3bf   :  { %5947 = vrcp.f32 %v541_v16  ;;  %v6696_v16 = vld [vmem:[#allocation7 + $0xc] sm:$0x4] }
 0x3c0   :  { %5949 = vrcp.f32 %v681_v17 }
 0x3c7   :  { %v5944_v18 = vpop.eup %5943 }
 0x3c8   :  { %v5946_v26 = vpop.eup %5945  ;;  %v694_v43 = vmul.f32 %v5944_v18, %v690_v42 }
 0x3c9   :  { %v5948_v29 = vpop.eup %5947  ;;  %v554_v48 = vmul.f32 %v5946_v26, %v550_v46 }
 0x3ca   :  { %v5950_v39 = vpop.eup %5949  ;;  %v555_v50 = vmul.f32 %v5948_v29, %v551_v47 }
 0x3cb   :  { %v695_v30 = vmul.f32 %v5950_v39, %v691_v51 }
 0x428   :  { %v699_v19 = vpop.permute.xlu1 %698 }
 0x429   :  { %v704_v25 = vmul.f32 %v5944_v18, %v699_v19  ;;  %v873_v19 = vunpack.c.l.bf16 %v6694_v9 }
 0x42a   :  { %v559_v27 = vpop.permute.xlu0 %558 }
 0x42b   :  { %708 = vrot.lane.b32.xlu1 %v704_v25, %s6435_s11  ;;  %v564_v33 = vmul.f32 %v5946_v26, %v559_v27  ;;  %v874_v25 = vunpack.c.l.bf16 %v6696_v16 }
 0x42c   :  { %v561_v35 = vpop.permute.xlu1 %560 }
 0x42d   :  { %v565_v38 = vmul.f32 %v5948_v29, %v561_v35  ;;  %568 = vrot.lane.b32.xlu0 %v564_v33, %s6435_s11 }
 0x42e   :  { %v701_v40 = vpop.permute.xlu0 %700 }
 0x42f   :  { %570 = vrot.lane.b32.xlu1 %v565_v38, %s6435_s11  ;;  %v705_v41 = vmul.f32 %v5950_v39, %v701_v40 }
 0x431   :  { %710 = vrot.lane.b32.xlu0 %v705_v41, %s6435_s11 }
 0x49d   :  { %v709_v44 = vpop.permute.xlu1 %708 }
 0x49e   :  { %v6651_v45 = vadd.f32 %v709_v44, %v694_v43 }
 0x49f   :  { %v569_v49 = vpop.permute.xlu0 %568 }
 0x4a0   :  { %5951 = vtanh.f32 %v6651_v45  ;;  %v6657_v52 = vadd.f32 %v569_v49, %v554_v48 }
 0x4a1   :  { %v571_v53 = vpop.permute.xlu1 %570 }
 0x4a2   :  { %v6659_v54 = vadd.f32 %v571_v53, %v555_v50  ;;  %5953 = vtanh.f32 %v6657_v52 }
 0x4a3   :  { %v711_v37 = vpop.permute.xlu0 %710 }
 0x4a4   :  { %5955 = vtanh.f32 %v6659_v54  ;;  %v6663_v55 = vadd.f32 %v711_v37, %v695_v30 }
 0x4a6   :  { %5957 = vtanh.f32 %v6663_v55 }
 0x4aa   :  { %v5952_v56 = vpop.eup %5951 }
 0x4ab   :  { %720 = vrot.lane.b32.xlu1 %v5952_v56, %s6434_s10 }
 0x4ac   :  { %v5954_v23 = vpop.eup %5953 }
 0x4ad   :  { %580 = vrot.lane.b32.xlu0 %v5954_v23, %s6434_s10 }
 0x4ae   :  { %v5956_v31 = vpop.eup %5955 }
 0x4af   :  { %582 = vrot.lane.b32.xlu1 %v5956_v31, %s6434_s10 }
 0x4b0   :  { %v5958_v57 = vpop.eup %5957 }
 0x4b1   :  { %722 = vrot.lane.b32.xlu0 %v5958_v57, %s6434_s10 }
 0x51d   :  { %v721_v58 = vpop.permute.xlu1 %720 }
 0x51e   :  { %v726_v63 = vmul.f32 %v5944_v18, %v721_v58 }
 0x51f   :  { %v581_v59 = vpop.permute.xlu0 %580 }
 0x520   :  { %v586_v60 = vmul.f32 %v5946_v26, %v581_v59  ;;  %v877_v6 = vrot.slane %v726_v63, 6 }
 0x521   :  { %v583_v61 = vpop.permute.xlu1 %582 }
 0x522   :  { %v587_v62 = vmul.f32 %v5948_v29, %v583_v61  ;;  %v734_v0 = vrot.slane %v586_v60, 1 }
 0x523   :  { %v723_v1 = vpop.permute.xlu0 %722 }
 0x524   :  { %v727_v2 = vmul.f32 %v5950_v39, %v723_v1  ;;  %v735_v5 = vsel %vm452_vm3, %v587_v62, %v734_v0 }
 0x525   :  { %736 = vrot.lane.b32.xlu0 %v735_v5, %s6435_s11  ;;  %v833_v5 = vrot.slane %v6657_v52, 7 }
 0x526   :  { %v878_v22 = vrot.slane %v727_v2, 5 }
 0x528   :  { %v879_v28 = vsel %vm452_vm3, %v878_v22, %v877_v6  ;;  %v834_v6 = vrot.slane %v6659_v54, 7 }
 0x529   :  { %880 = vrot.lane.b32.xlu1 %v879_v28, %s6435_s11 }
 0x597   :  { %v737_v34 = vpop.permute.xlu0 %736 }
 0x598   :  { %5346 = vmatmul.mubr.msk.f32.vlgmr.msra.gmra.mrb[4].mxu0 %vm172_vm2, %v737_v34 }
 0x599   :  { %5716 = vmatpush3.bf16.msra.mxu0 %v6499_v4  ;;  %5367 = vmatprep.mubr.msk.f32.mxu0 %vm6432_vm1, %v6433_v11 }
 0x59a   :  { %5717 = vmatprep.subr.bf16.mxu0 %v6431_v3 }
 0x59b   :  { %v881_v20 = vpop.permute.xlu1 %880 }
 0x59c   :  { %5357 = vmatmul.mubr.msk.f32.vlgmr.msra.gmra.mrb[4].mxu1 %vm172_vm2, %v881_v20  ;;  %v977_v20 = vrot.slane %v6651_v45, 1 }
 0x59d   :  { %5719 = vmatpush3.bf16.msra.mxu0 %v6534_v13  ;;  %5722 = vmatpush3.bf16.msra.mxu1 %v6510_v8 }
 0x59e   :  { %5723 = vmatprep.subr.bf16.mxu1 %v6431_v3  ;;  %5378 = vmatprep.mubr.msk.f32.mxu1 %vm6432_vm1, %v6433_v11 }
 0x59f   :  { %5726 = vmatprep.subr.bf16.mxu0 %v6431_v3 }
 0x5a1   :  { %5725 = vmatpush3.bf16.msra.mxu1 %v6541_v15 }
 0x5a2   :  { %5732 = vmatprep.subr.bf16.mxu1 %v6431_v3 }
 0x66b   :  { %v806_v7 = vpop.f32.mrb[4].mxu0 }
 0x66c   :  { %v811_v10 = vrot.slane %v806_v7, 6  ;;  %v812_v12 = vrot.slane %v806_v7, 7  ;;  %v5347_v14 = vpop.f32.mrb[5].mxu0 }
 0x66e   :  { %v815_v17 = vadd.f32 %v811_v10, %v730_v32  ;;  %v816_v18 = vadd.f32 %v812_v12, %v731_v36  ;;  %v978_v12 = vrot.slane %v6663_v55, 1 }
 0x66f   :  { %v950_v26 = vpop.f32.mrb[4].mxu1 }
 0x670   :  { %5959 = vtanh.f32 %v815_v17  ;;  %v955_v27 = vrot.slane %v950_v26, 3  ;;  %v5358_v29 = vpop.f32.mrb[5].mxu1  ;;  %v956_v33 = vrot.slane %v950_v26, 4  ;;  %v5030_v43 = vmul.f32 -1.442695, %v815_v17 }
 0x671   :  { %5961 = vtanh.f32 %v816_v18  ;;  %v5031_v44 = vmul.f32 -1.442695, %v816_v18 }
 0x672   :  { %v959_v35 = vadd.f32 %v955_v27, %v873_v19  ;;  %v960_v38 = vadd.f32 %v956_v33, %v874_v25 }
 0x674   :  { %5963 = vtanh.f32 %v959_v35  ;;  %v5033_v46 = vmul.f32 -1.442695, %v959_v35  ;;  %v5034_v47 = vmul.f32 -1.442695, %v960_v38 }
 0x675   :  { %5965 = vtanh.f32 %v960_v38 }
 0x676   :  { %5967 = vpow2.f32 %v5030_v43 }
 0x677   :  { %5969 = vpow2.f32 %v5031_v44 }
 0x678   :  { %5971 = vpow2.f32 %v5033_v46 }
 0x679   :  { %5973 = vpow2.f32 %v5034_v47 }
 0x67a   :  { %v5960_v39 = vpop.eup %5959 }
 0x67b   :  { %v5962_v40 = vpop.eup %5961  ;;  %841 = vrot.lane.b32.xlu0 %v5960_v39, %s6434_s10 }
 0x67c   :  { %843 = vrot.lane.b32.xlu1 %v5962_v40, %s6434_s10 }
 0x67e   :  { %v5964_v41 = vpop.eup %5963 }
 0x67f   :  { %v5966_v42 = vpop.eup %5965  ;;  %985 = vrot.lane.b32.xlu0 %v5964_v41, %s6434_s10 }
 0x680   :  { %987 = vrot.lane.b32.xlu1 %v5966_v42, %s6434_s10  ;;  %v5968_v48 = vpop.eup %5967 }
 0x681   :  { %v5970_v49 = vpop.eup %5969  ;;  %v823_v50 = vadd.f32 1.0, %v5968_v48 }
 0x682   :  { %v5972_v51 = vpop.eup %5971  ;;  %v824_v53 = vadd.f32 1.0, %v5970_v49 }
 0x683   :  { %v5974_v30 = vpop.eup %5973  ;;  %5975 = vrcp.f32 %v823_v50  ;;  %v967_v37 = vadd.f32 1.0, %v5972_v51 }
 0x684   :  { %5977 = vrcp.f32 %v824_v53  ;;  %v968_v56 = vadd.f32 1.0, %v5974_v30 }
 0x685   :  { %5979 = vrcp.f32 %v967_v37 }
 0x686   :  { %5981 = vrcp.f32 %v968_v56 }
 0x68d   :  { %v5976_v23 = vpop.eup %5975 }
 0x68e   :  { %v5978_v57 = vpop.eup %5977  ;;  %v837_v22 = vmul.f32 %v5976_v23, %v833_v5 }
 0x68f   :  { %v5980_v61 = vpop.eup %5979  ;;  %v838_v28 = vmul.f32 %v5978_v57, %v834_v6 }
 0x690   :  { %v5982_v63 = vpop.eup %5981  ;;  %v981_v17 = vmul.f32 %v5980_v61, %v977_v20 }
 0x691   :  { %v982_v52 = vmul.f32 %v5982_v63, %v978_v12 }
 0x6ed   :  { %v842_v31 = vpop.permute.xlu0 %841 }
 0x6ee   :  { %v847_v58 = vmul.f32 %v5976_v23, %v842_v31  ;;  %v844_v59 = vpop.permute.xlu1 %843 }
 0x6ef   :  { %v848_v60 = vmul.f32 %v5978_v57, %v844_v59 }
 0x6f0   :  { %851 = vrot.lane.b32.xlu0 %v847_v58, %s6435_s11 }
 0x6f1   :  { %853 = vrot.lane.b32.xlu1 %v848_v60, %s6435_s11  ;;  %v986_v62 = vpop.permute.xlu0 %985 }
 0x6f2   :  { %v988_v0 = vpop.permute.xlu1 %987  ;;  %v991_v1 = vmul.f32 %v5980_v61, %v986_v62 }
 0x6f3   :  { %v992_v2 = vmul.f32 %v5982_v63, %v988_v0 }
 0x6f4   :  { %995 = vrot.lane.b32.xlu0 %v991_v1, %s6435_s11 }
 0x6f5   :  { %997 = vrot.lane.b32.xlu1 %v992_v2, %s6435_s11 }
 0x762   :  { %v852_v34 = vpop.permute.xlu0 %851 }
 0x763   :  { %v854_v7 = vpop.permute.xlu1 %853  ;;  %v6719_v10 = vadd.f32 %v852_v34, %v837_v22 }
 0x764   :  { %v6722_v14 = vadd.f32 %v854_v7, %v838_v28 }
 0x765   :  { %5983 = vtanh.f32 %v6719_v10 }
 0x766   :  { %5985 = vtanh.f32 %v6722_v14  ;;  %v996_v18 = vpop.permute.xlu0 %995 }
 0x767   :  { %v998_v54 = vpop.permute.xlu1 %997  ;;  %v6726_v26 = vadd.f32 %v996_v18, %v981_v17 }
 0x768   :  { %v6728_v27 = vadd.f32 %v998_v54, %v982_v52 }
 0x769   :  { %5987 = vtanh.f32 %v6726_v26 }
 0x76a   :  { %5989 = vtanh.f32 %v6728_v27 }
 0x76f   :  { %v5984_v45 = vpop.eup %5983 }
 0x770   :  { %v5986_v55 = vpop.eup %5985  ;;  %863 = vrot.lane.b32.xlu0 %v5984_v45, %s6434_s10 }
 0x771   :  { %865 = vrot.lane.b32.xlu1 %v5986_v55, %s6434_s10 }
 0x773   :  { %v5988_v29 = vpop.eup %5987 }
 0x774   :  { %v5990_v33 = vpop.eup %5989  ;;  %1007 = vrot.lane.b32.xlu0 %v5988_v29, %s6434_s10 }
 0x775   :  { %1009 = vrot.lane.b32.xlu1 %v5990_v33, %s6434_s10 }
 0x7e2   :  { %v864_v35 = vpop.permute.xlu0 %863 }
 0x7e3   :  { %v866_v38 = vpop.permute.xlu1 %865  ;;  %v869_v39 = vmul.f32 %v5976_v23, %v864_v35 }
 0x7e4   :  { %v870_v40 = vmul.f32 %v5978_v57, %v866_v38 }
 0x7e5   :  { %v1017_v41 = vrot.slane %v869_v39, 2  ;;  %v1117_v39 = vrot.slane %v6719_v10, 7 }
 0x7e6   :  { %v1018_v42 = vrot.slane %v870_v40, 1  ;;  %v1008_v43 = vpop.permute.xlu0 %1007  ;;  %v1118_v40 = vrot.slane %v6722_v14, 7 }
 0x7e7   :  { %v1010_v44 = vpop.permute.xlu1 %1009  ;;  %v1013_v46 = vmul.f32 %v5980_v61, %v1008_v43 }
 0x7e8   :  { %v1014_v47 = vmul.f32 %v5982_v63, %v1010_v44  ;;  %v1019_v48 = vsel %vm452_vm3, %v1018_v42, %v1017_v41  ;;  %v1257_v44 = vrot.slane %v6726_v26, 1 }
 0x7e9   :  { %v1157_v49 = vrot.slane %v1013_v46, 5  ;;  %1020 = vrot.lane.b32.xlu0 %v1019_v48, %s6435_s11  ;;  %v1258_v48 = vrot.slane %v6728_v27, 1 }
 0x7ea   :  { %v1158_v50 = vrot.slane %v1014_v47, 4 }
 0x7ec   :  { %v1159_v51 = vsel %vm452_vm3, %v1158_v50, %v1157_v49 }
 0x7ed   :  { %1160 = vrot.lane.b32.xlu1 %v1159_v51, %s6435_s11 }
 0x85b   :  { %v1021_v53 = vpop.permute.xlu0 %1020 }
 0x85c   :  { %5368 = vmatmul.mubr.msk.f32.vlgmr.msra.gmra.mrb[6].mxu0 %vm172_vm2, %v1021_v53 }
 0x85d   :  { %5728 = vmatpush3.bf16.msra.mxu0 %v6499_v4  ;;  %5389 = vmatprep.mubr.msk.f32.mxu0 %vm6432_vm1, %v6433_v11 }
 0x85e   :  { %5729 = vmatprep.subr.bf16.mxu0 %v6431_v3 }
 0x85f   :  { %v1161_v30 = vpop.permute.xlu1 %1160 }
 0x860   :  { %5379 = vmatmul.mubr.msk.f32.vlgmr.msra.gmra.mrb[6].mxu1 %vm172_vm2, %v1161_v30 }
 0x861   :  { %5731 = vmatpush3.bf16.msra.mxu0 %v6534_v13  ;;  %5734 = vmatpush3.bf16.msra.mxu1 %v6510_v8 }
 0x862   :  { %5735 = vmatprep.subr.bf16.mxu1 %v6431_v3  ;;  %5400 = vmatprep.mubr.msk.f32.mxu1 %vm6432_vm1, %v6433_v11 }
 0x863   :  { %5738 = vmatprep.subr.bf16.mxu0 %v6431_v3 }
 0x865   :  { %5737 = vmatpush3.bf16.msra.mxu1 %v6541_v15 }
 0x866   :  { %5744 = vmatprep.subr.bf16.mxu1 %v6431_v3 }
 0x92f   :  { %v1090_v37 = vpop.f32.mrb[6].mxu0 }
 0x930   :  { %v1095_v56 = vrot.slane %v1090_v37, 5  ;;  %v1096_v23 = vrot.slane %v1090_v37, 6  ;;  %v5369_v31 = vpop.f32.mrb[7].mxu0 }
 0x932   :  { %v1099_v57 = vadd.f32 %v1095_v56, %v730_v32  ;;  %v1100_v58 = vadd.f32 %v1096_v23, %v731_v36 }
 0x933   :  { %v1230_v59 = vpop.f32.mrb[6].mxu1 }
 0x934   :  { %5991 = vtanh.f32 %v1099_v57  ;;  %v1235_v60 = vrot.slane %v1230_v59, 4  ;;  %v5380_v61 = vpop.f32.mrb[7].mxu1  ;;  %v1236_v62 = vrot.slane %v1230_v59, 5  ;;  %v5036_v36 = vmul.f32 -1.442695, %v1099_v57 }
 0x935   :  { %5993 = vtanh.f32 %v1100_v58  ;;  %v5037_v9 = vmul.f32 -1.442695, %v1100_v58 }
 0x936   :  { %v1239_v63 = vadd.f32 %v1235_v60, %v873_v19  ;;  %v1240_v0 = vadd.f32 %v1236_v62, %v874_v25 }
 0x938   :  { %5995 = vtanh.f32 %v1239_v63  ;;  %v5039_v19 = vmul.f32 -1.442695, %v1239_v63  ;;  %v5040_v16 = vmul.f32 -1.442695, %v1240_v0 }
 0x939   :  { %5997 = vtanh.f32 %v1240_v0 }
 0x93a   :  { %5999 = vpow2.f32 %v5036_v36 }
 0x93b   :  { %6001 = vpow2.f32 %v5037_v9 }
 0x93c   :  { %6003 = vpow2.f32 %v5039_v19  ;;  %v6808_v19 = vld [vmem:[#allocation6] sm:$0x4] }
 0x93d   :  { %6005 = vpow2.f32 %v5040_v16  ;;  %v6810_v16 = vld [vmem:[#allocation6 + $0x8] sm:$0x4] }
 0x93e   :  { %v5992_v1 = vpop.eup %5991 }
 0x93f   :  { %v5994_v21 = vpop.eup %5993  ;;  %1125 = vrot.lane.b32.xlu0 %v5992_v1, %s6434_s10 }
 0x940   :  { %1127 = vrot.lane.b32.xlu1 %v5994_v21, %s6434_s10 }
 0x942   :  { %v5996_v24 = vpop.eup %5995 }
 0x943   :  { %v5998_v32 = vpop.eup %5997  ;;  %1265 = vrot.lane.b32.xlu0 %v5996_v24, %s6434_s10 }
 0x944   :  { %1267 = vrot.lane.b32.xlu1 %v5998_v32, %s6434_s10  ;;  %v6000_v25 = vpop.eup %5999 }
 0x945   :  { %v6002_v2 = vpop.eup %6001  ;;  %v1107_v5 = vadd.f32 1.0, %v6000_v25  ;;  %v1297_v25 = vunpack.c.l.bf16 %v6808_v19 }
 0x946   :  { %v6004_v6 = vpop.eup %6003  ;;  %v1108_v22 = vadd.f32 1.0, %v6002_v2  ;;  %v1298_v2 = vunpack.c.l.bf16 %v6810_v16 }
 0x947   :  { %v6006_v28 = vpop.eup %6005  ;;  %6007 = vrcp.f32 %v1107_v5  ;;  %v1247_v34 = vadd.f32 1.0, %v6004_v6  ;;  %v6814_v6 = vld [vmem:[#allocation7 + $0x4] sm:$0x2] }
 0x948   :  { %6009 = vrcp.f32 %v1108_v22  ;;  %v1248_v20 = vadd.f32 1.0, %v6006_v28 }
 0x949   :  { %6011 = vrcp.f32 %v1247_v34 }
 0x94a   :  { %6013 = vrcp.f32 %v1248_v20  ;;  %v6816_v20 = vld [vmem:[#allocation7 + $0xc] sm:$0x2] }
 0x951   :  { %v6008_v7 = vpop.eup %6007 }
 0x952   :  { %v6010_v17 = vpop.eup %6009  ;;  %v1121_v41 = vmul.f32 %v6008_v7, %v1117_v39 }
 0x953   :  { %v6012_v45 = vpop.eup %6011  ;;  %v1122_v42 = vmul.f32 %v6010_v17, %v1118_v40 }
 0x954   :  { %v6014_v29 = vpop.eup %6013  ;;  %v1261_v50 = vmul.f32 %v6012_v45, %v1257_v44 }
 0x955   :  { %v1262_v10 = vmul.f32 %v6014_v29, %v1258_v48 }
 0x9b1   :  { %v1126_v12 = vpop.permute.xlu0 %1125 }
 0x9b2   :  { %v1128_v52 = vpop.permute.xlu1 %1127  ;;  %v1131_v18 = vmul.f32 %v6008_v7, %v1126_v12 }
 0x9b3   :  { %v1132_v54 = vmul.f32 %v6010_v17, %v1128_v52  ;;  %v1442_v52 = vunpack.c.l.bf16 %v6816_v20 }
 0x9b4   :  { %1135 = vrot.lane.b32.xlu0 %v1131_v18, %s6435_s11 }
 0x9b5   :  { %1137 = vrot.lane.b32.xlu1 %v1132_v54, %s6435_s11  ;;  %v1266_v55 = vpop.permute.xlu0 %1265 }
 0x9b6   :  { %v1268_v33 = vpop.permute.xlu1 %1267  ;;  %v1271_v35 = vmul.f32 %v6012_v45, %v1266_v55 }
 0x9b7   :  { %v1272_v38 = vmul.f32 %v6014_v29, %v1268_v33 }
 0x9b8   :  { %1275 = vrot.lane.b32.xlu0 %v1271_v35, %s6435_s11 }
 0x9b9   :  { %1277 = vrot.lane.b32.xlu1 %v1272_v38, %s6435_s11 }
 0xa26   :  { %v1136_v43 = vpop.permute.xlu0 %1135 }
 0xa27   :  { %v1138_v46 = vpop.permute.xlu1 %1137  ;;  %v6773_v47 = vadd.f32 %v1136_v43, %v1121_v41 }
 0xa28   :  { %v6776_v49 = vadd.f32 %v1138_v46, %v1122_v42 }
 0xa29   :  { %6015 = vtanh.f32 %v6773_v47 }
 0xa2a   :  { %6017 = vtanh.f32 %v6776_v49  ;;  %v1276_v51 = vpop.permute.xlu0 %1275 }
 0xa2b   :  { %v1278_v14 = vpop.permute.xlu1 %1277  ;;  %v6780_v53 = vadd.f32 %v1276_v51, %v1261_v50 }
 0xa2c   :  { %v6782_v30 = vadd.f32 %v1278_v14, %v1262_v10 }
 0xa2d   :  { %6019 = vtanh.f32 %v6780_v53 }
 0xa2e   :  { %6021 = vtanh.f32 %v6782_v30 }
 0xa33   :  { %v6016_v26 = vpop.eup %6015 }
 0xa34   :  { %v6018_v27 = vpop.eup %6017  ;;  %1147 = vrot.lane.b32.xlu0 %v6016_v26, %s6434_s10 }
 0xa35   :  { %1149 = vrot.lane.b32.xlu1 %v6018_v27, %s6434_s10 }
 0xa37   :  { %v6020_v37 = vpop.eup %6019 }
 0xa38   :  { %v6022_v56 = vpop.eup %6021  ;;  %1287 = vrot.lane.b32.xlu0 %v6020_v37, %s6434_s10 }
 0xa39   :  { %1289 = vrot.lane.b32.xlu1 %v6022_v56, %s6434_s10 }
 0xaa6   :  { %v1148_v23 = vpop.permute.xlu0 %1147 }
 0xaa7   :  { %v1150_v31 = vpop.permute.xlu1 %1149  ;;  %v1153_v57 = vmul.f32 %v6008_v7, %v1148_v23 }
 0xaa8   :  { %v1154_v58 = vmul.f32 %v6010_v17, %v1150_v31  ;;  %v1441_v17 = vunpack.c.l.bf16 %v6814_v6 }
 0xaa9   :  { %v1301_v59 = vrot.slane %v1153_v57, 3 }
 0xaaa   :  { %v1302_v60 = vrot.slane %v1154_v58, 2  ;;  %v1288_v61 = vpop.permute.xlu0 %1287 }
 0xaab   :  { %v1290_v62 = vpop.permute.xlu1 %1289  ;;  %v1293_v63 = vmul.f32 %v6012_v45, %v1288_v61 }
 0xaac   :  { %v1294_v0 = vmul.f32 %v6014_v29, %v1290_v62  ;;  %v1303_v1 = vsel %vm452_vm3, %v1302_v60, %v1301_v59 }
 0xaad   :  { %v1445_v21 = vrot.slane %v1293_v63, 4  ;;  %1304 = vrot.lane.b32.xlu0 %v1303_v1, %s6435_s11  ;;  %v1401_v1 = vrot.slane %v6773_v47, 7 }
 0xaae   :  { %v1446_v24 = vrot.slane %v1294_v0, 3 }
 0xab0   :  { %v1447_v32 = vsel %vm452_vm3, %v1446_v24, %v1445_v21  ;;  %v1402_v21 = vrot.slane %v6776_v49, 7 }
 0xab1   :  { %1448 = vrot.lane.b32.xlu1 %v1447_v32, %s6435_s11 }
 0xb1f   :  { %v1305_v36 = vpop.permute.xlu0 %1304 }
 0xb20   :  { %5390 = vmatmul.mubr.msk.f32.vlgmr.msra.gmra.mrb[8].mxu0 %vm172_vm2, %v1305_v36 }
 0xb21   :  { %5740 = vmatpush3.bf16.msra.mxu0 %v6499_v4  ;;  %5411 = vmatprep.mubr.msk.f32.mxu0 %vm6432_vm1, %v6433_v11 }
 0xb22   :  { %5741 = vmatprep.subr.bf16.mxu0 %v6431_v3 }
 0xb23   :  { %v1449_v9 = vpop.permute.xlu1 %1448 }
 0xb24   :  { %5401 = vmatmul.mubr.msk.f32.vlgmr.msra.gmra.mrb[8].mxu1 %vm172_vm2, %v1449_v9  ;;  %v1545_v9 = vrot.slane %v6780_v53, 1 }
 0xb25   :  { %5743 = vmatpush3.bf16.msra.mxu0 %v6534_v13  ;;  %5746 = vmatpush3.bf16.msra.mxu1 %v6510_v8 }
 0xb26   :  { %5747 = vmatprep.subr.bf16.mxu1 %v6431_v3  ;;  %5422 = vmatprep.mubr.msk.f32.mxu1 %vm6432_vm1, %v6433_v11 }
 0xb27   :  { %5750 = vmatprep.subr.bf16.mxu0 %v6431_v3 }
 0xb29   :  { %5749 = vmatpush3.bf16.msra.mxu1 %v6541_v15 }
 0xb2a   :  { %5756 = vmatprep.subr.bf16.mxu1 %v6431_v3 }
 0xbf3   :  { %v1374_v5 = vpop.f32.mrb[8].mxu0 }
 0xbf4   :  { %v1379_v22 = vrot.slane %v1374_v5, 4  ;;  %v1380_v28 = vrot.slane %v1374_v5, 5  ;;  %v5391_v34 = vpop.f32.mrb[9].mxu0 }
 0xbf6   :  { %v1383_v7 = vadd.f32 %v1379_v22, %v1297_v25  ;;  %v1384_v12 = vadd.f32 %v1380_v28, %v1298_v2  ;;  %v1546_v28 = vrot.slane %v6782_v30, 1 }
 0xbf7   :  { %v1518_v18 = vpop.f32.mrb[8].mxu1 }
 0xbf8   :  { %6023 = vtanh.f32 %v1383_v7  ;;  %v1523_v54 = vrot.slane %v1518_v18, 5  ;;  %v5402_v45 = vpop.f32.mrb[9].mxu1  ;;  %v1524_v55 = vrot.slane %v1518_v18, 6  ;;  %v5042_v41 = vmul.f32 -1.442695, %v1383_v7 }
 0xbf9   :  { %6025 = vtanh.f32 %v1384_v12  ;;  %v5043_v42 = vmul.f32 -1.442695, %v1384_v12 }
 0xbfa   :  { %v1527_v29 = vadd.f32 %v1523_v54, %v1441_v17  ;;  %v1528_v33 = vadd.f32 %v1524_v55, %v1442_v52 }
 0xbfc   :  { %6027 = vtanh.f32 %v1527_v29  ;;  %v5045_v43 = vmul.f32 -1.442695, %v1527_v29  ;;  %v5046_v44 = vmul.f32 -1.442695, %v1528_v33 }
 0xbfd   :  { %6029 = vtanh.f32 %v1528_v33 }
 0xbfe   :  { %6031 = vpow2.f32 %v5042_v41 }
 0xbff   :  { %6033 = vpow2.f32 %v5043_v42 }
 0xc00   :  { %6035 = vpow2.f32 %v5045_v43 }
 0xc01   :  { %6037 = vpow2.f32 %v5046_v44 }
 0xc02   :  { %v6024_v35 = vpop.eup %6023 }
 0xc03   :  { %v6026_v38 = vpop.eup %6025  ;;  %1409 = vrot.lane.b32.xlu0 %v6024_v35, %s6434_s10 }
 0xc04   :  { %1411 = vrot.lane.b32.xlu1 %v6026_v38, %s6434_s10 }
 0xc06   :  { %v6028_v39 = vpop.eup %6027 }
 0xc07   :  { %v6030_v40 = vpop.eup %6029  ;;  %1553 = vrot.lane.b32.xlu0 %v6028_v39, %s6434_s10 }
 0xc08   :  { %1555 = vrot.lane.b32.xlu1 %v6030_v40, %s6434_s10  ;;  %v6032_v46 = vpop.eup %6031 }
 0xc09   :  { %v6034_v48 = vpop.eup %6033  ;;  %v1391_v50 = vadd.f32 1.0, %v6032_v46 }
 0xc0a   :  { %v6036_v10 = vpop.eup %6035  ;;  %v1392_v51 = vadd.f32 1.0, %v6034_v48 }
 0xc0b   :  { %v6038_v14 = vpop.eup %6037  ;;  %6039 = vrcp.f32 %v1391_v50  ;;  %v1535_v26 = vadd.f32 1.0, %v6036_v10 }
 0xc0c   :  { %6041 = vrcp.f32 %v1392_v51  ;;  %v1536_v27 = vadd.f32 1.0, %v6038_v14 }
 0xc0d   :  { %6043 = vrcp.f32 %v1535_v26 }
 0xc0e   :  { %6045 = vrcp.f32 %v1536_v27 }
 0xc15   :  { %v6040_v37 = vpop.eup %6039 }
 0xc16   :  { %v6042_v23 = vpop.eup %6041  ;;  %v1405_v24 = vmul.f32 %v6040_v37, %v1401_v1 }
 0xc17   :  { %v6044_v59 = vpop.eup %6043  ;;  %v1406_v32 = vmul.f32 %v6042_v23, %v1402_v21 }
 0xc18   :  { %v6046_v61 = vpop.eup %6045  ;;  %v1549_v7 = vmul.f32 %v6044_v59, %v1545_v9 }
 0xc19   :  { %v1550_v47 = vmul.f32 %v6046_v61, %v1546_v28 }
 0xc75   :  { %v1410_v56 = vpop.permute.xlu0 %1409 }
 0xc76   :  { %v1412_v31 = vpop.permute.xlu1 %1411  ;;  %v1415_v57 = vmul.f32 %v6040_v37, %v1410_v56 }
 0xc77   :  { %v1416_v58 = vmul.f32 %v6042_v23, %v1412_v31 }
 0xc78   :  { %1419 = vrot.lane.b32.xlu0 %v1415_v57, %s6435_s11 }
 0xc79   :  { %1421 = vrot.lane.b32.xlu1 %v1416_v58, %s6435_s11  ;;  %v1554_v60 = vpop.permute.xlu0 %1553 }
 0xc7a   :  { %v1556_v62 = vpop.permute.xlu1 %1555  ;;  %v1559_v63 = vmul.f32 %v6044_v59, %v1554_v60 }
 0xc7b   :  { %v1560_v0 = vmul.f32 %v6046_v61, %v1556_v62 }
 0xc7c   :  { %1563 = vrot.lane.b32.xlu0 %v1559_v63, %s6435_s11 }
 0xc7d   :  { %1565 = vrot.lane.b32.xlu1 %v1560_v0, %s6435_s11 }
 0xcea   :  { %v1420_v36 = vpop.permute.xlu0 %1419 }
 0xceb   :  { %v1422_v5 = vpop.permute.xlu1 %1421  ;;  %v6839_v22 = vadd.f32 %v1420_v36, %v1405_v24 }
 0xcec   :  { %v6842_v34 = vadd.f32 %v1422_v5, %v1406_v32 }
 0xced   :  { %6047 = vtanh.f32 %v6839_v22 }
 0xcee   :  { %6049 = vtanh.f32 %v6842_v34  ;;  %v1564_v12 = vpop.permute.xlu0 %1563 }
 0xcef   :  { %v1566_v49 = vpop.permute.xlu1 %1565  ;;  %v6846_v18 = vadd.f32 %v1564_v12, %v1549_v7 }
 0xcf0   :  { %v6848_v54 = vadd.f32 %v1566_v49, %v1550_v47 }
 0xcf1   :  { %6051 = vtanh.f32 %v6846_v18 }
 0xcf2   :  { %6053 = vtanh.f32 %v6848_v54 }
 0xcf7   :  { %v6048_v53 = vpop.eup %6047 }
 0xcf8   :  { %v6050_v30 = vpop.eup %6049  ;;  %1431 = vrot.lane.b32.xlu0 %v6048_v53, %s6434_s10 }
 0xcf9   :  { %1433 = vrot.lane.b32.xlu1 %v6050_v30, %s6434_s10 }
 0xcfb   :  { %v6052_v45 = vpop.eup %6051 }
 0xcfc   :  { %v6054_v55 = vpop.eup %6053  ;;  %1575 = vrot.lane.b32.xlu0 %v6052_v45, %s6434_s10 }
 0xcfd   :  { %1577 = vrot.lane.b32.xlu1 %v6054_v55, %s6434_s10 }
 0xd6a   :  { %v1432_v29 = vpop.permute.xlu0 %1431 }
 0xd6b   :  { %v1434_v33 = vpop.permute.xlu1 %1433  ;;  %v1437_v35 = vmul.f32 %v6040_v37, %v1432_v29 }
 0xd6c   :  { %v1438_v38 = vmul.f32 %v6042_v23, %v1434_v33 }
 0xd6d   :  { %v1585_v39 = vrot.slane %v1437_v35, 4  ;;  %v1685_v35 = vrot.slane %v6839_v22, 7 }
 0xd6e   :  { %v1586_v40 = vrot.slane %v1438_v38, 3  ;;  %v1576_v41 = vpop.permute.xlu0 %1575  ;;  %v1686_v38 = vrot.slane %v6842_v34, 7 }
 0xd6f   :  { %v1578_v42 = vpop.permute.xlu1 %1577  ;;  %v1581_v43 = vmul.f32 %v6044_v59, %v1576_v41 }
 0xd70   :  { %v1582_v44 = vmul.f32 %v6046_v61, %v1578_v42  ;;  %v1587_v46 = vsel %vm452_vm3, %v1586_v40, %v1585_v39  ;;  %v1825_v42 = vrot.slane %v6846_v18, 1 }
 0xd71   :  { %v1725_v48 = vrot.slane %v1581_v43, 3  ;;  %1588 = vrot.lane.b32.xlu0 %v1587_v46, %s6435_s11  ;;  %v1826_v46 = vrot.slane %v6848_v54, 1 }
 0xd72   :  { %v1726_v50 = vrot.slane %v1582_v44, 2 }
 0xd74   :  { %v1727_v10 = vsel %vm452_vm3, %v1726_v50, %v1725_v48 }
 0xd75   :  { %1728 = vrot.lane.b32.xlu1 %v1727_v10, %s6435_s11 }
 0xde3   :  { %v1589_v51 = vpop.permute.xlu0 %1588 }
 0xde4   :  { %5412 = vmatmul.mubr.msk.f32.vlgmr.msra.gmra.mrb[10].mxu0 %vm172_vm2, %v1589_v51 }
 0xde5   :  { %5752 = vmatpush3.bf16.msra.mxu0 %v6499_v4  ;;  %5433 = vmatprep.mubr.msk.f32.mxu0 %vm6432_vm1, %v6433_v11 }
 0xde6   :  { %5753 = vmatprep.subr.bf16.mxu0 %v6431_v3 }
 0xde7   :  { %v1729_v14 = vpop.permute.xlu1 %1728 }
 0xde8   :  { %5423 = vmatmul.mubr.msk.f32.vlgmr.msra.gmra.mrb[10].mxu1 %vm172_vm2, %v1729_v14 }
 0xde9   :  { %5755 = vmatpush3.bf16.msra.mxu0 %v6534_v13  ;;  %5758 = vmatpush3.bf16.msra.mxu1 %v6510_v8 }
 0xdea   :  { %5759 = vmatprep.subr.bf16.mxu1 %v6431_v3  ;;  %5444 = vmatprep.mubr.msk.f32.mxu1 %vm6432_vm1, %v6433_v11 }
 0xdeb   :  { %5762 = vmatprep.subr.bf16.mxu0 %v6431_v3 }
 0xded   :  { %5761 = vmatpush3.bf16.msra.mxu1 %v6541_v15 }
 0xdee   :  { %5768 = vmatprep.subr.bf16.mxu1 %v6431_v3 }
 0xeb7   :  { %v1658_v26 = vpop.f32.mrb[10].mxu0 }
 0xeb8   :  { %v1663_v27 = vrot.slane %v1658_v26, 3  ;;  %v1664_v37 = vrot.slane %v1658_v26, 4  ;;  %v5413_v56 = vpop.f32.mrb[11].mxu0 }
 0xeba   :  { %v1667_v23 = vadd.f32 %v1663_v27, %v1297_v25  ;;  %v1668_v31 = vadd.f32 %v1664_v37, %v1298_v2 }
 0xebb   :  { %v1798_v57 = vpop.f32.mrb[10].mxu1 }
 0xebc   :  { %6055 = vtanh.f32 %v1667_v23  ;;  %v1803_v58 = vrot.slane %v1798_v57, 6  ;;  %v5424_v59 = vpop.f32.mrb[11].mxu1  ;;  %v1804_v60 = vrot.slane %v1798_v57, 7  ;;  %v5048_v2 = vmul.f32 -1.442695, %v1667_v23 }
 0xebd   :  { %6057 = vtanh.f32 %v1668_v31  ;;  %v5049_v6 = vmul.f32 -1.442695, %v1668_v31 }
 0xebe   :  { %v1807_v61 = vadd.f32 %v1803_v58, %v1441_v17  ;;  %v1808_v62 = vadd.f32 %v1804_v60, %v1442_v52 }
 0xec0   :  { %6059 = vtanh.f32 %v1807_v61  ;;  %v5051_v17 = vmul.f32 -1.442695, %v1807_v61  ;;  %v5052_v20 = vmul.f32 -1.442695, %v1808_v62 }
 0xec1   :  { %6061 = vtanh.f32 %v1808_v62 }
 0xec2   :  { %6063 = vpow2.f32 %v5048_v2 }
 0xec3   :  { %6065 = vpow2.f32 %v5049_v6 }
 0xec4   :  { %6067 = vpow2.f32 %v5051_v17  ;;  %v6928_v17 = vld [vmem:[#allocation6] sm:$0x8] }
 0xec5   :  { %6069 = vpow2.f32 %v5052_v20  ;;  %v6930_v20 = vld [vmem:[#allocation6 + $0x8] sm:$0x8] }
 0xec6   :  { %v6056_v63 = vpop.eup %6055 }
 0xec7   :  { %v6058_v19 = vpop.eup %6057  ;;  %1693 = vrot.lane.b32.xlu0 %v6056_v63, %s6434_s10 }
 0xec8   :  { %1695 = vrot.lane.b32.xlu1 %v6058_v19, %s6434_s10 }
 0xeca   :  { %v6060_v16 = vpop.eup %6059 }
 0xecb   :  { %v6062_v25 = vpop.eup %6061  ;;  %1833 = vrot.lane.b32.xlu0 %v6060_v16, %s6434_s10 }
 0xecc   :  { %1835 = vrot.lane.b32.xlu1 %v6062_v25, %s6434_s10  ;;  %v6064_v52 = vpop.eup %6063 }
 0xecd   :  { %v6066_v0 = vpop.eup %6065  ;;  %v1675_v1 = vadd.f32 1.0, %v6064_v52  ;;  %v1865_v52 = vunpack.c.l.bf16 %v6928_v17 }
 0xece   :  { %v6068_v21 = vpop.eup %6067  ;;  %v1676_v24 = vadd.f32 1.0, %v6066_v0  ;;  %v1866_v0 = vunpack.c.l.bf16 %v6930_v20 }
 0xecf   :  { %v6070_v32 = vpop.eup %6069  ;;  %6071 = vrcp.f32 %v1675_v1  ;;  %v1815_v36 = vadd.f32 1.0, %v6068_v21  ;;  %v6934_v21 = vld [vmem:[#allocation7 + $0x4] sm:$0x1] }
 0xed0   :  { %6073 = vrcp.f32 %v1676_v24  ;;  %v1816_v9 = vadd.f32 1.0, %v6070_v32 }
 0xed1   :  { %6075 = vrcp.f32 %v1815_v36 }
 0xed2   :  { %6077 = vrcp.f32 %v1816_v9  ;;  %v6936_v9 = vld [vmem:[#allocation7 + $0xc] sm:$0x1] }
 0xed9   :  { %v6072_v5 = vpop.eup %6071 }
 0xeda   :  { %v6074_v7 = vpop.eup %6073  ;;  %v1689_v39 = vmul.f32 %v6072_v5, %v1685_v35 }
 0xedb   :  { %v6076_v53 = vpop.eup %6075  ;;  %v1690_v40 = vmul.f32 %v6074_v7, %v1686_v38 }
 0xedc   :  { %v6078_v45 = vpop.eup %6077  ;;  %v1829_v50 = vmul.f32 %v6076_v53, %v1825_v42 }
 0xedd   :  { %v1830_v22 = vmul.f32 %v6078_v45, %v1826_v46 }
 0xf39   :  { %v1694_v28 = vpop.permute.xlu0 %1693 }
 0xf3a   :  { %v1696_v47 = vpop.permute.xlu1 %1695  ;;  %v1699_v12 = vmul.f32 %v6072_v5, %v1694_v28 }
 0xf3b   :  { %v1700_v49 = vmul.f32 %v6074_v7, %v1696_v47  ;;  %v2010_v47 = vunpack.c.l.bf16 %v6936_v9 }
 0xf3c   :  { %1703 = vrot.lane.b32.xlu0 %v1699_v12, %s6435_s11 }
 0xf3d   :  { %1705 = vrot.lane.b32.xlu1 %v1700_v49, %s6435_s11  ;;  %v1834_v30 = vpop.permute.xlu0 %1833 }
 0xf3e   :  { %v1836_v55 = vpop.permute.xlu1 %1835  ;;  %v1839_v29 = vmul.f32 %v6076_v53, %v1834_v30 }
 0xf3f   :  { %v1840_v33 = vmul.f32 %v6078_v45, %v1836_v55 }
 0xf40   :  { %1843 = vrot.lane.b32.xlu0 %v1839_v29, %s6435_s11 }
 0xf41   :  { %1845 = vrot.lane.b32.xlu1 %v1840_v33, %s6435_s11 }
 0xfae   :  { %v1704_v41 = vpop.permute.xlu0 %1703 }
 0xfaf   :  { %v1706_v43 = vpop.permute.xlu1 %1705  ;;  %v6893_v44 = vadd.f32 %v1704_v41, %v1689_v39 }
 0xfb0   :  { %v6896_v48 = vadd.f32 %v1706_v43, %v1690_v40 }
 0xfb1   :  { %6079 = vtanh.f32 %v6893_v44 }
 0xfb2   :  { %6081 = vtanh.f32 %v6896_v48  ;;  %v1844_v10 = vpop.permute.xlu0 %1843 }
 0xfb3   :  { %v1846_v34 = vpop.permute.xlu1 %1845  ;;  %v6900_v51 = vadd.f32 %v1844_v10, %v1829_v50 }
 0xfb4   :  { %v6902_v14 = vadd.f32 %v1846_v34, %v1830_v22 }
 0xfb5   :  { %6083 = vtanh.f32 %v6900_v51 }
 0xfb6   :  { %6085 = vtanh.f32 %v6902_v14 }
 0xfbb   :  { %v6080_v18 = vpop.eup %6079 }
 0xfbc   :  { %v6082_v54 = vpop.eup %6081  ;;  %1715 = vrot.lane.b32.xlu0 %v6080_v18, %s6434_s10 }
 0xfbd   :  { %1717 = vrot.lane.b32.xlu1 %v6082_v54, %s6434_s10 }
 0xfbf   :  { %v6084_v26 = vpop.eup %6083 }
 0xfc0   :  { %v6086_v27 = vpop.eup %6085  ;;  %1855 = vrot.lane.b32.xlu0 %v6084_v26, %s6434_s10 }
 0xfc1   :  { %1857 = vrot.lane.b32.xlu1 %v6086_v27, %s6434_s10 }
0x102e   :  { %v1716_v37 = vpop.permute.xlu0 %1715 }
0x102f   :  { %v1718_v56 = vpop.permute.xlu1 %1717  ;;  %v1721_v23 = vmul.f32 %v6072_v5, %v1716_v37 }
0x1030   :  { %v1722_v31 = vmul.f32 %v6074_v7, %v1718_v56  ;;  %v2009_v7 = vunpack.c.l.bf16 %v6934_v21 }
0x1031   :  { %v1869_v57 = vrot.slane %v1721_v23, 5 }
0x1032   :  { %v1870_v58 = vrot.slane %v1722_v31, 4  ;;  %v1856_v59 = vpop.permute.xlu0 %1855 }
0x1033   :  { %v1858_v60 = vpop.permute.xlu1 %1857  ;;  %v1861_v61 = vmul.f32 %v6076_v53, %v1856_v59 }
0x1034   :  { %v1862_v62 = vmul.f32 %v6078_v45, %v1858_v60  ;;  %v1871_v63 = vsel %vm452_vm3, %v1870_v58, %v1869_v57 }
0x1035   :  { %v2013_v19 = vrot.slane %v1861_v61, 2  ;;  %1872 = vrot.lane.b32.xlu0 %v1871_v63, %s6435_s11  ;;  %v1970_v63 = vrot.slane %v6896_v48, 7 }
0x1036   :  { %v2014_v16 = vrot.slane %v1862_v62, 1  ;;  %v1969_v62 = vrot.slane %v6893_v44, 7 }
0x1038   :  { %v2015_v25 = vsel %vm452_vm3, %v2014_v16, %v2013_v19 }
0x1039   :  { %2016 = vrot.lane.b32.xlu1 %v2015_v25, %s6435_s11 }
0x10a7   :  { %v1873_v2 = vpop.permute.xlu0 %1872 }
0x10a8   :  { %5434 = vmatmul.mubr.msk.f32.vlgmr.msra.gmra.mrb[12].mxu0 %vm172_vm2, %v1873_v2  ;;  %v2112_v2 = vrot.slane %v6900_v51, 1 }
0x10a9   :  { %5764 = vmatpush3.bf16.msra.mxu0 %v6499_v4  ;;  %5455 = vmatprep.mubr.msk.f32.mxu0 %vm6432_vm1, %v6433_v11 }
0x10aa   :  { %5765 = vmatprep.subr.bf16.mxu0 %v6431_v3 }
0x10ab   :  { %v2017_v6 = vpop.permute.xlu1 %2016 }
0x10ac   :  { %5445 = vmatmul.mubr.msk.f32.vlgmr.msra.gmra.mrb[12].mxu1 %vm172_vm2, %v2017_v6 }
0x10ad   :  { %5767 = vmatpush3.bf16.msra.mxu0 %v6534_v13  ;;  %5770 = vmatpush3.bf16.msra.mxu1 %v6510_v8 }
0x10ae   :  { %5771 = vmatprep.subr.bf16.mxu1 %v6431_v3  ;;  %5466 = vmatprep.mubr.msk.f32.mxu1 %vm6432_vm1, %v6433_v11 }
0x10af   :  { %5774 = vmatprep.subr.bf16.mxu0 %v6431_v3 }
0x10b1   :  { %5773 = vmatpush3.bf16.msra.mxu1 %v6541_v15 }
0x10b2   :  { %5780 = vmatprep.subr.bf16.mxu1 %v6431_v3 }
0x117b   :  { %v1942_v1 = vpop.f32.mrb[12].mxu0 }
0x117c   :  { %v1947_v24 = vrot.slane %v1942_v1, 2  ;;  %v1948_v32 = vrot.slane %v1942_v1, 3  ;;  %v5435_v36 = vpop.f32.mrb[13].mxu0 }
0x117d   :  { %v2113_v36 = vrot.slane %v6902_v14, 1 }
0x117e   :  { %v1951_v5 = vadd.f32 %v1947_v24, %v1865_v52  ;;  %v1952_v28 = vadd.f32 %v1948_v32, %v1866_v0 }
0x117f   :  { %v2086_v12 = vpop.f32.mrb[12].mxu1 }
0x1180   :  { %6087 = vtanh.f32 %v1951_v5  ;;  %v2091_v49 = vrot.slane %v2086_v12, 7  ;;  %v5446_v53 = vpop.f32.mrb[13].mxu1  ;;  %v2095_v45 = vadd.f32 %v2086_v12, %v2010_v47  ;;  %v5054_v38 = vmul.f32 -1.442695, %v1951_v5 }
0x1181   :  { %6089 = vtanh.f32 %v1952_v28  ;;  %v5055_v39 = vmul.f32 -1.442695, %v1952_v28 }
0x1182   :  { %v2094_v30 = vadd.f32 %v2091_v49, %v2009_v7  ;;  %v5058_v41 = vmul.f32 -1.442695, %v2095_v45 }
0x1184   :  { %6091 = vtanh.f32 %v2094_v30  ;;  %v5057_v40 = vmul.f32 -1.442695, %v2094_v30 }
0x1185   :  { %6093 = vtanh.f32 %v2095_v45 }
0x1186   :  { %6095 = vpow2.f32 %v5054_v38 }
0x1187   :  { %6097 = vpow2.f32 %v5055_v39 }
0x1188   :  { %6099 = vpow2.f32 %v5057_v40 }
0x1189   :  { %6101 = vpow2.f32 %v5058_v41 }
0x118a   :  { %v6088_v55 = vpop.eup %6087 }
0x118b   :  { %v6090_v29 = vpop.eup %6089  ;;  %1977 = vrot.lane.b32.xlu0 %v6088_v55, %s6434_s10 }
0x118c   :  { %1979 = vrot.lane.b32.xlu1 %v6090_v29, %s6434_s10 }
0x118e   :  { %v6092_v33 = vpop.eup %6091 }
0x118f   :  { %2120 = vrot.lane.b32.xlu0 %v6092_v33, %s6434_s10  ;;  %v6094_v35 = vpop.eup %6093 }
0x1190   :  { %2122 = vrot.lane.b32.xlu1 %v6094_v35, %s6434_s10  ;;  %v6096_v42 = vpop.eup %6095 }
0x1191   :  { %v6098_v43 = vpop.eup %6097  ;;  %v1959_v46 = vadd.f32 1.0, %v6096_v42 }
0x1192   :  { %v6100_v50 = vpop.eup %6099  ;;  %v1960_v22 = vadd.f32 1.0, %v6098_v43 }
0x1193   :  { %v6102_v10 = vpop.eup %6101  ;;  %6103 = vrcp.f32 %v1959_v46  ;;  %v2102_v34 = vadd.f32 1.0, %v6100_v50 }
0x1194   :  { %6105 = vrcp.f32 %v1960_v22  ;;  %v2103_v18 = vadd.f32 1.0, %v6102_v10 }
0x1195   :  { %6107 = vrcp.f32 %v2102_v34 }
0x1196   :  { %6109 = vrcp.f32 %v2103_v18 }
0x119d   :  { %v6104_v54 = vpop.eup %6103 }
0x119e   :  { %v6106_v27 = vpop.eup %6105  ;;  %v1973_v19 = vmul.f32 %v6104_v54, %v1969_v62 }
0x119f   :  { %v6108_v31 = vpop.eup %6107  ;;  %v1974_v16 = vmul.f32 %v6106_v27, %v1970_v63 }
0x11a0   :  { %v6110_v59 = vpop.eup %6109  ;;  %v2116_v32 = vmul.f32 %v6108_v31, %v2112_v2 }
0x11a1   :  { %v2117_v48 = vmul.f32 %v6110_v59, %v2113_v36 }
0x11fd   :  { %v1978_v26 = vpop.permute.xlu0 %1977 }
0x11fe   :  { %v1980_v37 = vpop.permute.xlu1 %1979  ;;  %v1983_v56 = vmul.f32 %v6104_v54, %v1978_v26 }
0x11ff   :  { %v1984_v23 = vmul.f32 %v6106_v27, %v1980_v37 }
0x1200   :  { %1987 = vrot.lane.b32.xlu0 %v1983_v56, %s6435_s11 }
0x1201   :  { %1989 = vrot.lane.b32.xlu1 %v1984_v23, %s6435_s11  ;;  %v2121_v57 = vpop.permute.xlu0 %2120 }
0x1202   :  { %v2126_v58 = vmul.f32 %v6108_v31, %v2121_v57  ;;  %v2123_v60 = vpop.permute.xlu1 %2122 }
0x1203   :  { %v2127_v61 = vmul.f32 %v6110_v59, %v2123_v60 }
0x1204   :  { %2130 = vrot.lane.b32.xlu0 %v2126_v58, %s6435_s11 }
0x1205   :  { %2132 = vrot.lane.b32.xlu1 %v2127_v61, %s6435_s11 }
0x1272   :  { %v1988_v25 = vpop.permute.xlu0 %1987 }
0x1273   :  { %v1990_v6 = vpop.permute.xlu1 %1989  ;;  %v6959_v1 = vadd.f32 %v1988_v25, %v1973_v19 }
0x1274   :  { %v6961_v24 = vadd.f32 %v1990_v6, %v1974_v16 }
0x1275   :  { %6111 = vtanh.f32 %v6959_v1 }
0x1276   :  { %6113 = vtanh.f32 %v6961_v24  ;;  %v2131_v44 = vpop.permute.xlu0 %2130 }
0x1277   :  { %v6966_v5 = vadd.f32 %v2131_v44, %v2116_v32  ;;  %v2133_v28 = vpop.permute.xlu1 %2132 }
0x1278   :  { %v6969_v51 = vadd.f32 %v2133_v28, %v2117_v48 }
0x1279   :  { %6115 = vtanh.f32 %v6966_v5 }
0x127a   :  { %6117 = vtanh.f32 %v6969_v51 }
0x127f   :  { %v6112_v12 = vpop.eup %6111 }
0x1280   :  { %v6114_v49 = vpop.eup %6113  ;;  %1999 = vrot.lane.b32.xlu0 %v6112_v12, %s6434_s10 }
0x1281   :  { %2001 = vrot.lane.b32.xlu1 %v6114_v49, %s6434_s10 }
0x1283   :  { %v6116_v14 = vpop.eup %6115 }
0x1284   :  { %2142 = vrot.lane.b32.xlu0 %v6116_v14, %s6434_s10  ;;  %v6118_v53 = vpop.eup %6117 }
0x1285   :  { %2144 = vrot.lane.b32.xlu1 %v6118_v53, %s6434_s10 }
0x12f2   :  { %v2000_v30 = vpop.permute.xlu0 %1999 }
0x12f3   :  { %v2002_v45 = vpop.permute.xlu1 %2001  ;;  %v2005_v55 = vmul.f32 %v6104_v54, %v2000_v30  ;;  %v2252_v30 = vrot.slane %v6959_v1, 7 }
0x12f4   :  { %v2006_v29 = vmul.f32 %v6106_v27, %v2002_v45  ;;  %v2253_v45 = vrot.slane %v6961_v24, 7 }
0x12f5   :  { %v2152_v33 = vrot.slane %v2005_v55, 6 }
0x12f6   :  { %v2153_v35 = vrot.slane %v2006_v29, 5  ;;  %v2143_v38 = vpop.permute.xlu0 %2142 }
0x12f7   :  { %v2148_v39 = vmul.f32 %v6108_v31, %v2143_v38  ;;  %v2145_v41 = vpop.permute.xlu1 %2144 }
0x12f8   :  { %v2154_v40 = vsel %vm452_vm3, %v2153_v35, %v2152_v33  ;;  %v2149_v43 = vmul.f32 %v6110_v59, %v2145_v41  ;;  %v2391_v41 = vrot.slane %v6969_v51, 1 }
0x12f9   :  { %v2292_v42 = vrot.slane %v2148_v39, 1  ;;  %2155 = vrot.lane.b32.xlu0 %v2154_v40, %s6435_s11  ;;  %v2390_v39 = vrot.slane %v6966_v5, 1 }
0x12fb   :  { %v2293_v46 = vsel %vm452_vm3, %v2149_v43, %v2292_v42 }
0x12fc   :  { %2294 = vrot.lane.b32.xlu1 %v2293_v46, %s6435_s11 }
0x136b   :  { %v2156_v50 = vpop.permute.xlu0 %2155 }
0x136c   :  { %5456 = vmatmul.mubr.msk.f32.vlgmr.msra.gmra.mrb[14].mxu0 %vm172_vm2, %v2156_v50 }
0x136d   :  { %5776 = vmatpush3.bf16.msra.mxu0 %v6499_v4  ;;  %5477 = vmatprep.mubr.msk.f32.mxu0 %vm6432_vm1, %v6433_v11 }
0x136e   :  { %5777 = vmatprep.subr.bf16.mxu0 %v6431_v3  ;;  %v2295_v22 = vpop.permute.xlu1 %2294 }
0x136f   :  { %5467 = vmatmul.mubr.msk.f32.vlgmr.msra.gmra.mrb[14].mxu1 %vm172_vm2, %v2295_v22 }
0x1370   :  { %5782 = vmatpush3.bf16.msra.mxu1 %v6510_v8  ;;  %5488 = vmatprep.mubr.msk.f32.mxu1 %vm6432_vm1, %v6433_v11 }
0x1371   :  { %5779 = vmatpush3.bf16.msra.mxu0 %v6534_v13  ;;  %5783 = vmatprep.subr.bf16.mxu1 %v6431_v3 }
0x1372   :  { %5786 = vmatprep.subr.bf16.mxu0 %v6431_v3 }
0x1374   :  { %5785 = vmatpush3.bf16.msra.mxu1 %v6541_v15 }
0x1375   :  { %5792 = vmatprep.subr.bf16.mxu1 %v6431_v3 }
0x143f   :  { %v2225_v10 = vpop.f32.mrb[14].mxu0 }
0x1440   :  { %v2230_v34 = vrot.slane %v2225_v10, 1  ;;  %v2231_v18 = vrot.slane %v2225_v10, 2  ;;  %v5457_v54 = vpop.f32.mrb[15].mxu0 }
0x1441   :  { %v38_v54 = vld [vmem:[%s7598_s0 + $0x18] sm:$0xf] }
0x1442   :  { %v2234_v26 = vadd.f32 %v2230_v34, %v1865_v52  ;;  %v2235_v27 = vadd.f32 %v2231_v18, %v1866_v0  ;;  %v2364_v37 = vpop.f32.mrb[14].mxu1  ;;  %v34_v18 = vld [vmem:[%s7598_s0 + $0x8] sm:$0xf]  ;;  %39 = vst [vmem:[#allocation6 + $0xc] sm:$0xf] %v38_v54 }
0x1443   :  { %v2369_v56 = vrot.slane %v2364_v37, 1  ;;  %v5468_v23 = vpop.f32.mrb[15].mxu1  ;;  %v2372_v31 = vadd.f32 %v2364_v37, %v2009_v7  ;;  %35 = vst [vmem:[#allocation6 + $0x4] sm:$0xf] %v34_v18 }
0x1444   :  { %6119 = vtanh.f32 %v2234_v26  ;;  %v5060_v52 = vmul.f32 -1.442695, %v2234_v26  ;;  %v5061_v0 = vmul.f32 -1.442695, %v2235_v27 }
0x1445   :  { %6121 = vtanh.f32 %v2235_v27  ;;  %v2373_v57 = vadd.f32 %v2369_v56, %v2010_v47  ;;  %v5063_v21 = vmul.f32 -1.442695, %v2372_v31 }
0x1446   :  { %6123 = vtanh.f32 %v2372_v31 }
0x1447   :  { %6125 = vtanh.f32 %v2373_v57  ;;  %v5064_v9 = vmul.f32 -1.442695, %v2373_v57 }
0x1448   :  { %6127 = vpow2.f32 %v5060_v52 }
0x1449   :  { %6129 = vpow2.f32 %v5061_v0 }
0x144a   :  { %6131 = vpow2.f32 %v5063_v21 }
0x144b   :  { %6133 = vpow2.f32 %v5064_v9  ;;  %v5013_v9 = vld [vmem:[%s7599_s1 + $0x4] sm:$0xf] }
0x144c   :  { %92 = vst [vmem:[#allocation7] sm:$0xf] %v5013_v9 }
0x144e   :  { %v6120_v58 = vpop.eup %6119 }
0x144f   :  { %v6122_v59 = vpop.eup %6121  ;;  %2260 = vrot.lane.b32.xlu0 %v6120_v58, %s6434_s10 }
0x1450   :  { %2262 = vrot.lane.b32.xlu1 %v6122_v59, %s6434_s10  ;;  %v6124_v17 = vpop.eup %6123 }
0x1451   :  { %v6126_v20 = vpop.eup %6125 }
0x1452   :  { %v6128_v7 = vpop.eup %6127 }
0x1453   :  { %2400 = vrot.lane.b32.xlu0 %v6126_v20, %s6434_s10  ;;  %v6130_v47 = vpop.eup %6129  ;;  %v2242_v60 = vadd.f32 1.0, %v6128_v7  ;;  %v5015_v7 = vld [vmem:[%s7599_s1 + $0x14] sm:$0xf] }
0x1454   :  { %2398 = vrot.lane.b32.xlu1 %v6124_v17, %s6434_s10  ;;  %v2243_v61 = vadd.f32 1.0, %v6130_v47  ;;  %v6132_v62 = vpop.eup %6131  ;;  %96 = vst [vmem:[#allocation7 + $0x8] sm:$0xf] %v5015_v7  ;;  %v7060_v47 = vld [vmem:[#allocation6 + $0xc] sm:$0x1] }
0x1455   :  { %v6134_v63 = vpop.eup %6133  ;;  %6135 = vrcp.f32 %v2242_v60  ;;  %v2380_v19 = vadd.f32 1.0, %v6132_v62  ;;  %v2431_v60 = vunpack.c.l.bf16 %v7060_v47 }
0x1456   :  { %6137 = vrcp.f32 %v2243_v61  ;;  %v2381_v16 = vadd.f32 1.0, %v6134_v63 }
0x1457   :  { %6139 = vrcp.f32 %v2380_v19  ;;  %v7063_v19 = vld [vmem:[#allocation7] sm:$0x8] }
0x1458   :  { %6141 = vrcp.f32 %v2381_v16 }
0x145b   :  { %v7065_v16 = vld [vmem:[#allocation7 + $0x8] sm:$0x8] }
0x145f   :  { %v6136_v25 = vpop.eup %6135 }
0x1460   :  { %v6138_v6 = vpop.eup %6137  ;;  %v2256_v55 = vmul.f32 %v6136_v25, %v2252_v30 }
0x1461   :  { %v6140_v48 = vpop.eup %6139  ;;  %v2257_v29 = vmul.f32 %v6138_v6, %v2253_v45 }
0x1462   :  { %v6142_v49 = vpop.eup %6141  ;;  %v2394_v42 = vmul.f32 %v6140_v48, %v2390_v39 }
0x1463   :  { %v2395_v24 = vmul.f32 %v6142_v49, %v2391_v41 }
0x14c1   :  { %v2261_v2 = vpop.permute.xlu0 %2260 }
0x14c2   :  { %v2263_v32 = vpop.permute.xlu1 %2262  ;;  %v2266_v36 = vmul.f32 %v6136_v25, %v2261_v2  ;;  %v7069_v2 = vld [vmem:[#allocation6 + $0x4] sm:$0x1] }
0x14c3   :  { %v2267_v44 = vmul.f32 %v6138_v6, %v2263_v32  ;;  %v2574_v32 = vunpack.c.l.bf16 %v7065_v16 }
0x14c4   :  { %2270 = vrot.lane.b32.xlu0 %v2266_v36, %s6435_s11 }
0x14c5   :  { %2272 = vrot.lane.b32.xlu1 %v2267_v44, %s6435_s11  ;;  %v2401_v14 = vpop.permute.xlu0 %2400  ;;  %v2430_v44 = vunpack.c.l.bf16 %v7069_v2 }
0x14c6   :  { %v2399_v28 = vpop.permute.xlu1 %2398  ;;  %v2405_v53 = vmul.f32 %v6142_v49, %v2401_v14 }
0x14c7   :  { %v2404_v12 = vmul.f32 %v6140_v48, %v2399_v28 }
0x14c8   :  { %2410 = vrot.lane.b32.xlu0 %v2405_v53, %s6435_s11 }
0x14c9   :  { %2408 = vrot.lane.b32.xlu1 %v2404_v12, %s6435_s11 }
0x1536   :  { %v2271_v33 = vpop.permute.xlu0 %2270 }
0x1537   :  { %v2273_v35 = vpop.permute.xlu1 %2272  ;;  %v7012_v38 = vadd.f32 %v2271_v33, %v2256_v55 }
0x1538   :  { %v7015_v40 = vadd.f32 %v2273_v35, %v2257_v29 }
0x1539   :  { %6143 = vtanh.f32 %v7012_v38 }
0x153a   :  { %6145 = vtanh.f32 %v7015_v40  ;;  %v2411_v46 = vpop.permute.xlu0 %2410 }
0x153b   :  { %v2409_v1 = vpop.permute.xlu1 %2408  ;;  %v7023_v50 = vadd.f32 %v2411_v46, %v2395_v24 }
0x153c   :  { %v7020_v43 = vadd.f32 %v2409_v1, %v2394_v42 }
0x153d   :  { %v2677_v9 = vrot.slane %v7023_v50, 1 }
0x153e   :  { %6147 = vtanh.f32 %v7020_v43 }
0x153f   :  { %6149 = vtanh.f32 %v7023_v50 }
0x1543   :  { %v6144_v5 = vpop.eup %6143 }
0x1544   :  { %v6146_v22 = vpop.eup %6145  ;;  %2282 = vrot.lane.b32.xlu0 %v6144_v5, %s6434_s10 }
0x1545   :  { %2284 = vrot.lane.b32.xlu1 %v6146_v22, %s6434_s10 }
0x1548   :  { %v6148_v51 = vpop.eup %6147 }
0x1549   :  { %2420 = vrot.lane.b32.xlu1 %v6148_v51, %s6434_s10  ;;  %v6150_v10 = vpop.eup %6149 }
0x154a   :  { %2422 = vrot.lane.b32.xlu0 %v6150_v10, %s6434_s10 }
0x15b6   :  { %v2283_v34 = vpop.permute.xlu0 %2282 }
0x15b7   :  { %v2285_v26 = vpop.permute.xlu1 %2284  ;;  %v2288_v27 = vmul.f32 %v6136_v25, %v2283_v34 }
0x15b8   :  { %v2289_v37 = vmul.f32 %v6138_v6, %v2285_v26  ;;  %v2573_v6 = vunpack.c.l.bf16 %v7063_v19 }
0x15b9   :  { %v2434_v56 = vrot.slane %v2288_v27, 7 }
0x15ba   :  { %v2435_v23 = vrot.slane %v2289_v37, 6 }
0x15bb   :  { %v2421_v57 = vpop.permute.xlu1 %2420 }
0x15bc   :  { %v2436_v31 = vsel %vm452_vm3, %v2435_v23, %v2434_v56  ;;  %v2423_v58 = vpop.permute.xlu0 %2422  ;;  %v2426_v17 = vmul.f32 %v6140_v48, %v2421_v57 }
0x15bd   :  { %2437 = vrot.lane.b32.xlu0 %v2436_v31, %s6435_s11  ;;  %v2427_v59 = vmul.f32 %v6142_v49, %v2423_v58 }
0x15bf   :  { %v2577_v20 = vrot.slane %v2427_v59, 7 }
0x15c1   :  { %v2578_v52 = vsel %vm452_vm3, %v2577_v20, %v2426_v17  ;;  %v2534_v17 = vrot.slane %v7015_v40, 7 }
0x15c2   :  { %2579 = vrot.lane.b32.xlu1 %v2578_v52, %s6435_s11 }
0x162f   :  { %v2438_v0 = vpop.permute.xlu0 %2437 }
0x1630   :  { %5478 = vmatmul.mubr.msk.f32.vlgmr.msra.gmra.mrb[16].mxu0 %vm172_vm2, %v2438_v0 }
0x1631   :  { %5788 = vmatpush3.bf16.msra.mxu0 %v6499_v4  ;;  %5499 = vmatprep.mubr.msk.f32.mxu0 %vm6432_vm1, %v6433_v11 }
0x1632   :  { %5789 = vmatprep.subr.bf16.mxu0 %v6431_v3 }
0x1634   :  { %v2580_v21 = vpop.permute.xlu1 %2579 }
0x1635   :  { %5791 = vmatpush3.bf16.msra.mxu0 %v6534_v13  ;;  %5489 = vmatmul.mubr.msk.f32.vlgmr.msra.gmra.mrb[16].mxu1 %vm172_vm2, %v2580_v21  ;;  %v2676_v21 = vrot.slane %v7020_v43, 1 }
0x1636   :  { %5798 = vmatprep.subr.bf16.mxu0 %v6431_v3  ;;  %5794 = vmatpush3.bf16.msra.mxu1 %v6510_v8 }
0x1637   :  { %5510 = vmatprep.mubr.msk.f32.mxu1 %vm6432_vm1, %v6433_v11  ;;  %5795 = vmatprep.subr.bf16.mxu1 %v6431_v3 }
0x163a   :  { %5797 = vmatpush3.bf16.msra.mxu1 %v6541_v15 }
0x163b   :  { %5804 = vmatprep.subr.bf16.mxu1 %v6431_v3 }
0x1703   :  { %v2507_v61 = vpop.f32.mrb[16].mxu0 }
0x1704   :  { %v2512_v62 = vrot.slane %v2507_v61, 1  ;;  %v5479_v63 = vpop.f32.mrb[17].mxu0  ;;  %v2515_v53 = vadd.f32 %v2507_v61, %v2430_v44 }
0x1705   :  { %v2533_v63 = vrot.slane %v7012_v38, 7 }
0x1706   :  { %v2516_v25 = vadd.f32 %v2512_v62, %v2431_v60  ;;  %v5066_v41 = vmul.f32 -1.442695, %v2515_v53 }
0x1708   :  { %6151 = vtanh.f32 %v2516_v25  ;;  %v2649_v36 = vpop.f32.mrb[16].mxu1  ;;  %v5067_v33 = vmul.f32 -1.442695, %v2516_v25 }
0x1709   :  { %v2654_v48 = vrot.slane %v2649_v36, 1  ;;  %v2655_v28 = vrot.slane %v2649_v36, 2  ;;  %v5490_v12 = vpop.f32.mrb[17].mxu1 }
0x170b   :  { %v2658_v49 = vadd.f32 %v2654_v48, %v2573_v6  ;;  %v2659_v14 = vadd.f32 %v2655_v28, %v2574_v32 }
0x170d   :  { %6153 = vtanh.f32 %v2658_v49  ;;  %v5069_v35 = vmul.f32 -1.442695, %v2658_v49  ;;  %v5070_v39 = vmul.f32 -1.442695, %v2659_v14 }
0x170e   :  { %6155 = vtanh.f32 %v2659_v14 }
0x170f   :  { %6157 = vtanh.f32 %v2515_v53 }
0x1710   :  { %6159 = vpow2.f32 %v5067_v33 }
0x1711   :  { %6161 = vpow2.f32 %v5069_v35 }
0x1712   :  { %v6152_v30 = vpop.eup %6151  ;;  %6163 = vpow2.f32 %v5070_v39 }
0x1713   :  { %2543 = vrot.lane.b32.xlu0 %v6152_v30, %s6434_s10  ;;  %6165 = vpow2.f32 %v5066_v41 }
0x1717   :  { %v6154_v45 = vpop.eup %6153 }
0x1718   :  { %v6156_v55 = vpop.eup %6155  ;;  %2684 = vrot.lane.b32.xlu1 %v6154_v45, %s6434_s10 }
0x1719   :  { %2686 = vrot.lane.b32.xlu0 %v6156_v55, %s6434_s10  ;;  %v6158_v29 = vpop.eup %6157 }
0x171a   :  { %v6160_v42 = vpop.eup %6159 }
0x171b   :  { %v2524_v1 = vadd.f32 1.0, %v6160_v42  ;;  %v6162_v24 = vpop.eup %6161 }
0x171c   :  { %2541 = vrot.lane.b32.xlu1 %v6158_v29, %s6434_s10  ;;  %v6164_v46 = vpop.eup %6163  ;;  %v2666_v5 = vadd.f32 1.0, %v6162_v24 }
0x171d   :  { %6167 = vrcp.f32 %v2524_v1  ;;  %v6166_v22 = vpop.eup %6165  ;;  %v2667_v51 = vadd.f32 1.0, %v6164_v46 }
0x171e   :  { %v2523_v10 = vadd.f32 1.0, %v6166_v22  ;;  %6169 = vrcp.f32 %v2666_v5 }
0x171f   :  { %6171 = vrcp.f32 %v2667_v51 }
0x1720   :  { %6173 = vrcp.f32 %v2523_v10 }
0x1727   :  { %v6168_v34 = vpop.eup %6167 }
0x1728   :  { %v6170_v26 = vpop.eup %6169  ;;  %v2538_v20 = vmul.f32 %v6168_v34, %v2534_v17 }
0x1729   :  { %v6172_v37 = vpop.eup %6171  ;;  %v2680_v7 = vmul.f32 %v6170_v26, %v2676_v21 }
0x172a   :  { %v6174_v57 = vpop.eup %6173  ;;  %v2681_v61 = vmul.f32 %v6172_v37, %v2677_v9 }
0x172b   :  { %v2537_v40 = vmul.f32 %v6174_v57, %v2533_v63 }
0x1785   :  { %v2544_v18 = vpop.permute.xlu0 %2543 }
0x1786   :  { %v2548_v54 = vmul.f32 %v6168_v34, %v2544_v18 }
0x1788   :  { %2553 = vrot.lane.b32.xlu0 %v2548_v54, %s6435_s11 }
0x178a   :  { %v2685_v27 = vpop.permute.xlu1 %2684 }
0x178b   :  { %v2687_v56 = vpop.permute.xlu0 %2686  ;;  %v2690_v23 = vmul.f32 %v6170_v26, %v2685_v27 }
0x178c   :  { %v2691_v31 = vmul.f32 %v6172_v37, %v2687_v56 }
0x178d   :  { %2694 = vrot.lane.b32.xlu1 %v2690_v23, %s6435_s11 }
0x178e   :  { %2696 = vrot.lane.b32.xlu0 %v2691_v31, %s6435_s11  ;;  %v2542_v58 = vpop.permute.xlu1 %2541 }
0x178f   :  { %v2547_v59 = vmul.f32 %v6174_v57, %v2542_v58 }
0x1791   :  { %2551 = vrot.lane.b32.xlu1 %v2547_v59, %s6435_s11 }
0x17fa   :  { %v2554_v52 = vpop.permute.xlu0 %2553 }
0x17fb   :  { %v7089_v0 = vadd.f32 %v2554_v52, %v2538_v20 }
0x17fd   :  { %6175 = vtanh.f32 %v7089_v0 }
0x17ff   :  { %v2695_v62 = vpop.permute.xlu1 %2694 }
0x1800   :  { %v2697_v25 = vpop.permute.xlu0 %2696  ;;  %v7095_v36 = vadd.f32 %v2695_v62, %v2680_v7 }
0x1801   :  { %v7097_v48 = vadd.f32 %v2697_v25, %v2681_v61 }
0x1802   :  { %6177 = vtanh.f32 %v7095_v36 }
0x1803   :  { %6179 = vtanh.f32 %v7097_v48  ;;  %v2552_v43 = vpop.permute.xlu1 %2551 }
0x1804   :  { %v7101_v28 = vadd.f32 %v2552_v43, %v2537_v40 }
0x1806   :  { %6181 = vtanh.f32 %v7101_v28 }
0x1807   :  { %v6176_v50 = vpop.eup %6175 }
0x1808   :  { %2565 = vrot.lane.b32.xlu0 %v6176_v50, %s6434_s10 }
0x180c   :  { %v6178_v12 = vpop.eup %6177 }
0x180d   :  { %v6180_v38 = vpop.eup %6179  ;;  %2706 = vrot.lane.b32.xlu1 %v6178_v12, %s6434_s10 }
0x180e   :  { %2708 = vrot.lane.b32.xlu0 %v6180_v38, %s6434_s10 }
0x1810   :  { %v6182_v49 = vpop.eup %6181 }
0x1811   :  { %2563 = vrot.lane.b32.xlu1 %v6182_v49, %s6434_s10 }
0x187a   :  { %v2566_v14 = vpop.permute.xlu0 %2565 }
0x187b   :  { %v2570_v30 = vmul.f32 %v6168_v34, %v2566_v14  ;;  %v2954_v14 = vrot.slane %v7095_v36, 1 }
0x187d   :  { %v2716_v41 = vrot.slane %v2570_v30, 7 }
0x187f   :  { %v2707_v53 = vpop.permute.xlu1 %2706 }
0x1880   :  { %v2709_v45 = vpop.permute.xlu0 %2708  ;;  %v2712_v55 = vmul.f32 %v6170_v26, %v2707_v53 }
0x1881   :  { %v2713_v29 = vmul.f32 %v6172_v37, %v2709_v45  ;;  %v2815_v45 = vrot.slane %v7089_v0, 7 }
0x1882   :  { %v2854_v33 = vrot.slane %v2712_v55, 7 }
0x1883   :  { %v2855_v35 = vrot.slane %v2713_v29, 6  ;;  %v2564_v39 = vpop.permute.xlu1 %2563  ;;  %v2814_v29 = vrot.slane %v7101_v28, 7 }
0x1884   :  { %v2569_v42 = vmul.f32 %v6174_v57, %v2564_v39 }
0x1885   :  { %v2856_v1 = vsel %vm452_vm3, %v2855_v35, %v2854_v33 }
0x1886   :  { %2857 = vrot.lane.b32.xlu1 %v2856_v1, %s6435_s11  ;;  %v2717_v24 = vsel %vm452_vm3, %v2716_v41, %v2569_v42  ;;  %v2955_v1 = vrot.slane %v7097_v48, 1 }
0x1887   :  { %2718 = vrot.lane.b32.xlu0 %v2717_v24, %s6435_s11 }
0x18f8   :  { %v2858_v46 = vpop.permute.xlu1 %2857 }
0x18f9   :  { %5511 = vmatmul.mubr.msk.f32.vlgmr.msra.gmra.mrb[18].mxu1 %vm172_vm2, %v2858_v46  ;;  %v2719_v5 = vpop.permute.xlu0 %2718 }
0x18fa   :  { %5500 = vmatmul.mubr.msk.f32.vlgmr.msra.gmra.mrb[18].mxu0 %vm172_vm2, %v2719_v5  ;;  %5806 = vmatpush3.bf16.msra.mxu1 %v6510_v8 }
0x18fb   :  { %5800 = vmatpush3.bf16.msra.mxu0 %v6499_v4  ;;  %5521 = vmatprep.mubr.msk.f32.mxu0 %vm6432_vm1, %v6433_v11 }
0x18fc   :  { %5801 = vmatprep.subr.bf16.mxu0 %v6431_v3  ;;  %5807 = vmatprep.subr.bf16.mxu1 %v6431_v3 }
0x18fd   :  { %5532 = vmatprep.mubr.msk.f32.mxu1 %vm6432_vm1, %v6433_v11 }
0x18fe   :  { %5809 = vmatpush3.bf16.msra.mxu1 %v6541_v15 }
0x18ff   :  { %5803 = vmatpush3.bf16.msra.mxu0 %v6534_v13  ;;  %5816 = vmatprep.subr.bf16.mxu1 %v6431_v3 }
0x1900   :  { %5810 = vmatprep.subr.bf16.mxu0 %v6431_v3 }
0x19cc   :  { %v2927_v22 = vpop.f32.mrb[18].mxu1 }
0x19cd   :  { %v2932_v51 = vrot.slane %v2927_v22, 2  ;;  %v5512_v10 = vpop.f32.mrb[19].mxu1  ;;  %v2788_v34 = vpop.f32.mrb[18].mxu0  ;;  %v2933_v37 = vrot.slane %v2927_v22, 3 }
0x19ce   :  { %v5501_v18 = vpop.f32.mrb[19].mxu0  ;;  %v2793_v26 = vrot.slane %v2788_v34, 7  ;;  %v2797_v27 = vadd.f32 %v2788_v34, %v2431_v60 }
0x19cf   :  { %v2936_v54 = vadd.f32 %v2932_v51, %v2573_v6  ;;  %v2937_v23 = vadd.f32 %v2933_v37, %v2574_v32 }
0x19d0   :  { %v2796_v56 = vadd.f32 %v2793_v26, %v2430_v44  ;;  %v5073_v2 = vmul.f32 -1.442695, %v2797_v27 }
0x19d1   :  { %6183 = vtanh.f32 %v2936_v54  ;;  %v5075_v60 = vmul.f32 -1.442695, %v2936_v54  ;;  %v5076_v16 = vmul.f32 -1.442695, %v2937_v23 }
0x19d2   :  { %6185 = vtanh.f32 %v2797_v27  ;;  %v5072_v44 = vmul.f32 -1.442695, %v2796_v56 }
0x19d3   :  { %6187 = vtanh.f32 %v2796_v56 }
0x19d4   :  { %6189 = vtanh.f32 %v2937_v23 }
0x19d5   :  { %6191 = vpow2.f32 %v5075_v60 }
0x19d6   :  { %6193 = vpow2.f32 %v5073_v2  ;;  %v7180_v2 = vld [vmem:[#allocation6 + $0x4] sm:$0x2] }
0x19d7   :  { %6195 = vpow2.f32 %v5072_v44  ;;  %v7182_v44 = vld [vmem:[#allocation6 + $0xc] sm:$0x2] }
0x19d8   :  { %6197 = vpow2.f32 %v5076_v16  ;;  %v2994_v16 = vunpack.c.l.bf16 %v7180_v2 }
0x19db   :  { %v6184_v31 = vpop.eup %6183 }
0x19dc   :  { %2962 = vrot.lane.b32.xlu1 %v6184_v31, %s6434_s10  ;;  %v6186_v19 = vpop.eup %6185 }
0x19dd   :  { %v6188_v6 = vpop.eup %6187 }
0x19de   :  { %2822 = vrot.lane.b32.xlu0 %v6188_v6, %s6434_s10  ;;  %v6190_v47 = vpop.eup %6189 }
0x19df   :  { %v6192_v32 = vpop.eup %6191 }
0x19e0   :  { %2824 = vrot.lane.b32.xlu1 %v6186_v19, %s6434_s10  ;;  %v2944_v57 = vadd.f32 1.0, %v6192_v32  ;;  %v6194_v58 = vpop.eup %6193  ;;  %v2995_v32 = vunpack.c.l.bf16 %v7182_v44 }
0x19e1   :  { %v6196_v59 = vpop.eup %6195  ;;  %v2805_v17 = vadd.f32 1.0, %v6194_v58  ;;  %v7186_v58 = vld [vmem:[#allocation7] sm:$0x4] }
0x19e2   :  { %2964 = vrot.lane.b32.xlu0 %v6190_v47, %s6434_s10  ;;  %6199 = vrcp.f32 %v2944_v57  ;;  %v2804_v20 = vadd.f32 1.0, %v6196_v59  ;;  %v6198_v52 = vpop.eup %6197 }
0x19e3   :  { %6201 = vrcp.f32 %v2805_v17  ;;  %v2945_v21 = vadd.f32 1.0, %v6198_v52  ;;  %v7188_v52 = vld [vmem:[#allocation7 + $0x8] sm:$0x4] }
0x19e4   :  { %6203 = vrcp.f32 %v2804_v20 }
0x19e5   :  { %6205 = vrcp.f32 %v2945_v21 }
0x19ec   :  { %v6200_v9 = vpop.eup %6199 }
0x19ed   :  { %v6202_v62 = vpop.eup %6201  ;;  %v2958_v53 = vmul.f32 %v6200_v9, %v2954_v14 }
0x19ee   :  { %v6204_v40 = vpop.eup %6203  ;;  %v2819_v33 = vmul.f32 %v6202_v62, %v2815_v45 }
0x19ef   :  { %v6206_v12 = vpop.eup %6205  ;;  %v2818_v39 = vmul.f32 %v6204_v40, %v2814_v29 }
0x19f0   :  { %v2959_v0 = vmul.f32 %v6206_v12, %v2955_v1 }
0x1a4e   :  { %v2963_v7 = vpop.permute.xlu1 %2962 }
0x1a4f   :  { %v2968_v61 = vmul.f32 %v6200_v9, %v2963_v7  ;;  %v3137_v7 = vunpack.c.l.bf16 %v7186_v58 }
0x1a50   :  { %v2823_v43 = vpop.permute.xlu0 %2822 }
0x1a51   :  { %2972 = vrot.lane.b32.xlu1 %v2968_v61, %s6435_s11  ;;  %v2828_v50 = vmul.f32 %v6204_v40, %v2823_v43  ;;  %v3138_v61 = vunpack.c.l.bf16 %v7188_v52 }
0x1a52   :  { %v2825_v63 = vpop.permute.xlu1 %2824 }
0x1a53   :  { %v2829_v25 = vmul.f32 %v6202_v62, %v2825_v63  ;;  %2832 = vrot.lane.b32.xlu0 %v2828_v50, %s6435_s11 }
0x1a54   :  { %v2965_v38 = vpop.permute.xlu0 %2964 }
0x1a55   :  { %2834 = vrot.lane.b32.xlu1 %v2829_v25, %s6435_s11  ;;  %v2969_v49 = vmul.f32 %v6206_v12, %v2965_v38 }
0x1a57   :  { %2974 = vrot.lane.b32.xlu0 %v2969_v49, %s6435_s11 }
0x1ac3   :  { %v2973_v30 = vpop.permute.xlu1 %2972 }
0x1ac4   :  { %v7144_v55 = vadd.f32 %v2973_v30, %v2958_v53 }
0x1ac5   :  { %v2833_v42 = vpop.permute.xlu0 %2832 }
0x1ac6   :  { %6207 = vtanh.f32 %v7144_v55  ;;  %v7151_v24 = vadd.f32 %v2833_v42, %v2818_v39 }
0x1ac7   :  { %v2835_v35 = vpop.permute.xlu1 %2834 }
0x1ac8   :  { %v7148_v41 = vadd.f32 %v2835_v35, %v2819_v33 }
0x1ac9   :  { %v2975_v36 = vpop.permute.xlu0 %2974 }
0x1aca   :  { %6209 = vtanh.f32 %v7148_v41  ;;  %v7155_v46 = vadd.f32 %v2975_v36, %v2959_v0 }
0x1acb   :  { %6211 = vtanh.f32 %v7151_v24 }
0x1acc   :  { %6213 = vtanh.f32 %v7155_v46 }
0x1ad0   :  { %v6208_v28 = vpop.eup %6207 }
0x1ad1   :  { %2984 = vrot.lane.b32.xlu1 %v6208_v28, %s6434_s10 }
0x1ad4   :  { %v6210_v5 = vpop.eup %6209 }
0x1ad5   :  { %2846 = vrot.lane.b32.xlu1 %v6210_v5, %s6434_s10  ;;  %v6212_v22 = vpop.eup %6211 }
0x1ad6   :  { %2844 = vrot.lane.b32.xlu0 %v6212_v22, %s6434_s10  ;;  %v6214_v48 = vpop.eup %6213 }
0x1ada   :  { %2986 = vrot.lane.b32.xlu0 %v6214_v48, %s6434_s10 }
0x1b43   :  { %v2985_v51 = vpop.permute.xlu1 %2984 }
0x1b44   :  { %v2990_v26 = vmul.f32 %v6200_v9, %v2985_v51 }
0x1b46   :  { %v3141_v31 = vrot.slane %v2990_v26, 6 }
0x1b47   :  { %v2847_v10 = vpop.permute.xlu1 %2846 }
0x1b48   :  { %v2845_v34 = vpop.permute.xlu0 %2844  ;;  %v2851_v54 = vmul.f32 %v6202_v62, %v2847_v10 }
0x1b49   :  { %v2850_v18 = vmul.f32 %v6204_v40, %v2845_v34 }
0x1b4b   :  { %v2998_v27 = vrot.slane %v2850_v18, 1 }
0x1b4c   :  { %v2987_v37 = vpop.permute.xlu0 %2986 }
0x1b4d   :  { %v2991_v56 = vmul.f32 %v6206_v12, %v2987_v37  ;;  %v2999_v23 = vsel %vm452_vm3, %v2851_v54, %v2998_v27 }
0x1b4e   :  { %3000 = vrot.lane.b32.xlu0 %v2999_v23, %s6435_s11  ;;  %v3097_v23 = vrot.slane %v7151_v24, 7 }
0x1b4f   :  { %v3142_v19 = vrot.slane %v2991_v56, 5 }
0x1b51   :  { %v3143_v6 = vsel %vm452_vm3, %v3142_v19, %v3141_v31  ;;  %v3098_v31 = vrot.slane %v7148_v41, 7 }
0x1b52   :  { %3144 = vrot.lane.b32.xlu1 %v3143_v6, %s6435_s11 }
0x1bc0   :  { %v3001_v47 = vpop.permute.xlu0 %3000 }
0x1bc1   :  { %5522 = vmatmul.mubr.msk.f32.vlgmr.msra.gmra.mrb[20].mxu0 %vm172_vm2, %v3001_v47 }
0x1bc2   :  { %5812 = vmatpush3.bf16.msra.mxu0 %v6499_v4  ;;  %5543 = vmatprep.mubr.msk.f32.mxu0 %vm6432_vm1, %v6433_v11 }
0x1bc3   :  { %5813 = vmatprep.subr.bf16.mxu0 %v6431_v3 }
0x1bc4   :  { %v3145_v60 = vpop.permute.xlu1 %3144 }
0x1bc5   :  { %5533 = vmatmul.mubr.msk.f32.vlgmr.msra.gmra.mrb[20].mxu1 %vm172_vm2, %v3145_v60  ;;  %v3241_v60 = vrot.slane %v7144_v55, 1 }
0x1bc6   :  { %5815 = vmatpush3.bf16.msra.mxu0 %v6534_v13  ;;  %5818 = vmatpush3.bf16.msra.mxu1 %v6510_v8 }
0x1bc7   :  { %5819 = vmatprep.subr.bf16.mxu1 %v6431_v3  ;;  %5554 = vmatprep.mubr.msk.f32.mxu1 %vm6432_vm1, %v6433_v11 }
0x1bc8   :  { %5822 = vmatprep.subr.bf16.mxu0 %v6431_v3 }
0x1bca   :  { %5821 = vmatpush3.bf16.msra.mxu1 %v6541_v15 }
0x1bcb   :  { %5828 = vmatprep.subr.bf16.mxu1 %v6431_v3 }
0x1c94   :  { %v3070_v57 = vpop.f32.mrb[20].mxu0 }
0x1c95   :  { %v3075_v59 = vrot.slane %v3070_v57, 6  ;;  %v3076_v17 = vrot.slane %v3070_v57, 7  ;;  %v5523_v20 = vpop.f32.mrb[21].mxu0 }
0x1c97   :  { %v3079_v21 = vadd.f32 %v3075_v59, %v2994_v16  ;;  %v3080_v9 = vadd.f32 %v3076_v17, %v2995_v32  ;;  %v3242_v17 = vrot.slane %v7155_v46, 1 }
0x1c98   :  { %v3214_v62 = vpop.f32.mrb[20].mxu1 }
0x1c99   :  { %6215 = vtanh.f32 %v3079_v21  ;;  %v3219_v63 = vrot.slane %v3214_v62, 3  ;;  %v5534_v25 = vpop.f32.mrb[21].mxu1  ;;  %v3220_v40 = vrot.slane %v3214_v62, 4  ;;  %v5078_v53 = vmul.f32 -1.442695, %v3079_v21 }
0x1c9a   :  { %6217 = vtanh.f32 %v3080_v9  ;;  %v5079_v30 = vmul.f32 -1.442695, %v3080_v9 }
0x1c9b   :  { %v3223_v43 = vadd.f32 %v3219_v63, %v3137_v7  ;;  %v3224_v50 = vadd.f32 %v3220_v40, %v3138_v61 }
0x1c9d   :  { %6219 = vtanh.f32 %v3223_v43  ;;  %v5081_v45 = vmul.f32 -1.442695, %v3223_v43  ;;  %v5082_v29 = vmul.f32 -1.442695, %v3224_v50 }
0x1c9e   :  { %6221 = vtanh.f32 %v3224_v50 }
0x1c9f   :  { %6223 = vpow2.f32 %v5078_v53 }
0x1ca0   :  { %6225 = vpow2.f32 %v5079_v30 }
0x1ca1   :  { %6227 = vpow2.f32 %v5081_v45 }
0x1ca2   :  { %6229 = vpow2.f32 %v5082_v29 }
0x1ca3   :  { %v6216_v12 = vpop.eup %6215 }
0x1ca4   :  { %v6218_v38 = vpop.eup %6217  ;;  %3105 = vrot.lane.b32.xlu0 %v6216_v12, %s6434_s10 }
0x1ca5   :  { %3107 = vrot.lane.b32.xlu1 %v6218_v38, %s6434_s10 }
0x1ca7   :  { %v6220_v49 = vpop.eup %6219 }
0x1ca8   :  { %v6222_v14 = vpop.eup %6221  ;;  %3249 = vrot.lane.b32.xlu0 %v6220_v49, %s6434_s10 }
0x1ca9   :  { %3251 = vrot.lane.b32.xlu1 %v6222_v14, %s6434_s10  ;;  %v6224_v33 = vpop.eup %6223 }
0x1caa   :  { %v6226_v35 = vpop.eup %6225  ;;  %v3087_v39 = vadd.f32 1.0, %v6224_v33 }
0x1cab   :  { %v6228_v42 = vpop.eup %6227  ;;  %v3088_v1 = vadd.f32 1.0, %v6226_v35 }
0x1cac   :  { %v6230_v0 = vpop.eup %6229  ;;  %6231 = vrcp.f32 %v3087_v39  ;;  %v3231_v36 = vadd.f32 1.0, %v6228_v42 }
0x1cad   :  { %6233 = vrcp.f32 %v3088_v1  ;;  %v3232_v28 = vadd.f32 1.0, %v6230_v0 }
0x1cae   :  { %6235 = vrcp.f32 %v3231_v36 }
0x1caf   :  { %6237 = vrcp.f32 %v3232_v28 }
0x1cb6   :  { %v6232_v5 = vpop.eup %6231 }
0x1cb7   :  { %v6234_v48 = vpop.eup %6233  ;;  %v3101_v19 = vmul.f32 %v6232_v5, %v3097_v23 }
0x1cb8   :  { %v6236_v18 = vpop.eup %6235  ;;  %v3102_v6 = vmul.f32 %v6234_v48, %v3098_v31 }
0x1cb9   :  { %v6238_v26 = vpop.eup %6237  ;;  %v3245_v21 = vmul.f32 %v6236_v18, %v3241_v60 }
0x1cba   :  { %v3246_v24 = vmul.f32 %v6238_v26, %v3242_v17 }
0x1d16   :  { %v3106_v22 = vpop.permute.xlu0 %3105 }
0x1d17   :  { %v3111_v51 = vmul.f32 %v6232_v5, %v3106_v22  ;;  %v3108_v10 = vpop.permute.xlu1 %3107 }
0x1d18   :  { %v3112_v34 = vmul.f32 %v6234_v48, %v3108_v10 }
0x1d19   :  { %3115 = vrot.lane.b32.xlu0 %v3111_v51, %s6435_s11 }
0x1d1a   :  { %3117 = vrot.lane.b32.xlu1 %v3112_v34, %s6435_s11  ;;  %v3250_v54 = vpop.permute.xlu0 %3249 }
0x1d1b   :  { %v3252_v27 = vpop.permute.xlu1 %3251  ;;  %v3255_v37 = vmul.f32 %v6236_v18, %v3250_v54 }
0x1d1c   :  { %v3256_v56 = vmul.f32 %v6238_v26, %v3252_v27 }
0x1d1d   :  { %3259 = vrot.lane.b32.xlu0 %v3255_v37, %s6435_s11 }
0x1d1e   :  { %3261 = vrot.lane.b32.xlu1 %v3256_v56, %s6435_s11 }
0x1d8b   :  { %v3116_v47 = vpop.permute.xlu0 %3115 }
0x1d8c   :  { %v3118_v57 = vpop.permute.xlu1 %3117  ;;  %v7211_v59 = vadd.f32 %v3116_v47, %v3101_v19 }
0x1d8d   :  { %v7214_v20 = vadd.f32 %v3118_v57, %v3102_v6 }
0x1d8e   :  { %6239 = vtanh.f32 %v7211_v59 }
0x1d8f   :  { %6241 = vtanh.f32 %v7214_v20  ;;  %v3260_v9 = vpop.permute.xlu0 %3259 }
0x1d90   :  { %v3262_v41 = vpop.permute.xlu1 %3261  ;;  %v7218_v62 = vadd.f32 %v3260_v9, %v3245_v21 }
0x1d91   :  { %v7220_v63 = vadd.f32 %v3262_v41, %v3246_v24 }
0x1d92   :  { %6243 = vtanh.f32 %v7218_v62 }
0x1d93   :  { %6245 = vtanh.f32 %v7220_v63 }
0x1d98   :  { %v6240_v55 = vpop.eup %6239 }
0x1d99   :  { %v6242_v46 = vpop.eup %6241  ;;  %3127 = vrot.lane.b32.xlu0 %v6240_v55, %s6434_s10 }
0x1d9a   :  { %3129 = vrot.lane.b32.xlu1 %v6242_v46, %s6434_s10 }
0x1d9c   :  { %v6244_v25 = vpop.eup %6243 }
0x1d9d   :  { %v6246_v40 = vpop.eup %6245  ;;  %3271 = vrot.lane.b32.xlu0 %v6244_v25, %s6434_s10 }
0x1d9e   :  { %3273 = vrot.lane.b32.xlu1 %v6246_v40, %s6434_s10 }
0x1e0b   :  { %v3128_v43 = vpop.permute.xlu0 %3127 }
0x1e0c   :  { %v3130_v50 = vpop.permute.xlu1 %3129  ;;  %v3133_v12 = vmul.f32 %v6232_v5, %v3128_v43 }
0x1e0d   :  { %v3134_v38 = vmul.f32 %v6234_v48, %v3130_v50 }
0x1e0e   :  { %v3281_v49 = vrot.slane %v3133_v12, 2  ;;  %v3381_v12 = vrot.slane %v7211_v59, 7 }
0x1e0f   :  { %v3282_v14 = vrot.slane %v3134_v38, 1  ;;  %v3272_v53 = vpop.permute.xlu0 %3271  ;;  %v3382_v38 = vrot.slane %v7214_v20, 7 }
0x1e10   :  { %v3274_v30 = vpop.permute.xlu1 %3273  ;;  %v3277_v45 = vmul.f32 %v6236_v18, %v3272_v53 }
0x1e11   :  { %v3278_v29 = vmul.f32 %v6238_v26, %v3274_v30  ;;  %v3283_v33 = vsel %vm452_vm3, %v3282_v14, %v3281_v49  ;;  %v3521_v30 = vrot.slane %v7218_v62, 1 }
0x1e12   :  { %v3421_v35 = vrot.slane %v3277_v45, 5  ;;  %3284 = vrot.lane.b32.xlu0 %v3283_v33, %s6435_s11  ;;  %v3522_v33 = vrot.slane %v7220_v63, 1 }
0x1e13   :  { %v3422_v39 = vrot.slane %v3278_v29, 4 }
0x1e15   :  { %v3423_v42 = vsel %vm452_vm3, %v3422_v39, %v3421_v35 }
0x1e16   :  { %3424 = vrot.lane.b32.xlu1 %v3423_v42, %s6435_s11 }
0x1e84   :  { %v3285_v1 = vpop.permute.xlu0 %3284 }
0x1e85   :  { %5544 = vmatmul.mubr.msk.f32.vlgmr.msra.gmra.mrb[22].mxu0 %vm172_vm2, %v3285_v1 }
0x1e86   :  { %5824 = vmatpush3.bf16.msra.mxu0 %v6499_v4  ;;  %5565 = vmatprep.mubr.msk.f32.mxu0 %vm6432_vm1, %v6433_v11 }
0x1e87   :  { %5825 = vmatprep.subr.bf16.mxu0 %v6431_v3 }
0x1e88   :  { %v3425_v0 = vpop.permute.xlu1 %3424 }
0x1e89   :  { %5555 = vmatmul.mubr.msk.f32.vlgmr.msra.gmra.mrb[22].mxu1 %vm172_vm2, %v3425_v0 }
0x1e8a   :  { %5827 = vmatpush3.bf16.msra.mxu0 %v6534_v13  ;;  %5830 = vmatpush3.bf16.msra.mxu1 %v6510_v8 }
0x1e8b   :  { %5831 = vmatprep.subr.bf16.mxu1 %v6431_v3  ;;  %5576 = vmatprep.mubr.msk.f32.mxu1 %vm6432_vm1, %v6433_v11 }
0x1e8c   :  { %5834 = vmatprep.subr.bf16.mxu0 %v6431_v3 }
0x1e8e   :  { %5833 = vmatpush3.bf16.msra.mxu1 %v6541_v15 }
0x1e8f   :  { %5840 = vmatprep.subr.bf16.mxu1 %v6431_v3 }
0x1f58   :  { %v3354_v36 = vpop.f32.mrb[22].mxu0 }
0x1f59   :  { %v3359_v28 = vrot.slane %v3354_v36, 5  ;;  %v3360_v5 = vrot.slane %v3354_v36, 6  ;;  %v5545_v22 = vpop.f32.mrb[23].mxu0 }
0x1f5b   :  { %v3363_v48 = vadd.f32 %v3359_v28, %v2994_v16  ;;  %v3364_v51 = vadd.f32 %v3360_v5, %v2995_v32 }
0x1f5c   :  { %v3494_v10 = vpop.f32.mrb[22].mxu1 }
0x1f5d   :  { %6247 = vtanh.f32 %v3363_v48  ;;  %v3499_v34 = vrot.slane %v3494_v10, 4  ;;  %v5556_v18 = vpop.f32.mrb[23].mxu1  ;;  %v3500_v54 = vrot.slane %v3494_v10, 5  ;;  %v5084_v32 = vmul.f32 -1.442695, %v3363_v48 }
0x1f5e   :  { %6249 = vtanh.f32 %v3364_v51  ;;  %v5085_v58 = vmul.f32 -1.442695, %v3364_v51 }
0x1f5f   :  { %v3503_v26 = vadd.f32 %v3499_v34, %v3137_v7  ;;  %v3504_v27 = vadd.f32 %v3500_v54, %v3138_v61 }
0x1f61   :  { %6251 = vtanh.f32 %v3503_v26  ;;  %v5087_v7 = vmul.f32 -1.442695, %v3503_v26  ;;  %v5088_v52 = vmul.f32 -1.442695, %v3504_v27 }
0x1f62   :  { %6253 = vtanh.f32 %v3504_v27 }
0x1f63   :  { %6255 = vpow2.f32 %v5084_v32 }
0x1f64   :  { %6257 = vpow2.f32 %v5085_v58 }
0x1f65   :  { %6259 = vpow2.f32 %v5087_v7  ;;  %v7300_v7 = vld [vmem:[#allocation6 + $0x4] sm:$0x4] }
0x1f66   :  { %6261 = vpow2.f32 %v5088_v52  ;;  %v7302_v52 = vld [vmem:[#allocation6 + $0xc] sm:$0x4] }
0x1f67   :  { %v6248_v37 = vpop.eup %6247 }
0x1f68   :  { %v6250_v2 = vpop.eup %6249  ;;  %3389 = vrot.lane.b32.xlu0 %v6248_v37, %s6434_s10 }
0x1f69   :  { %3391 = vrot.lane.b32.xlu1 %v6250_v2, %s6434_s10 }
0x1f6b   :  { %v6252_v44 = vpop.eup %6251 }
0x1f6c   :  { %v6254_v16 = vpop.eup %6253  ;;  %3529 = vrot.lane.b32.xlu0 %v6252_v44, %s6434_s10 }
0x1f6d   :  { %3531 = vrot.lane.b32.xlu1 %v6254_v16, %s6434_s10  ;;  %v6256_v61 = vpop.eup %6255 }
0x1f6e   :  { %v6258_v56 = vpop.eup %6257  ;;  %v3371_v23 = vadd.f32 1.0, %v6256_v61  ;;  %v3561_v61 = vunpack.c.l.bf16 %v7300_v7 }
0x1f6f   :  { %v6260_v31 = vpop.eup %6259  ;;  %v3372_v19 = vadd.f32 1.0, %v6258_v56  ;;  %v3562_v56 = vunpack.c.l.bf16 %v7302_v52 }
0x1f70   :  { %v6262_v6 = vpop.eup %6261  ;;  %6263 = vrcp.f32 %v3371_v23  ;;  %v3511_v47 = vadd.f32 1.0, %v6260_v31  ;;  %v7306_v31 = vld [vmem:[#allocation7] sm:$0x2] }
0x1f71   :  { %6265 = vrcp.f32 %v3372_v19  ;;  %v3512_v60 = vadd.f32 1.0, %v6262_v6 }
0x1f72   :  { %6267 = vrcp.f32 %v3511_v47 }
0x1f73   :  { %6269 = vrcp.f32 %v3512_v60  ;;  %v7308_v60 = vld [vmem:[#allocation7 + $0x8] sm:$0x2] }
0x1f7a   :  { %v6264_v57 = vpop.eup %6263 }
0x1f7b   :  { %v6266_v21 = vpop.eup %6265  ;;  %v3385_v49 = vmul.f32 %v6264_v57, %v3381_v12 }
0x1f7c   :  { %v6268_v55 = vpop.eup %6267  ;;  %v3386_v14 = vmul.f32 %v6266_v21, %v3382_v38 }
0x1f7d   :  { %v6270_v25 = vpop.eup %6269  ;;  %v3525_v39 = vmul.f32 %v6268_v55, %v3521_v30 }
0x1f7e   :  { %v3526_v59 = vmul.f32 %v6270_v25, %v3522_v33 }
0x1fda   :  { %v3390_v17 = vpop.permute.xlu0 %3389 }
0x1fdb   :  { %v3392_v24 = vpop.permute.xlu1 %3391  ;;  %v3395_v9 = vmul.f32 %v6264_v57, %v3390_v17 }
0x1fdc   :  { %v3396_v41 = vmul.f32 %v6266_v21, %v3392_v24  ;;  %v3706_v24 = vunpack.c.l.bf16 %v7308_v60 }
0x1fdd   :  { %3399 = vrot.lane.b32.xlu0 %v3395_v9, %s6435_s11 }
0x1fde   :  { %3401 = vrot.lane.b32.xlu1 %v3396_v41, %s6435_s11  ;;  %v3530_v46 = vpop.permute.xlu0 %3529 }
0x1fdf   :  { %v3532_v40 = vpop.permute.xlu1 %3531  ;;  %v3535_v43 = vmul.f32 %v6268_v55, %v3530_v46 }
0x1fe0   :  { %v3536_v50 = vmul.f32 %v6270_v25, %v3532_v40 }
0x1fe1   :  { %3539 = vrot.lane.b32.xlu0 %v3535_v43, %s6435_s11 }
0x1fe2   :  { %3541 = vrot.lane.b32.xlu1 %v3536_v50, %s6435_s11 }
0x204f   :  { %v3400_v53 = vpop.permute.xlu0 %3399 }
0x2050   :  { %v3402_v45 = vpop.permute.xlu1 %3401  ;;  %v7265_v29 = vadd.f32 %v3400_v53, %v3385_v49 }
0x2051   :  { %v7268_v35 = vadd.f32 %v3402_v45, %v3386_v14 }
0x2052   :  { %6271 = vtanh.f32 %v7265_v29 }
0x2053   :  { %6273 = vtanh.f32 %v7268_v35  ;;  %v3540_v42 = vpop.permute.xlu0 %3539 }
0x2054   :  { %v3542_v20 = vpop.permute.xlu1 %3541  ;;  %v7272_v1 = vadd.f32 %v3540_v42, %v3525_v39 }
0x2055   :  { %v7274_v0 = vadd.f32 %v3542_v20, %v3526_v59 }
0x2056   :  { %6275 = vtanh.f32 %v7272_v1 }
0x2057   :  { %6277 = vtanh.f32 %v7274_v0 }
0x205c   :  { %v6272_v62 = vpop.eup %6271 }
0x205d   :  { %v6274_v63 = vpop.eup %6273  ;;  %3411 = vrot.lane.b32.xlu0 %v6272_v62, %s6434_s10 }
0x205e   :  { %3413 = vrot.lane.b32.xlu1 %v6274_v63, %s6434_s10 }
0x2060   :  { %v6276_v36 = vpop.eup %6275 }
0x2061   :  { %v6278_v28 = vpop.eup %6277  ;;  %3551 = vrot.lane.b32.xlu0 %v6276_v36, %s6434_s10 }
0x2062   :  { %3553 = vrot.lane.b32.xlu1 %v6278_v28, %s6434_s10 }
0x20cf   :  { %v3412_v5 = vpop.permute.xlu0 %3411 }
0x20d0   :  { %v3414_v22 = vpop.permute.xlu1 %3413  ;;  %v3417_v48 = vmul.f32 %v6264_v57, %v3412_v5 }
0x20d1   :  { %v3418_v51 = vmul.f32 %v6266_v21, %v3414_v22  ;;  %v3705_v21 = vunpack.c.l.bf16 %v7306_v31 }
0x20d2   :  { %v3565_v10 = vrot.slane %v3417_v48, 3 }
0x20d3   :  { %v3566_v34 = vrot.slane %v3418_v51, 2  ;;  %v3552_v18 = vpop.permute.xlu0 %3551 }
0x20d4   :  { %v3554_v54 = vpop.permute.xlu1 %3553  ;;  %v3557_v26 = vmul.f32 %v6268_v55, %v3552_v18 }
0x20d5   :  { %v3558_v27 = vmul.f32 %v6270_v25, %v3554_v54  ;;  %v3567_v37 = vsel %vm452_vm3, %v3566_v34, %v3565_v10 }
0x20d6   :  { %v3709_v2 = vrot.slane %v3557_v26, 4  ;;  %3568 = vrot.lane.b32.xlu0 %v3567_v37, %s6435_s11  ;;  %v3665_v37 = vrot.slane %v7265_v29, 7 }
0x20d7   :  { %v3710_v44 = vrot.slane %v3558_v27, 3 }
0x20d9   :  { %v3711_v16 = vsel %vm452_vm3, %v3710_v44, %v3709_v2  ;;  %v3666_v2 = vrot.slane %v7268_v35, 7 }
0x20da   :  { %3712 = vrot.lane.b32.xlu1 %v3711_v16, %s6435_s11 }
0x2148   :  { %v3569_v32 = vpop.permute.xlu0 %3568 }
0x2149   :  { %5566 = vmatmul.mubr.msk.f32.vlgmr.msra.gmra.mrb[24].mxu0 %vm172_vm2, %v3569_v32 }
0x214a   :  { %5836 = vmatpush3.bf16.msra.mxu0 %v6499_v4  ;;  %5587 = vmatprep.mubr.msk.f32.mxu0 %vm6432_vm1, %v6433_v11 }
0x214b   :  { %5837 = vmatprep.subr.bf16.mxu0 %v6431_v3 }
0x214c   :  { %v3713_v58 = vpop.permute.xlu1 %3712 }
0x214d   :  { %5577 = vmatmul.mubr.msk.f32.vlgmr.msra.gmra.mrb[24].mxu1 %vm172_vm2, %v3713_v58  ;;  %v3809_v58 = vrot.slane %v7272_v1, 1 }
0x214e   :  { %5839 = vmatpush3.bf16.msra.mxu0 %v6534_v13  ;;  %5842 = vmatpush3.bf16.msra.mxu1 %v6510_v8 }
0x214f   :  { %5843 = vmatprep.subr.bf16.mxu1 %v6431_v3  ;;  %5598 = vmatprep.mubr.msk.f32.mxu1 %vm6432_vm1, %v6433_v11 }
0x2150   :  { %5846 = vmatprep.subr.bf16.mxu0 %v6431_v3 }
0x2152   :  { %5845 = vmatpush3.bf16.msra.mxu1 %v6541_v15 }
0x2153   :  { %5852 = vmatprep.subr.bf16.mxu1 %v6431_v3 }
0x221c   :  { %v3638_v23 = vpop.f32.mrb[24].mxu0 }
0x221d   :  { %v3643_v19 = vrot.slane %v3638_v23, 4  ;;  %v3644_v6 = vrot.slane %v3638_v23, 5  ;;  %v5567_v47 = vpop.f32.mrb[25].mxu0 }
0x221f   :  { %v3647_v57 = vadd.f32 %v3643_v19, %v3561_v61  ;;  %v3648_v17 = vadd.f32 %v3644_v6, %v3562_v56  ;;  %v3810_v6 = vrot.slane %v7274_v0, 1 }
0x2220   :  { %v3782_v9 = vpop.f32.mrb[24].mxu1 }
0x2221   :  { %6279 = vtanh.f32 %v3647_v57  ;;  %v3787_v41 = vrot.slane %v3782_v9, 5  ;;  %v5578_v55 = vpop.f32.mrb[25].mxu1  ;;  %v3788_v46 = vrot.slane %v3782_v9, 6  ;;  %v5090_v49 = vmul.f32 -1.442695, %v3647_v57 }
0x2222   :  { %6281 = vtanh.f32 %v3648_v17  ;;  %v5091_v14 = vmul.f32 -1.442695, %v3648_v17 }
0x2223   :  { %v3791_v25 = vadd.f32 %v3787_v41, %v3705_v21  ;;  %v3792_v40 = vadd.f32 %v3788_v46, %v3706_v24 }
0x2225   :  { %6283 = vtanh.f32 %v3791_v25  ;;  %v5093_v53 = vmul.f32 -1.442695, %v3791_v25  ;;  %v5094_v30 = vmul.f32 -1.442695, %v3792_v40 }
0x2226   :  { %6285 = vtanh.f32 %v3792_v40 }
0x2227   :  { %6287 = vpow2.f32 %v5090_v49 }
0x2228   :  { %6289 = vpow2.f32 %v5091_v14 }
0x2229   :  { %6291 = vpow2.f32 %v5093_v53 }
0x222a   :  { %6293 = vpow2.f32 %v5094_v30 }
0x222b   :  { %v6280_v43 = vpop.eup %6279 }
0x222c   :  { %v6282_v50 = vpop.eup %6281  ;;  %3673 = vrot.lane.b32.xlu0 %v6280_v43, %s6434_s10 }
0x222d   :  { %3675 = vrot.lane.b32.xlu1 %v6282_v50, %s6434_s10 }
0x222f   :  { %v6284_v12 = vpop.eup %6283 }
0x2230   :  { %v6286_v38 = vpop.eup %6285  ;;  %3817 = vrot.lane.b32.xlu0 %v6284_v12, %s6434_s10 }
0x2231   :  { %3819 = vrot.lane.b32.xlu1 %v6286_v38, %s6434_s10  ;;  %v6288_v45 = vpop.eup %6287 }
0x2232   :  { %v6290_v33 = vpop.eup %6289  ;;  %v3655_v39 = vadd.f32 1.0, %v6288_v45 }
0x2233   :  { %v6292_v59 = vpop.eup %6291  ;;  %v3656_v42 = vadd.f32 1.0, %v6290_v33 }
0x2234   :  { %v6294_v20 = vpop.eup %6293  ;;  %6295 = vrcp.f32 %v3655_v39  ;;  %v3799_v62 = vadd.f32 1.0, %v6292_v59 }
0x2235   :  { %6297 = vrcp.f32 %v3656_v42  ;;  %v3800_v63 = vadd.f32 1.0, %v6294_v20 }
0x2236   :  { %6299 = vrcp.f32 %v3799_v62 }
0x2237   :  { %6301 = vrcp.f32 %v3800_v63 }
0x223e   :  { %v6296_v36 = vpop.eup %6295 }
0x223f   :  { %v6298_v5 = vpop.eup %6297  ;;  %v3669_v44 = vmul.f32 %v6296_v36, %v3665_v37 }
0x2240   :  { %v6300_v10 = vpop.eup %6299  ;;  %v3670_v16 = vmul.f32 %v6298_v5, %v3666_v2 }
0x2241   :  { %v6302_v18 = vpop.eup %6301  ;;  %v3813_v57 = vmul.f32 %v6300_v10, %v3809_v58 }
0x2242   :  { %v3814_v29 = vmul.f32 %v6302_v18, %v3810_v6 }
0x229e   :  { %v3674_v28 = vpop.permute.xlu0 %3673 }
0x229f   :  { %v3676_v22 = vpop.permute.xlu1 %3675  ;;  %v3679_v48 = vmul.f32 %v6296_v36, %v3674_v28 }
0x22a0   :  { %v3680_v51 = vmul.f32 %v6298_v5, %v3676_v22 }
0x22a1   :  { %3683 = vrot.lane.b32.xlu0 %v3679_v48, %s6435_s11 }
0x22a2   :  { %3685 = vrot.lane.b32.xlu1 %v3680_v51, %s6435_s11  ;;  %v3818_v34 = vpop.permute.xlu0 %3817 }
0x22a3   :  { %v3820_v54 = vpop.permute.xlu1 %3819  ;;  %v3823_v26 = vmul.f32 %v6300_v10, %v3818_v34 }
0x22a4   :  { %v3824_v27 = vmul.f32 %v6302_v18, %v3820_v54 }
0x22a5   :  { %3827 = vrot.lane.b32.xlu0 %v3823_v26, %s6435_s11 }
0x22a6   :  { %3829 = vrot.lane.b32.xlu1 %v3824_v27, %s6435_s11 }
0x2313   :  { %v3684_v32 = vpop.permute.xlu0 %3683 }
0x2314   :  { %v3686_v23 = vpop.permute.xlu1 %3685  ;;  %v7331_v19 = vadd.f32 %v3684_v32, %v3669_v44 }
0x2315   :  { %v7334_v47 = vadd.f32 %v3686_v23, %v3670_v16 }
0x2316   :  { %6303 = vtanh.f32 %v7331_v19 }
0x2317   :  { %6305 = vtanh.f32 %v7334_v47  ;;  %v3828_v17 = vpop.permute.xlu0 %3827 }
0x2318   :  { %v3830_v35 = vpop.permute.xlu1 %3829  ;;  %v7338_v9 = vadd.f32 %v3828_v17, %v3813_v57 }
0x2319   :  { %v7340_v41 = vadd.f32 %v3830_v35, %v3814_v29 }
0x231a   :  { %6307 = vtanh.f32 %v7338_v9 }
0x231b   :  { %6309 = vtanh.f32 %v7340_v41 }
0x2320   :  { %v6304_v1 = vpop.eup %6303 }
0x2321   :  { %v6306_v0 = vpop.eup %6305  ;;  %3695 = vrot.lane.b32.xlu0 %v6304_v1, %s6434_s10 }
0x2322   :  { %3697 = vrot.lane.b32.xlu1 %v6306_v0, %s6434_s10 }
0x2324   :  { %v6308_v55 = vpop.eup %6307 }
0x2325   :  { %v6310_v46 = vpop.eup %6309  ;;  %3839 = vrot.lane.b32.xlu0 %v6308_v55, %s6434_s10 }
0x2326   :  { %3841 = vrot.lane.b32.xlu1 %v6310_v46, %s6434_s10 }
0x2393   :  { %v3696_v25 = vpop.permute.xlu0 %3695 }
0x2394   :  { %v3698_v40 = vpop.permute.xlu1 %3697  ;;  %v3701_v43 = vmul.f32 %v6296_v36, %v3696_v25 }
0x2395   :  { %v3702_v50 = vmul.f32 %v6298_v5, %v3698_v40 }
0x2396   :  { %v3849_v12 = vrot.slane %v3701_v43, 4  ;;  %v3949_v43 = vrot.slane %v7331_v19, 7 }
0x2397   :  { %v3850_v38 = vrot.slane %v3702_v50, 3  ;;  %v3840_v49 = vpop.permute.xlu0 %3839  ;;  %v3950_v50 = vrot.slane %v7334_v47, 7 }
0x2398   :  { %v3842_v14 = vpop.permute.xlu1 %3841  ;;  %v3845_v53 = vmul.f32 %v6300_v10, %v3840_v49 }
0x2399   :  { %v3846_v30 = vmul.f32 %v6302_v18, %v3842_v14  ;;  %v3851_v45 = vsel %vm452_vm3, %v3850_v38, %v3849_v12  ;;  %v4089_v14 = vrot.slane %v7338_v9, 1 }
0x239a   :  { %v3989_v33 = vrot.slane %v3845_v53, 3  ;;  %3852 = vrot.lane.b32.xlu0 %v3851_v45, %s6435_s11  ;;  %v4090_v45 = vrot.slane %v7340_v41, 1 }
0x239b   :  { %v3990_v39 = vrot.slane %v3846_v30, 2 }
0x239d   :  { %v3991_v59 = vsel %vm452_vm3, %v3990_v39, %v3989_v33 }
0x239e   :  { %3992 = vrot.lane.b32.xlu1 %v3991_v59, %s6435_s11 }
0x240c   :  { %v3853_v42 = vpop.permute.xlu0 %3852 }
0x240d   :  { %5588 = vmatmul.mubr.msk.f32.vlgmr.msra.gmra.mrb[26].mxu0 %vm172_vm2, %v3853_v42 }
0x240e   :  { %5848 = vmatpush3.bf16.msra.mxu0 %v6499_v4  ;;  %5609 = vmatprep.mubr.msk.f32.mxu0 %vm6432_vm1, %v6433_v11 }
0x240f   :  { %5849 = vmatprep.subr.bf16.mxu0 %v6431_v3 }
0x2410   :  { %v3993_v20 = vpop.permute.xlu1 %3992 }
0x2411   :  { %5599 = vmatmul.mubr.msk.f32.vlgmr.msra.gmra.mrb[26].mxu1 %vm172_vm2, %v3993_v20 }
0x2412   :  { %5851 = vmatpush3.bf16.msra.mxu0 %v6534_v13  ;;  %5854 = vmatpush3.bf16.msra.mxu1 %v6510_v8 }
0x2413   :  { %5855 = vmatprep.subr.bf16.mxu1 %v6431_v3  ;;  %5620 = vmatprep.mubr.msk.f32.mxu1 %vm6432_vm1, %v6433_v11 }
0x2414   :  { %5858 = vmatprep.subr.bf16.mxu0 %v6431_v3 }
0x2416   :  { %5857 = vmatpush3.bf16.msra.mxu1 %v6541_v15 }
0x2417   :  { %5864 = vmatprep.subr.bf16.mxu1 %v6431_v3 }
0x24e0   :  { %v3922_v62 = vpop.f32.mrb[26].mxu0 }
0x24e1   :  { %v3927_v63 = vrot.slane %v3922_v62, 3  ;;  %v3928_v36 = vrot.slane %v3922_v62, 4  ;;  %v5589_v28 = vpop.f32.mrb[27].mxu0 }
0x24e3   :  { %v3931_v5 = vadd.f32 %v3927_v63, %v3561_v61  ;;  %v3932_v22 = vadd.f32 %v3928_v36, %v3562_v56 }
0x24e4   :  { %v4062_v48 = vpop.f32.mrb[26].mxu1 }
0x24e5   :  { %6311 = vtanh.f32 %v3931_v5  ;;  %v4067_v51 = vrot.slane %v4062_v48, 6  ;;  %v5600_v10 = vpop.f32.mrb[27].mxu1  ;;  %v4068_v34 = vrot.slane %v4062_v48, 7  ;;  %v5096_v56 = vmul.f32 -1.442695, %v3931_v5 }
0x24e6   :  { %6313 = vtanh.f32 %v3932_v22  ;;  %v5097_v31 = vmul.f32 -1.442695, %v3932_v22 }
0x24e7   :  { %v4071_v18 = vadd.f32 %v4067_v51, %v3705_v21  ;;  %v4072_v54 = vadd.f32 %v4068_v34, %v3706_v24 }
0x24e9   :  { %6315 = vtanh.f32 %v4071_v18  ;;  %v5099_v21 = vmul.f32 -1.442695, %v4071_v18  ;;  %v5100_v60 = vmul.f32 -1.442695, %v4072_v54 }
0x24ea   :  { %6317 = vtanh.f32 %v4072_v54 }
0x24eb   :  { %6319 = vpow2.f32 %v5096_v56 }
0x24ec   :  { %6321 = vpow2.f32 %v5097_v31 }
0x24ed   :  { %6323 = vpow2.f32 %v5099_v21  ;;  %v7422_v21 = vld [vmem:[#allocation6 + $0xc] sm:$0x8] }
0x24ee   :  { %6325 = vpow2.f32 %v5100_v60 }
0x24ef   :  { %v6312_v26 = vpop.eup %6311 }
0x24f0   :  { %v6314_v7 = vpop.eup %6313  ;;  %3957 = vrot.lane.b32.xlu0 %v6312_v26, %s6434_s10 }
0x24f1   :  { %3959 = vrot.lane.b32.xlu1 %v6314_v7, %s6434_s10 }
0x24f3   :  { %v6316_v52 = vpop.eup %6315 }
0x24f4   :  { %v6318_v61 = vpop.eup %6317  ;;  %4097 = vrot.lane.b32.xlu0 %v6316_v52, %s6434_s10 }
0x24f5   :  { %4099 = vrot.lane.b32.xlu1 %v6318_v61, %s6434_s10  ;;  %v6320_v24 = vpop.eup %6319 }
0x24f6   :  { %v6322_v27 = vpop.eup %6321  ;;  %v3939_v37 = vadd.f32 1.0, %v6320_v24  ;;  %v7426_v24 = vld [vmem:[#allocation7] sm:$0x1] }
0x24f7   :  { %v6324_v2 = vpop.eup %6323  ;;  %v3940_v44 = vadd.f32 1.0, %v6322_v27 }
0x24f8   :  { %v6326_v16 = vpop.eup %6325  ;;  %6327 = vrcp.f32 %v3939_v37  ;;  %v4079_v32 = vadd.f32 1.0, %v6324_v2 }
0x24f9   :  { %6329 = vrcp.f32 %v3940_v44  ;;  %v4080_v58 = vadd.f32 1.0, %v6326_v16  ;;  %v7428_v44 = vld [vmem:[#allocation7 + $0x8] sm:$0x1] }
0x24fa   :  { %6331 = vrcp.f32 %v4079_v32  ;;  %v4273_v32 = vunpack.c.l.bf16 %v7426_v24 }
0x24fb   :  { %6333 = vrcp.f32 %v4080_v58  ;;  %v4274_v58 = vunpack.c.l.bf16 %v7428_v44 }
0x2502   :  { %v6328_v23 = vpop.eup %6327 }
0x2503   :  { %v6330_v57 = vpop.eup %6329  ;;  %v3953_v12 = vmul.f32 %v6328_v23, %v3949_v43 }
0x2504   :  { %v6332_v1 = vpop.eup %6331  ;;  %v3954_v38 = vmul.f32 %v6330_v57, %v3950_v50 }
0x2505   :  { %v6334_v55 = vpop.eup %6333  ;;  %v4093_v39 = vmul.f32 %v6332_v1, %v4089_v14 }
0x2506   :  { %v4094_v19 = vmul.f32 %v6334_v55, %v4090_v45 }
0x2562   :  { %v3958_v6 = vpop.permute.xlu0 %3957 }
0x2563   :  { %v3960_v29 = vpop.permute.xlu1 %3959  ;;  %v3963_v17 = vmul.f32 %v6328_v23, %v3958_v6 }
0x2564   :  { %v3964_v35 = vmul.f32 %v6330_v57, %v3960_v29 }
0x2565   :  { %3967 = vrot.lane.b32.xlu0 %v3963_v17, %s6435_s11 }
0x2566   :  { %3969 = vrot.lane.b32.xlu1 %v3964_v35, %s6435_s11  ;;  %v4098_v0 = vpop.permute.xlu0 %4097 }
0x2567   :  { %v4100_v46 = vpop.permute.xlu1 %4099  ;;  %v4103_v25 = vmul.f32 %v6332_v1, %v4098_v0 }
0x2568   :  { %v4104_v40 = vmul.f32 %v6334_v55, %v4100_v46 }
0x2569   :  { %4107 = vrot.lane.b32.xlu0 %v4103_v25, %s6435_s11 }
0x256a   :  { %4109 = vrot.lane.b32.xlu1 %v4104_v40, %s6435_s11 }
0x25d7   :  { %v3968_v49 = vpop.permute.xlu0 %3967 }
0x25d8   :  { %v3970_v53 = vpop.permute.xlu1 %3969  ;;  %v7385_v30 = vadd.f32 %v3968_v49, %v3953_v12 }
0x25d9   :  { %v7388_v33 = vadd.f32 %v3970_v53, %v3954_v38 }
0x25da   :  { %6335 = vtanh.f32 %v7385_v30 }
0x25db   :  { %6337 = vtanh.f32 %v7388_v33  ;;  %v4108_v59 = vpop.permute.xlu0 %4107 }
0x25dc   :  { %v4110_v47 = vpop.permute.xlu1 %4109  ;;  %v7392_v42 = vadd.f32 %v4108_v59, %v4093_v39 }
0x25dd   :  { %v7394_v20 = vadd.f32 %v4110_v47, %v4094_v19 }
0x25de   :  { %6339 = vtanh.f32 %v7392_v42 }
0x25df   :  { %6341 = vtanh.f32 %v7394_v20 }
0x25e4   :  { %v6336_v9 = vpop.eup %6335 }
0x25e5   :  { %v6338_v41 = vpop.eup %6337  ;;  %3979 = vrot.lane.b32.xlu0 %v6336_v9, %s6434_s10 }
0x25e6   :  { %3981 = vrot.lane.b32.xlu1 %v6338_v41, %s6434_s10 }
0x25e8   :  { %v6340_v62 = vpop.eup %6339 }
0x25e9   :  { %v6342_v63 = vpop.eup %6341  ;;  %4119 = vrot.lane.b32.xlu0 %v6340_v62, %s6434_s10 }
0x25ea   :  { %4121 = vrot.lane.b32.xlu1 %v6342_v63, %s6434_s10 }
0x2657   :  { %v3980_v36 = vpop.permute.xlu0 %3979 }
0x2658   :  { %v3982_v28 = vpop.permute.xlu1 %3981  ;;  %v3985_v5 = vmul.f32 %v6328_v23, %v3980_v36 }
0x2659   :  { %v3986_v22 = vmul.f32 %v6330_v57, %v3982_v28 }
0x265a   :  { %v4133_v48 = vrot.slane %v3985_v5, 5 }
0x265b   :  { %v4134_v51 = vrot.slane %v3986_v22, 4  ;;  %v4120_v10 = vpop.permute.xlu0 %4119 }
0x265c   :  { %v4122_v34 = vpop.permute.xlu1 %4121  ;;  %v4125_v18 = vmul.f32 %v6332_v1, %v4120_v10  ;;  %v4234_v10 = vrot.slane %v7388_v33, 7 }
0x265d   :  { %v4126_v54 = vmul.f32 %v6334_v55, %v4122_v34  ;;  %v4135_v26 = vsel %vm452_vm3, %v4134_v51, %v4133_v48  ;;  %v4233_v51 = vrot.slane %v7385_v30, 7 }
0x265e   :  { %v4277_v7 = vrot.slane %v4125_v18, 2  ;;  %4136 = vrot.lane.b32.xlu0 %v4135_v26, %s6435_s11  ;;  %v4376_v26 = vrot.slane %v7392_v42, 1 }
0x265f   :  { %v4278_v52 = vrot.slane %v4126_v54, 1 }
0x2661   :  { %v4279_v61 = vsel %vm452_vm3, %v4278_v52, %v4277_v7 }
0x2662   :  { %4280 = vrot.lane.b32.xlu1 %v4279_v61, %s6435_s11 }
0x26d0   :  { %v4137_v56 = vpop.permute.xlu0 %4136 }
0x26d1   :  { %5610 = vmatmul.mubr.msk.f32.vlgmr.msra.gmra.mrb[28].mxu0 %vm172_vm2, %v4137_v56 }
0x26d2   :  { %5860 = vmatpush3.bf16.msra.mxu0 %v6499_v4  ;;  %5631 = vmatprep.mubr.msk.f32.mxu0 %vm6432_vm1, %v6433_v11  ;;  %v7420_v4 = vld [vmem:[#allocation6 + $0x4] sm:$0x8] }
0x26d3   :  { %5861 = vmatprep.subr.bf16.mxu0 %v6431_v3  ;;  %v4129_v60 = vunpack.c.l.bf16 %v7420_v4 }
0x26d4   :  { %v4281_v31 = vpop.permute.xlu1 %4280 }
0x26d5   :  { %5621 = vmatmul.mubr.msk.f32.vlgmr.msra.gmra.mrb[28].mxu1 %vm172_vm2, %v4281_v31  ;;  %v4377_v31 = vrot.slane %v7394_v20, 1 }
0x26d6   :  { %5863 = vmatpush3.bf16.msra.mxu0 %v6534_v13  ;;  %5866 = vmatpush3.bf16.msra.mxu1 %v6510_v8  ;;  %v4130_v13 = vunpack.c.l.bf16 %v7422_v21 }
0x26d7   :  { %5867 = vmatprep.subr.bf16.mxu1 %v6431_v3  ;;  %5642 = vmatprep.mubr.msk.f32.mxu1 %vm6432_vm1, %v6433_v11 }
0x26d8   :  { %5870 = vmatprep.subr.bf16.mxu0 %v6431_v3 }
0x26da   :  { %5869 = vmatpush3.bf16.msra.mxu1 %v6541_v15 }
0x26db   :  { %5876 = vmatprep.subr.bf16.mxu1 %v6431_v3 }
0x27a4   :  { %v4206_v8 = vpop.f32.mrb[28].mxu0 }
0x27a5   :  { %v4211_v27 = vrot.slane %v4206_v8, 2  ;;  %v4212_v37 = vrot.slane %v4206_v8, 3  ;;  %v5611_v2 = vpop.f32.mrb[29].mxu0 }
0x27a7   :  { %v4215_v15 = vadd.f32 %v4211_v27, %v4129_v60  ;;  %v4216_v16 = vadd.f32 %v4212_v37, %v4130_v13 }
0x27a8   :  { %v4350_v23 = vpop.f32.mrb[28].mxu1 }
0x27a9   :  { %6343 = vtanh.f32 %v4215_v15  ;;  %v4355_v6 = vrot.slane %v4350_v23, 7  ;;  %v5622_v57 = vpop.f32.mrb[29].mxu1  ;;  %v4359_v17 = vadd.f32 %v4350_v23, %v4274_v58  ;;  %v5102_v46 = vmul.f32 -1.442695, %v4215_v15 }
0x27aa   :  { %6345 = vtanh.f32 %v4216_v16  ;;  %v5103_v25 = vmul.f32 -1.442695, %v4216_v16 }
0x27ab   :  { %v4358_v29 = vadd.f32 %v4355_v6, %v4273_v32  ;;  %v5106_v43 = vmul.f32 -1.442695, %v4359_v17 }
0x27ad   :  { %6347 = vtanh.f32 %v4358_v29  ;;  %v5105_v40 = vmul.f32 -1.442695, %v4358_v29 }
0x27ae   :  { %6349 = vtanh.f32 %v4359_v17 }
0x27af   :  { %6351 = vpow2.f32 %v5102_v46 }
0x27b0   :  { %6353 = vpow2.f32 %v5103_v25 }
0x27b1   :  { %6355 = vpow2.f32 %v5105_v40 }
0x27b2   :  { %6357 = vpow2.f32 %v5106_v43 }
0x27b3   :  { %v6344_v35 = vpop.eup %6343 }
0x27b4   :  { %v6346_v1 = vpop.eup %6345  ;;  %4241 = vrot.lane.b32.xlu0 %v6344_v35, %s6434_s10 }
0x27b5   :  { %4243 = vrot.lane.b32.xlu1 %v6346_v1, %s6434_s10 }
0x27b7   :  { %v6348_v0 = vpop.eup %6347 }
0x27b8   :  { %4384 = vrot.lane.b32.xlu0 %v6348_v0, %s6434_s10  ;;  %v6350_v55 = vpop.eup %6349 }
0x27b9   :  { %4386 = vrot.lane.b32.xlu1 %v6350_v55, %s6434_s10  ;;  %v6352_v50 = vpop.eup %6351 }
0x27ba   :  { %v6354_v12 = vpop.eup %6353  ;;  %v4223_v38 = vadd.f32 1.0, %v6352_v50 }
0x27bb   :  { %v6356_v49 = vpop.eup %6355  ;;  %v4224_v14 = vadd.f32 1.0, %v6354_v12 }
0x27bc   :  { %v6358_v53 = vpop.eup %6357  ;;  %6359 = vrcp.f32 %v4223_v38  ;;  %v4366_v45 = vadd.f32 1.0, %v6356_v49 }
0x27bd   :  { %6361 = vrcp.f32 %v4224_v14  ;;  %v4367_v39 = vadd.f32 1.0, %v6358_v53 }
0x27be   :  { %6363 = vrcp.f32 %v4366_v45 }
0x27bf   :  { %6365 = vrcp.f32 %v4367_v39 }
0x27c6   :  { %v6360_v19 = vpop.eup %6359 }
0x27c7   :  { %v6362_v47 = vpop.eup %6361  ;;  %v4237_v34 = vmul.f32 %v6360_v19, %v4233_v51 }
0x27c8   :  { %v6364_v63 = vpop.eup %6363  ;;  %v4238_v18 = vmul.f32 %v6362_v47, %v4234_v10 }
0x27c9   :  { %v6366_v5 = vpop.eup %6365  ;;  %v4380_v56 = vmul.f32 %v6364_v63, %v4376_v26 }
0x27ca   :  { %v4381_v33 = vmul.f32 %v6366_v5, %v4377_v31 }
0x2826   :  { %v4242_v59 = vpop.permute.xlu0 %4241 }
0x2827   :  { %v4244_v9 = vpop.permute.xlu1 %4243  ;;  %v4247_v41 = vmul.f32 %v6360_v19, %v4242_v59 }
0x2828   :  { %v4248_v62 = vmul.f32 %v6362_v47, %v4244_v9 }
0x2829   :  { %4251 = vrot.lane.b32.xlu0 %v4247_v41, %s6435_s11 }
0x282a   :  { %4253 = vrot.lane.b32.xlu1 %v4248_v62, %s6435_s11  ;;  %v4385_v36 = vpop.permute.xlu0 %4384 }
0x282b   :  { %v4390_v28 = vmul.f32 %v6364_v63, %v4385_v36  ;;  %v4387_v22 = vpop.permute.xlu1 %4386 }
0x282c   :  { %v4391_v48 = vmul.f32 %v6366_v5, %v4387_v22 }
0x282d   :  { %4394 = vrot.lane.b32.xlu0 %v4390_v28, %s6435_s11 }
0x282e   :  { %4396 = vrot.lane.b32.xlu1 %v4391_v48, %s6435_s11 }
0x289b   :  { %v4252_v54 = vpop.permute.xlu0 %4251 }
0x289c   :  { %v4254_v7 = vpop.permute.xlu1 %4253  ;;  %v7451_v52 = vadd.f32 %v4252_v54, %v4237_v34 }
0x289d   :  { %v7453_v61 = vadd.f32 %v4254_v7, %v4238_v18 }
0x289e   :  { %6367 = vtanh.f32 %v7451_v52 }
0x289f   :  { %6369 = vtanh.f32 %v7453_v61  ;;  %v4395_v30 = vpop.permute.xlu0 %4394 }
0x28a0   :  { %v7458_v8 = vadd.f32 %v4395_v30, %v4380_v56  ;;  %v4397_v27 = vpop.permute.xlu1 %4396 }
0x28a1   :  { %v7461_v42 = vadd.f32 %v4397_v27, %v4381_v33 }
0x28a2   :  { %6371 = vtanh.f32 %v7458_v8 }
0x28a3   :  { %6373 = vtanh.f32 %v7461_v42 }
0x28a8   :  { %v6368_v37 = vpop.eup %6367 }
0x28a9   :  { %v6370_v2 = vpop.eup %6369  ;;  %4263 = vrot.lane.b32.xlu0 %v6368_v37, %s6434_s10  ;;  %v4516_v37 = vrot.slane %v7451_v52, 7 }
0x28aa   :  { %4265 = vrot.lane.b32.xlu1 %v6370_v2, %s6434_s10  ;;  %v4517_v2 = vrot.slane %v7453_v61, 7 }
0x28ac   :  { %v6372_v20 = vpop.eup %6371 }
0x28ad   :  { %4406 = vrot.lane.b32.xlu0 %v6372_v20, %s6434_s10  ;;  %v6374_v15 = vpop.eup %6373 }
0x28ae   :  { %4408 = vrot.lane.b32.xlu1 %v6374_v15, %s6434_s10 }
0x291b   :  { %v4264_v16 = vpop.permute.xlu0 %4263 }
0x291c   :  { %v4266_v23 = vpop.permute.xlu1 %4265  ;;  %v4269_v6 = vmul.f32 %v6360_v19, %v4264_v16 }
0x291d   :  { %v4270_v57 = vmul.f32 %v6362_v47, %v4266_v23 }
0x291e   :  { %v4416_v29 = vrot.slane %v4269_v6, 6 }
0x291f   :  { %v4417_v17 = vrot.slane %v4270_v57, 5  ;;  %v4407_v35 = vpop.permute.xlu0 %4406  ;;  %v4654_v57 = vrot.slane %v7458_v8, 1 }
0x2920   :  { %v4412_v1 = vmul.f32 %v6364_v63, %v4407_v35  ;;  %v4409_v55 = vpop.permute.xlu1 %4408 }
0x2921   :  { %v4418_v0 = vsel %vm452_vm3, %v4417_v17, %v4416_v29  ;;  %v4413_v25 = vmul.f32 %v6366_v5, %v4409_v55  ;;  %v4655_v17 = vrot.slane %v7461_v42, 1 }
0x2922   :  { %v4556_v46 = vrot.slane %v4412_v1, 1  ;;  %4419 = vrot.lane.b32.xlu0 %v4418_v0, %s6435_s11 }
0x2924   :  { %v4557_v40 = vsel %vm452_vm3, %v4413_v25, %v4556_v46 }
0x2925   :  { %4558 = vrot.lane.b32.xlu1 %v4557_v40, %s6435_s11 }
0x2994   :  { %v4420_v43 = vpop.permute.xlu0 %4419 }
0x2995   :  { %5632 = vmatmul.mubr.msk.f32.vlgmr.msra.gmra.mrb[30].mxu0 %vm172_vm2, %v4420_v43 }
0x2996   :  { %5653 = vmatprep.mubr.msk.f32.mxu0 %vm6432_vm1, %v6433_v11 }
0x2997   :  { %v4559_v50 = vpop.permute.xlu1 %4558 }
0x2998   :  { %5643 = vmatmul.mubr.msk.f32.vlgmr.msra.gmra.mrb[30].mxu1 %vm172_vm2, %v4559_v50  ;;  %v4736_v50 = vld [vmem:[%s7602_s4] sm:$0xff] }
0x2999   :  { %5664 = vmatprep.mubr.msk.f32.mxu1 %vm6432_vm1, %v6433_v11 }
0x2a68   :  { %v4489_v12 = vpop.f32.mrb[30].mxu0 }
0x2a69   :  { %v4494_v38 = vrot.slane %v4489_v12, 1  ;;  %v4495_v49 = vrot.slane %v4489_v12, 2  ;;  %v5633_v14 = vpop.f32.mrb[31].mxu0  ;;  %v4737_v12 = vld [vmem:[%s7602_s4 + $0x8] sm:$0xff] }
0x2a6a   :  { %v4741_v14 = vld [vmem:[%s7603_s5 + $0x8] sm:$0xff] }
0x2a6b   :  { %v4498_v53 = vadd.f32 %v4494_v38, %v4129_v60  ;;  %v4499_v45 = vadd.f32 %v4495_v49, %v4130_v13  ;;  %v4628_v39 = vpop.f32.mrb[30].mxu1  ;;  %v4740_v38 = vld [vmem:[%s7603_s5] sm:$0xff]  ;;  %v5877_v49 = vpack.c.bf16 %v4737_v12, %v4736_v50 }
0x2a6c   :  { %v4633_v19 = vrot.slane %v4628_v39, 1  ;;  %v5644_v59 = vpop.f32.mrb[31].mxu1  ;;  %v4636_v47 = vadd.f32 %v4628_v39, %v4273_v32  ;;  %v5871_v39 = vpack.c.bf16 %v4741_v14, %v4740_v38 }
0x2a6d   :  { %6375 = vtanh.f32 %v4498_v53  ;;  %v5108_v60 = vmul.f32 -1.442695, %v4498_v53  ;;  %v5109_v13 = vmul.f32 -1.442695, %v4499_v45  ;;  %v4738_v53 = vld [vmem:[%s7602_s4 + $0x10] sm:$0xff]  ;;  %5878 = vmatpush3.bf16.msra.mxu1 %v5877_v49 }
0x2a6e   :  { %6377 = vtanh.f32 %v4499_v45  ;;  %v4637_v9 = vadd.f32 %v4633_v19, %v4274_v58  ;;  %v5111_v24 = vmul.f32 -1.442695, %v4636_v47  ;;  %v4739_v45 = vld [vmem:[%s7602_s4 + $0x18] sm:$0xff]  ;;  %5879 = vmatprep.subr.bf16.mxu1 %v6431_v3  ;;  %5872 = vmatpush3.bf16.msra.mxu0 %v5871_v39  ;;  %v4742_v59 = vld [vmem:[%s7603_s5 + $0x10] sm:$0xff]  ;;  %s6436_s4 = smov 96  }
0x2a6f   :  { %6379 = vtanh.f32 %v4636_v47  ;;  %v5880_v19 = vpack.c.bf16 %v4739_v45, %v4738_v53  ;;  %5873 = vmatprep.subr.bf16.mxu0 %v6431_v3  ;;  %v4743_v47 = vld [vmem:[%s7603_s5 + $0x18] sm:$0xff] }
0x2a70   :  { %6381 = vtanh.f32 %v4637_v9  ;;  %v5112_v44 = vmul.f32 -1.442695, %v4637_v9  ;;  %v5874_v9 = vpack.c.bf16 %v4743_v47, %v4742_v59 }
0x2a71   :  { %6383 = vpow2.f32 %v5108_v60  ;;  %5881 = vmatpush3.bf16.msra.mxu1 %v5880_v19 }
0x2a72   :  { %6385 = vpow2.f32 %v5109_v13  ;;  %5875 = vmatpush3.bf16.msra.mxu0 %v5874_v9 }
0x2a73   :  { %6387 = vpow2.f32 %v5111_v24  ;;  %5882 = vmatprep.subr.bf16.mxu0 %v6431_v3 }
0x2a74   :  { %6389 = vpow2.f32 %v5112_v44 }
0x2a77   :  { %v6376_v41 = vpop.eup %6375 }
0x2a78   :  { %v6378_v62 = vpop.eup %6377  ;;  %4524 = vrot.lane.b32.xlu0 %v6376_v41, %s6434_s10 }
0x2a79   :  { %4526 = vrot.lane.b32.xlu1 %v6378_v62, %s6434_s10  ;;  %v6380_v4 = vpop.eup %6379 }
0x2a7a   :  { %v6382_v21 = vpop.eup %6381 }
0x2a7b   :  { %v6384_v32 = vpop.eup %6383 }
0x2a7c   :  { %4664 = vrot.lane.b32.xlu0 %v6382_v21, %s6434_s10  ;;  %v6386_v58 = vpop.eup %6385  ;;  %v4506_v63 = vadd.f32 1.0, %v6384_v32 }
0x2a7d   :  { %4662 = vrot.lane.b32.xlu1 %v6380_v4, %s6434_s10  ;;  %v4507_v36 = vadd.f32 1.0, %v6386_v58  ;;  %v6388_v28 = vpop.eup %6387 }
0x2a7e   :  { %v6390_v5 = vpop.eup %6389  ;;  %6391 = vrcp.f32 %v4506_v63  ;;  %v4644_v22 = vadd.f32 1.0, %v6388_v28 }
0x2a7f   :  { %6393 = vrcp.f32 %v4507_v36  ;;  %v4645_v48 = vadd.f32 1.0, %v6390_v5 }
0x2a80   :  { %6395 = vrcp.f32 %v4644_v22 }
0x2a81   :  { %6397 = vrcp.f32 %v4645_v48 }
0x2a88   :  { %v7490_v51 = vpop.eup %6391 }
0x2a89   :  { %v7492_v34 = vpop.eup %6393  ;;  %v4520_v20 = vmul.f32 %v7490_v51, %v4516_v37 }
0x2a8a   :  { %v7498_v7 = vpop.eup %6395  ;;  %v4521_v15 = vmul.f32 %v7492_v34, %v4517_v2 }
0x2a8b   :  { %v7501_v30 = vpop.eup %6397  ;;  %v4658_v52 = vmul.f32 %v7498_v7, %v4654_v57 }
0x2a8c   :  { %v4659_v1 = vmul.f32 %v7501_v30, %v4655_v17 }
0x2aea   :  { %v4525_v10 = vpop.permute.xlu0 %4524 }
0x2aeb   :  { %v4527_v18 = vpop.permute.xlu1 %4526  ;;  %v4530_v54 = vmul.f32 %v7490_v51, %v4525_v10 }
0x2aec   :  { %v4531_v26 = vmul.f32 %v7492_v34, %v4527_v18 }
0x2aed   :  { %4534 = vrot.lane.b32.xlu0 %v4530_v54, %s6435_s11 }
0x2aee   :  { %4536 = vrot.lane.b32.xlu1 %v4531_v26, %s6435_s11  ;;  %v4665_v33 = vpop.permute.xlu0 %4664 }
0x2aef   :  { %v4663_v56 = vpop.permute.xlu1 %4662  ;;  %v4669_v27 = vmul.f32 %v7501_v30, %v4665_v33 }
0x2af0   :  { %v4668_v31 = vmul.f32 %v7498_v7, %v4663_v56  ;;  %v4903_v56 = vld [vmem:[%s7605_s7 + $0x8] sm:$0xff] }
0x2af1   :  { %4674 = vrot.lane.b32.xlu0 %v4669_v27, %s6435_s11 }
0x2af2   :  { %4672 = vrot.lane.b32.xlu1 %v4668_v31, %s6435_s11 }
0x2b5f   :  { %v4535_v16 = vpop.permute.xlu0 %4534 }
0x2b60   :  { %v4537_v23 = vpop.permute.xlu1 %4536  ;;  %v7510_v6 = vadd.f32 %v4535_v16, %v4520_v20  ;;  %v5115_v20 = vld [vmem:[%s7604_s6] ss:$0 sm:$0xff] }
0x2b61   :  { %v4541_v29 = vadd.f32 %v4537_v23, %v4521_v15 }
0x2b62   :  { %6399 = vtanh.f32 %v7510_v6 }
0x2b63   :  { %6401 = vtanh.f32 %v4541_v29  ;;  %v4675_v0 = vpop.permute.xlu0 %4674  ;;  %v4707_v22 = vrot.slane %v4541_v29, 7 }
0x2b64   :  { %v4673_v35 = vpop.permute.xlu1 %4672  ;;  %v4679_v55 = vadd.f32 %v4675_v0, %v4659_v1 }
0x2b65   :  { %v4678_v61 = vadd.f32 %v4673_v35, %v4658_v52 }
0x2b66   :  { %v4727_v46 = vrot.slane %v4679_v55, 7 }
0x2b67   :  { %6403 = vtanh.f32 %v4678_v61 }
0x2b68   :  { %6405 = vtanh.f32 %v4679_v55  ;;  %v4728_v25 = vsel %vm452_vm3, %v4727_v46, %v4678_v61 }
0x2b6c   :  { %v6400_v8 = vpop.eup %6399 }
0x2b6d   :  { %v6402_v40 = vpop.eup %6401  ;;  %4546 = vrot.lane.b32.xlu0 %v6400_v8, %s6434_s10 }
0x2b6e   :  { %4548 = vrot.lane.b32.xlu1 %v6402_v40, %s6434_s10 }
0x2b71   :  { %v6404_v42 = vpop.eup %6403 }
0x2b72   :  { %4684 = vrot.lane.b32.xlu1 %v6404_v42, %s6434_s10  ;;  %v6406_v43 = vpop.eup %6405 }
0x2b73   :  { %4686 = vrot.lane.b32.xlu0 %v6406_v43, %s6434_s10 }
0x2bdf   :  { %v4547_v41 = vpop.permute.xlu0 %4546 }
0x2be0   :  { %v4549_v62 = vpop.permute.xlu1 %4548  ;;  %v4552_v4 = vmul.f32 %v7490_v51, %v4547_v41 }
0x2be1   :  { %v4553_v21 = vmul.f32 %v7492_v34, %v4549_v62 }
0x2be2   :  { %v4816_v60 = vrot.slane %v4552_v4, 7 }
0x2be3   :  { %v4817_v13 = vrot.slane %v4553_v21, 6  ;;  %v4694_v63 = vrot.slane %v4553_v21, 7 }
0x2be4   :  { %v4685_v44 = vpop.permute.xlu1 %4684 }
0x2be5   :  { %v4818_v24 = vsel %vm452_vm3, %v4817_v13, %v4816_v60  ;;  %v4687_v32 = vpop.permute.xlu0 %4686  ;;  %v4690_v36 = vmul.f32 %v7498_v7, %v4685_v44  ;;  %v4902_v7 = vld [vmem:[%s7605_s7] sm:$0xff] }
0x2be6   :  { %4819 = vrot.lane.b32.xlu1 %v4818_v24, %s6435_s11  ;;  %v4691_v58 = vmul.f32 %v7501_v30, %v4687_v32  ;;  %v5883_v31 = vpack.c.bf16 %v4903_v56, %v4902_v7  ;;  %v4905_v30 = vld [vmem:[%s7605_s7 + $0x18] sm:$0xff] }
0x2be8   :  { %v4718_v28 = vrot.slane %v4691_v58, 7 }
0x2bea   :  { %4697 = vrot.lane.b32.xlu1 %v4694_v63, %s6435_s11  ;;  %v4719_v5 = vsel %vm452_vm3, %v4718_v28, %v4690_v36 }
0x2beb   :  { %4720 = vrot.lane.b32.xlu0 %v4719_v5, %s6435_s11 }
0x2bee   :  { %4710 = vrot.lane.b32.xlu1 %v4707_v22, %s6436_s4 }
0x2bef   :  { %4695 = vrot.lane.b32.xlu0 %v4552_v4, %s6435_s11 }
0x2bf3   :  { %4708 = vrot.lane.b32.xlu0 %v7510_v6, %s6436_s4  ;;  %v5116_v6 = vld [vmem:[%s7606_s8] ss:$0 sm:$0xff] }
0x2bf7   :  { %4729 = vrot.lane.b32.xlu0 %v4728_v25, %s6436_s4 }
0x2c58   :  { %v4820_v48 = vpop.permute.xlu1 %4819 }
0x2c59   :  { %5665 = vmatmul.mubr.msk.f32.vlgmr.msra.gmra.mrb[32].mxu1 %vm172_vm2, %v4820_v48 }
0x2c5c   :  { %v4698_v51 = vpop.permute.xlu1 %4697 }
0x2c5d   :  { %4704 = vst.msk [vmem:[#allocation2 + $0x1] sm:$0x1] %vm4703_vm4, %v4698_v51  ;;  %v4721_v10 = vpop.permute.xlu0 %4720 }
0x2c5e   :  { %4724 = vst.msk [vmem:[#allocation4] sm:$0x3] %vm151_vm0, %v4721_v10  ;;  %5654 = vmatmul.mubr.msk.f32.vlgmr.msra.gmra.mrb[32].mxu0 %vm172_vm2, %v4721_v10 }
0x2c5f   :  { %5675 = vmatprep.mubr.msk.f32.mxu0 %vm6432_vm1, %v6433_v11  ;;  %5884 = vmatpush3.bf16.msra.mxu0 %v5883_v31  ;;  %v4904_v11 = vld [vmem:[%s7605_s7 + $0x10] sm:$0xff]  ;;  %s6437_s7 = smov [#allocation8]  }
0x2c60   :  { %v4711_v34 = vpop.permute.xlu1 %4710  ;;  %5885 = vmatprep.subr.bf16.mxu0 %v6431_v3  ;;  %v5886_v33 = vpack.c.bf16 %v4905_v30, %v4904_v11  ;;  %s4993_s20 = sshll.u32 %s6437_s7, 4  ;;  %s4994_s20 = int_to_ptr.vmem [resolvable:$true] %s4993_s20 }
0x2c61   :  { %4715 = vst.msk [vmem:[#allocation3 + $0x1] sm:$0x1] %vm4703_vm4, %v4711_v34  ;;  %v4696_v18 = vpop.permute.xlu0 %4695  ;;  %s6407_s21 = scalar_lea.vmem %s4994_s20, 32  ;;  %p6412_p1 = scmp.lt.s32.totalorder %s4994_s20, %s4994_s20 }
0x2c62   :  { %4702 = vst.msk [vmem:[#allocation2 - $0x7] sm:$0x80] %vm4701_vm5, %v4696_v18  ;;  %p6408_p0 = scmp.ne.s32.totalorder %s4994_s20, %s6407_s21  ;;  %p6413_p2 = scmp.lt.s32.totalorder %s6407_s21, %s6407_s21 }
0x2c63   :  { %5887 = vmatpush3.bf16.msra.mxu0 %v5886_v33 }
0x2c64   :  { %p6414_p3 = por %p6413_p2, %p6412_p1 }
0x2c65   :  { %v4709_v54 = vpop.permute.xlu0 %4708 }
0x2c66   :  { %4714 = vst.msk [vmem:[#allocation3 - $0x7] sm:$0x80] %vm4701_vm5, %v4709_v54  ;;  %p6415_p4 = pnand %p6414_p3, %p6408_p0 }
0x2c69   :  { %v4730_v26 = vpop.permute.xlu0 %4729 }
0x2c6a   :  { %4732 = vst.msk [vmem:[#allocation5] sm:$0x3] %vm151_vm0, %v4730_v26 }
0x2d2c   :  { %v4889_v27 = vpop.f32.mrb[32].mxu1 }
0x2d2d   :  { %v5666_v37 = vpop.f32.mrb[33].mxu1 }
0x2d31   :  { %v4812_v2 = vpop.f32.mrb[32].mxu0 }
0x2d32   :  { %v4890_v15 = vadd.f32 %v4889_v27, %v4812_v2  ;;  %v5655_v16 = vpop.f32.mrb[33].mxu0 }
0x2d34   :  { %v4900_v3 = vadd.f32 %v5115_v20, %v4890_v15 }
0x2d36   :  { %v4901_v23 = vmax.f32 %v4900_v3, 0.0 }
0x2d38   :  { %5676 = vmatmul.mubr.msk.f32.vlgmr.msra.gmra.mrb[34].mxu0 %vm172_vm2, %v4901_v23 }
0x2e0b   :  { %v4982_v57 = vpop.f32.mrb[34].mxu0 }
0x2e0c   :  { %v4983_v29 = vadd.f32 %v5116_v6, %v4982_v57  ;;  %v5677_v17 = vpop.f32.mrb[35].mxu0 }
0x2e0e   :  { %4986 = vst [vmem:[#allocation8] sm:$0x3] %v4983_v29 }
0x2e0f   :  { %6418 = shalt.err (!%p6415_p4)
}
0x2e10   :  { %s6419_s23 = scalar_lea.hbm %s7607_s9, 32 }
0x2e11   :  { %p6420_p5 = scmp.ne.s32.totalorder %s7607_s9, %s6419_s23  ;;  %p6423_p6 = scmp.lt.u32.totalorder %s6419_s23, %s7607_s9 }
0x2e13   :  { %p6425_p7 = pnand %p6423_p6, %p6420_p5 }
0x2e15   :  { %6428 = shalt.err (!%p6425_p7)
}
0x2e16   :  { %4996 = dma.vmem_to_hbm [thread:$0]  %s4994_s20, 32, %s7607_s9, [#allocation9]  }
0x2e17   :  { %6429 = dma.done.wait [#allocation9], 32  }
0x2e18   :  { %6430 = vsyncadd [#allocation9], 4294967264 }
0x2e19   :  { %5000 = vsyncpa [#allocation9], 1 }

</bundles_post_ra>
